<compile_context>
chip_gen: v7x
topology: tpu7x:2x2x1
jax: 0.10.0
libtpu: 0.0.40
codegen_flags: <defaults>
</compile_context>

<pallas_src>
import functools
import math

import jax
import jax.numpy as jnp
from jax.experimental import pallas as pl
from jax.experimental.pallas import tpu as pltpu


def _round_up(n: int, m: int) -> int:
    return ((n + m - 1) // m) * m


def _tpu_generation() -> int:
    """Best-effort TPU generation from the device kind string (0 = unknown)."""
    try:
        kind = jax.devices()[0].device_kind.lower()
    except Exception:
        return 0
    for g in (7, 6, 5, 4, 3, 2):
        if f"v{g}" in kind:
            return g
    return 0


def _vmem_capacity_bytes() -> int:
    try:
        return int(pltpu.get_tpu_info().vmem_capacity_bytes)
    except Exception:
        return 64 << 20  # conservative: v7x per-TC VMEM


def _make_kernel(num_main: int, n_middle: int, hidden_pad: int, act_dtype):
    """Build a kernel closed over static layer count / padded hidden / dtype."""

    if num_main == 1:
        # Degenerate module (len(layers) == 2): U/V are never used.
        def kernel(x_ref, w_ref, b_ref, o_ref):
            o_ref[...] = (
                jnp.dot(x_ref[...], w_ref[...],
                        preferred_element_type=jnp.float32)
                + b_ref[...]).astype(o_ref.dtype)

        return kernel

    H = hidden_pad

    def _body(x_ref, wf_ref, bf_ref, wl_ref, bl_ref, o_ref, mid):
        # One fused MXU push for the three matmuls that consume x (U, V, out0).
        z = jnp.dot(x_ref[...], wf_ref[...],
                    preferred_element_type=jnp.float32) + bf_ref[...]

        U = jnp.tanh(z[:, :H].astype(act_dtype))
        V = jnp.tanh(z[:, H:2 * H].astype(act_dtype))
        out = jnp.tanh(z[:, 2 * H:].astype(act_dtype))

        u_minus_v = U - V            # loop-invariant; hoisted out of the loop
        h = V + out * u_minus_v      # == out*U + (1-out)*V

        if mid is not None:
            wm_ref, bm_ref = mid
            for i in range(n_middle):
                zi = jnp.dot(h.astype(jnp.bfloat16), wm_ref[i],
                             preferred_element_type=jnp.float32) + bm_ref[i]
                out = jnp.tanh(zi.astype(act_dtype))
                h = V + out * u_minus_v

        o_ref[...] = (
            jnp.dot(h.astype(jnp.bfloat16), wl_ref[...],
                    preferred_element_type=jnp.float32)
            + bl_ref[...]).astype(o_ref.dtype)

    if n_middle == 0:
        def kernel(x_ref, wf_ref, bf_ref, wl_ref, bl_ref, o_ref):
            _body(x_ref, wf_ref, bf_ref, wl_ref, bl_ref, o_ref, mid=None)
    else:
        def kernel(x_ref, wf_ref, bf_ref, wm_ref, bm_ref, wl_ref, bl_ref,
                   o_ref):
            _body(x_ref, wf_ref, bf_ref, wl_ref, bl_ref, o_ref,
                  mid=(wm_ref, bm_ref))

    return kernel


def init_params(key, layers):
    """Deterministic init mimicking nn.Linear (uniform +-1/sqrt(fan_in)).

    Weights are stored TRANSPOSED relative to PyTorch: shape (in, out).
    Returns: (WU, bU), (WV, bV), [(W_i, b_i) ...] for the main layers.
    """
    def linear(key, fan_in, fan_out):
        kw, kb = jax.random.split(key)
        bound = 1.0 / jnp.sqrt(float(fan_in))
        W = jax.random.uniform(kw, (fan_in, fan_out), jnp.float32, -bound, bound)
        b = jax.random.uniform(kb, (fan_out,), jnp.float32, -bound, bound)
        return W, b

    n_main = len(layers) - 1
    keys = jax.random.split(key, n_main + 2)
    in0 = linear(keys[0], layers[0], layers[1])
    in1 = linear(keys[1], layers[0], layers[1])
    main = [linear(keys[2 + i], layers[i], layers[i + 1]) for i in range(n_main)]
    return in0, in1, main


@functools.partial(
    jax.jit,
    static_argnames=("num_batch_tiles", "single_buffer_weights",
                     "compute_dtype"))
def sifan_mlp_forward(x, in0, in1, main, num_batch_tiles=None,
                      single_buffer_weights=True, compute_dtype=None):
    """Run the sifanMLP forward pass with a single Pallas kernel."""
    B, d_in = x.shape
    num_main = len(main)
    d_out = main[-1][0].shape[1]

    gen = _tpu_generation()
    if compute_dtype is None:
        # bf16 VPU/EUP on v6e/v7x; keep f32 activations on v5e and older.
        compute_dtype = jnp.bfloat16 if (gen == 0 or gen >= 6) else jnp.float32
    if num_batch_tiles is None:
        # v7x has 2 TensorCores per chip -> 2 "parallel" steps; otherwise 1.
        num_batch_tiles = 2 if (gen >= 7 and B >= 32) else 1

    # Batch tile: pad only to a multiple of 16 rows (bf16 sublane packing).
    tile_b = _round_up(max(1, -(-B // num_batch_tiles)), 16)
    B_pad = tile_b * num_batch_tiles

    def pad_w(W, rows, cols):
        W = W.astype(jnp.bfloat16)  # bf16 MXU operands, f32 accumulate
        return jnp.pad(W, ((0, rows - W.shape[0]), (0, cols - W.shape[1])))

    def pad_b(b, cols):
        return jnp.pad(b.astype(jnp.float32), (0, cols - b.shape[0]))[None, :]

    if num_main == 1:
        n_middle = 0
        h_p = 0
        flat = [pad_w(main[0][0], d_in, d_out), pad_b(main[0][1], d_out)]
    else:
        hidden = main[0][0].shape[1]
        # NOTE: on v6e/v7x a real (large) hidden just above a 128 boundary
        # would prefer 256-granular rounding (2x256x256 MXU); irrelevant here.
        h_p = _round_up(hidden, 128)
        n_middle = num_main - 2

        (wu, bu), (wv, bv) = in0, in1
        w0, b0 = main[0]
        # Fuse the three x-consuming layers along the output dim (K = d_in).
        w_fused = jnp.concatenate(
            [pad_w(wu, d_in, h_p), pad_w(wv, d_in, h_p),
             pad_w(w0, d_in, h_p)], axis=1)
        b_fused = jnp.concatenate(
            [pad_b(bu, h_p), pad_b(bv, h_p), pad_b(b0, h_p)], axis=1)
        flat = [w_fused, b_fused]
        if n_middle > 0:
            w_mid = jnp.stack([pad_w(W, h_p, h_p) for W, _ in main[1:-1]])
            b_mid = jnp.stack([pad_b(b, h_p) for _, b in main[1:-1]])
            flat += [w_mid, b_mid]
        flat += [pad_w(main[-1][0], h_p, d_out), pad_b(main[-1][1], d_out)]

    # x: bf16, batch padded only, feature dim left at the true d_in.
    x_p = jnp.pad(x.astype(jnp.bfloat16), ((0, B_pad - B), (0, 0)))

    kernel = _make_kernel(num_main, n_middle, h_p, compute_dtype)

    x_spec = pl.BlockSpec((tile_b, d_in), lambda i: (i, 0))

    def param_spec(p):
        nd = p.ndim
        idx = lambda i: (0,) * nd  # loop-invariant (constant block index)
        if single_buffer_weights:
            return pl.BlockSpec(p.shape, idx, pipeline_mode=pl.Buffered(1))
        return pl.BlockSpec(p.shape, idx)

    out_spec = pl.BlockSpec((tile_b, d_out), lambda i: (i, 0))

    # Explicit, generation-aware VMEM budget.
    param_bytes = sum(math.prod(p.shape) * p.dtype.itemsize for p in flat)
    if not single_buffer_weights:
        param_bytes *= 2
    io_bytes = 2 * tile_b * d_in * 2 + 2 * tile_b * d_out * 4
    act_itemsize = jnp.dtype(compute_dtype).itemsize
    interm_bytes = (tile_b * 3 * h_p * 4 + 8 * tile_b * h_p * act_itemsize
                    if num_main > 1 else 0)
    cap = min(100 << 20, _vmem_capacity_bytes() - (12 << 20))
    vmem_limit = int(min(cap, max(param_bytes + io_bytes + interm_bytes
                                  + (4 << 20), 32 << 20)))

    y_p = pl.pallas_call(
        kernel,
        out_shape=jax.ShapeDtypeStruct((B_pad, d_out), jnp.float32),
        grid=(num_batch_tiles,),
        in_specs=[x_spec] + [param_spec(p) for p in flat],
        out_specs=out_spec,
        compiler_params=pltpu.CompilerParams(
            dimension_semantics=("parallel",),
            vmem_limit_bytes=vmem_limit),
    )(x_p, *flat)

    return y_p[:B]


def sifan_mlp_reference(x, in0, in1, main, matmul_dtype=jnp.float32,
                        act_dtype=jnp.float32):
    """Pure-JAX reference. With bf16 dtypes it mimics the kernel's casts."""
    def mm(a, w):
        return jnp.dot(a.astype(matmul_dtype), w.astype(matmul_dtype),
                       preferred_element_type=jnp.float32)

    U = jnp.tanh((mm(x, in0[0]) + in0[1]).astype(act_dtype))
    V = jnp.tanh((mm(x, in1[0]) + in1[1]).astype(act_dtype))
    h = x
    for W, b in main[:-1]:
        out = jnp.tanh((mm(h, W) + b).astype(act_dtype))
        h = out * U + (1.0 - out) * V
    W, b = main[-1]
    return mm(h, W) + b


if __name__ == "__main__":
    # Small model: layers = [d_in, hidden, hidden, hidden, d_out].
    layers = [4, 32, 32, 32, 2]
    B = 300  # not a multiple of the tile -> exercises batch padding

    key = jax.random.PRNGKey(0)
    k_params, k_x = jax.random.split(key)

    in0, in1, main = init_params(k_params, layers)
    x = jax.random.normal(k_x, (B, layers[0]), jnp.float32)

    try:
        y = jax.block_until_ready(sifan_mlp_forward(x, in0, in1, main))
    except Exception:
        # Fallback if pipeline_mode=pl.Buffered(1) is unsupported on this jax.
        y = jax.block_until_ready(
            sifan_mlp_forward(x, in0, in1, main, single_buffer_weights=False))

    assert y.shape == (B, layers[-1])

    # Check vs. a reference that mimics the kernel's bf16 matmul / activation
    # casts for the current TPU generation.
    gen = _tpu_generation()
    act_dtype = jnp.bfloat16 if (gen == 0 or gen >= 6) else jnp.float32
    y_mimic = sifan_mlp_reference(x, in0, in1, main,
                                  matmul_dtype=jnp.bfloat16,
                                  act_dtype=act_dtype)
    assert jnp.allclose(y, y_mimic, atol=3e-2, rtol=3e-2), \
        "mismatch vs bf16-mimicking reference"

    # Looser check vs. the pure-f32 reference (exact PyTorch semantics).
    y_ref_f32 = sifan_mlp_reference(x, in0, in1, main)
    assert jnp.allclose(y, y_ref_f32, atol=1e-1, rtol=1e-1), \
        "mismatch vs f32 reference"

    print("KERNEL_OK")
</pallas_src>

<mosaic_0001>
module attributes {stable_mosaic.version = 11 : i64} {
  func.func @kernel(%arg0: i32, %arg1: memref<304x4xbf16, #tpu.memory_space<vmem>>, %arg2: memref<4x384xbf16, #tpu.memory_space<vmem>>, %arg3: memref<1x384xf32, #tpu.memory_space<vmem>>, %arg4: memref<2x128x128xbf16, #tpu.memory_space<vmem>>, %arg5: memref<2x1x128xf32, #tpu.memory_space<vmem>>, %arg6: memref<128x2xbf16, #tpu.memory_space<vmem>>, %arg7: memref<1x2xf32, #tpu.memory_space<vmem>>, %arg8: memref<304x2xf32, #tpu.memory_space<vmem>>) attributes {dimension_semantics = [#tpu.dimension_semantics<parallel>], iteration_bounds = array<i64: 1>, scalar_prefetch = 0 : i64, scratch_operands = 0 : i64, tpu.core_type = #tpu.core_type<tc>, window_params = [{transform_indices = @transform_0, window_bounds = array<i64: 304, 4>}, {pipeline_mode = #tpu.pipeline_mode<synchronous>, transform_indices = @transform_1, window_bounds = array<i64: 4, 384>}, {pipeline_mode = #tpu.pipeline_mode<synchronous>, transform_indices = @transform_2, window_bounds = array<i64: 1, 384>}, {pipeline_mode = #tpu.pipeline_mode<synchronous>, transform_indices = @transform_3, window_bounds = array<i64: 2, 128, 128>}, {pipeline_mode = #tpu.pipeline_mode<synchronous>, transform_indices = @transform_4, window_bounds = array<i64: 2, 1, 128>}, {pipeline_mode = #tpu.pipeline_mode<synchronous>, transform_indices = @transform_5, window_bounds = array<i64: 128, 2>}, {pipeline_mode = #tpu.pipeline_mode<synchronous>, transform_indices = @transform_6, window_bounds = array<i64: 1, 2>}, {transform_indices = @transform_7, window_bounds = array<i64: 304, 2>}]} {
    %c0 = arith.constant 0 : index
    %c0_0 = arith.constant 0 : index
    %0 = vector.load %arg1[%c0, %c0_0] : memref<304x4xbf16, #tpu.memory_space<vmem>>, vector<304x4xbf16>
    %c0_1 = arith.constant 0 : index
    %c0_2 = arith.constant 0 : index
    %1 = vector.load %arg2[%c0_1, %c0_2] : memref<4x384xbf16, #tpu.memory_space<vmem>>, vector<4x384xbf16>
    %cst = arith.constant dense<0.000000e+00> : vector<304x384xf32>
    %2 = tpu.matmul %0, %1, %cst {dimension_numbers = #tpu.dot_dimension_numbers<[1], [0], [0], [1], [0, 0, 1, 1], [], []>} : vector<304x4xbf16>, vector<4x384xbf16>, vector<304x384xf32> -> vector<304x384xf32>
    %c0_3 = arith.constant 0 : index
    %c0_4 = arith.constant 0 : index
    %3 = vector.load %arg3[%c0_3, %c0_4] : memref<1x384xf32, #tpu.memory_space<vmem>>, vector<1x384xf32>
    %4 = vector.broadcast %3 : vector<1x384xf32> to vector<304x384xf32>
    %5 = arith.addf %2, %4 : vector<304x384xf32>
    %6 = vector.extract_strided_slice %5 {offsets = [0, 0], sizes = [304, 128], strides = [1, 1]} : vector<304x384xf32> to vector<304x128xf32>
    %7 = arith.truncf %6 : vector<304x128xf32> to vector<304x128xbf16>
    %8 = math.tanh %7 : vector<304x128xbf16>
    %9 = vector.extract_strided_slice %5 {offsets = [0, 128], sizes = [304, 128], strides = [1, 1]} : vector<304x384xf32> to vector<304x128xf32>
    %10 = arith.truncf %9 : vector<304x128xf32> to vector<304x128xbf16>
    %11 = math.tanh %10 : vector<304x128xbf16>
    %12 = vector.extract_strided_slice %5 {offsets = [0, 256], sizes = [304, 128], strides = [1, 1]} : vector<304x384xf32> to vector<304x128xf32>
    %13 = arith.truncf %12 : vector<304x128xf32> to vector<304x128xbf16>
    %14 = math.tanh %13 : vector<304x128xbf16>
    %15 = arith.subf %8, %11 : vector<304x128xbf16>
    %16 = arith.mulf %14, %15 : vector<304x128xbf16>
    %17 = arith.addf %11, %16 : vector<304x128xbf16>
    %c0_5 = arith.constant 0 : index
    %c0_6 = arith.constant 0 : index
    %c0_7 = arith.constant 0 : index
    %18 = vector.load %arg4[%c0_5, %c0_6, %c0_7] : memref<2x128x128xbf16, #tpu.memory_space<vmem>>, vector<1x128x128xbf16>
    %19 = vector.shape_cast %18 : vector<1x128x128xbf16> to vector<128x128xbf16>
    %cst_8 = arith.constant dense<0.000000e+00> : vector<304x128xf32>
    %20 = tpu.matmul %17, %19, %cst_8 {dimension_numbers = #tpu.dot_dimension_numbers<[1], [0], [0], [1], [0, 0, 1, 1], [], []>} : vector<304x128xbf16>, vector<128x128xbf16>, vector<304x128xf32> -> vector<304x128xf32>
    %c0_9 = arith.constant 0 : index
    %c0_10 = arith.constant 0 : index
    %c0_11 = arith.constant 0 : index
    %21 = vector.load %arg5[%c0_9, %c0_10, %c0_11] : memref<2x1x128xf32, #tpu.memory_space<vmem>>, vector<1x1x128xf32>
    %22 = vector.shape_cast %21 : vector<1x1x128xf32> to vector<1x128xf32>
    %23 = vector.broadcast %22 : vector<1x128xf32> to vector<304x128xf32>
    %24 = arith.addf %20, %23 : vector<304x128xf32>
    %25 = arith.truncf %24 : vector<304x128xf32> to vector<304x128xbf16>
    %26 = math.tanh %25 : vector<304x128xbf16>
    %27 = arith.mulf %26, %15 : vector<304x128xbf16>
    %28 = arith.addf %11, %27 : vector<304x128xbf16>
    %c1 = arith.constant 1 : index
    %c0_12 = arith.constant 0 : index
    %c0_13 = arith.constant 0 : index
    %29 = vector.load %arg4[%c1, %c0_12, %c0_13] : memref<2x128x128xbf16, #tpu.memory_space<vmem>>, vector<1x128x128xbf16>
    %30 = vector.shape_cast %29 : vector<1x128x128xbf16> to vector<128x128xbf16>
    %cst_14 = arith.constant dense<0.000000e+00> : vector<304x128xf32>
    %31 = tpu.matmul %28, %30, %cst_14 {dimension_numbers = #tpu.dot_dimension_numbers<[1], [0], [0], [1], [0, 0, 1, 1], [], []>} : vector<304x128xbf16>, vector<128x128xbf16>, vector<304x128xf32> -> vector<304x128xf32>
    %c1_15 = arith.constant 1 : index
    %c0_16 = arith.constant 0 : index
    %c0_17 = arith.constant 0 : index
    %32 = vector.load %arg5[%c1_15, %c0_16, %c0_17] : memref<2x1x128xf32, #tpu.memory_space<vmem>>, vector<1x1x128xf32>
    %33 = vector.shape_cast %32 : vector<1x1x128xf32> to vector<1x128xf32>
    %34 = vector.broadcast %33 : vector<1x128xf32> to vector<304x128xf32>
    %35 = arith.addf %31, %34 : vector<304x128xf32>
    %36 = arith.truncf %35 : vector<304x128xf32> to vector<304x128xbf16>
    %37 = math.tanh %36 : vector<304x128xbf16>
    %38 = arith.mulf %37, %15 : vector<304x128xbf16>
    %39 = arith.addf %11, %38 : vector<304x128xbf16>
    %c0_18 = arith.constant 0 : index
    %c0_19 = arith.constant 0 : index
    %40 = vector.load %arg6[%c0_18, %c0_19] : memref<128x2xbf16, #tpu.memory_space<vmem>>, vector<128x2xbf16>
    %cst_20 = arith.constant dense<0.000000e+00> : vector<304x2xf32>
    %41 = tpu.matmul %39, %40, %cst_20 {dimension_numbers = #tpu.dot_dimension_numbers<[1], [0], [0], [1], [0, 0, 1, 1], [], []>} : vector<304x128xbf16>, vector<128x2xbf16>, vector<304x2xf32> -> vector<304x2xf32>
    %c0_21 = arith.constant 0 : index
    %c0_22 = arith.constant 0 : index
    %42 = vector.load %arg7[%c0_21, %c0_22] : memref<1x2xf32, #tpu.memory_space<vmem>>, vector<1x2xf32>
    %43 = vector.broadcast %42 : vector<1x2xf32> to vector<304x2xf32>
    %44 = arith.addf %41, %43 : vector<304x2xf32>
    %c0_23 = arith.constant 0 : index
    %c0_24 = arith.constant 0 : index
    %45 = vector.load %arg8[%c0_23, %c0_24] : memref<304x2xf32, #tpu.memory_space<vmem>>, vector<304x2xf32>
    tpu.vector_store %arg8[%c0_23, %c0_24], %44 {strides = array<i32>} : memref<304x2xf32, #tpu.memory_space<vmem>>, vector<304x2xf32>,
    return
  }
  func.func @transform_0(%arg0: i32) -> (i32, i32) {
    %c0_i32 = arith.constant 0 : i32
    %c0_i32_0 = arith.constant 0 : i32
    return %arg0, %c0_i32 : i32, i32
  }
  func.func @transform_1(%arg0: i32) -> (i32, i32) {
    %c0_i32 = arith.constant 0 : i32
    %c0_i32_0 = arith.constant 0 : i32
    %c0_i32_1 = arith.constant 0 : i32
    return %c0_i32, %c0_i32_0 : i32, i32
  }
  func.func @transform_2(%arg0: i32) -> (i32, i32) {
    %c0_i32 = arith.constant 0 : i32
    %c0_i32_0 = arith.constant 0 : i32
    %c0_i32_1 = arith.constant 0 : i32
    return %c0_i32, %c0_i32_0 : i32, i32
  }
  func.func @transform_3(%arg0: i32) -> (i32, i32, i32) {
    %c0_i32 = arith.constant 0 : i32
    %c0_i32_0 = arith.constant 0 : i32
    %c0_i32_1 = arith.constant 0 : i32
    %c0_i32_2 = arith.constant 0 : i32
    return %c0_i32, %c0_i32_0, %c0_i32_1 : i32, i32, i32
  }
  func.func @transform_4(%arg0: i32) -> (i32, i32, i32) {
    %c0_i32 = arith.constant 0 : i32
    %c0_i32_0 = arith.constant 0 : i32
    %c0_i32_1 = arith.constant 0 : i32
    %c0_i32_2 = arith.constant 0 : i32
    return %c0_i32, %c0_i32_0, %c0_i32_1 : i32, i32, i32
  }
  func.func @transform_5(%arg0: i32) -> (i32, i32) {
    %c0_i32 = arith.constant 0 : i32
    %c0_i32_0 = arith.constant 0 : i32
    %c0_i32_1 = arith.constant 0 : i32
    return %c0_i32, %c0_i32_0 : i32, i32
  }
  func.func @transform_6(%arg0: i32) -> (i32, i32) {
    %c0_i32 = arith.constant 0 : i32
    %c0_i32_0 = arith.constant 0 : i32
    %c0_i32_1 = arith.constant 0 : i32
    return %c0_i32, %c0_i32_0 : i32, i32
  }
  func.func @transform_7(%arg0: i32) -> (i32, i32) {
    %c0_i32 = arith.constant 0 : i32
    %c0_i32_0 = arith.constant 0 : i32
    return %arg0, %c0_i32 : i32, i32
  }
}

module attributes {stable_mosaic.version = 11 : i64} {
  func.func @kernel(%arg0: i32, %arg1: memref<304x4xbf16, #tpu.memory_space<vmem>>, %arg2: memref<4x384xbf16, #tpu.memory_space<vmem>>, %arg3: memref<1x384xf32, #tpu.memory_space<vmem>>, %arg4: memref<2x128x128xbf16, #tpu.memory_space<vmem>>, %arg5: memref<2x1x128xf32, #tpu.memory_space<vmem>>, %arg6: memref<128x2xbf16, #tpu.memory_space<vmem>>, %arg7: memref<1x2xf32, #tpu.memory_space<vmem>>, %arg8: memref<304x2xf32, #tpu.memory_space<vmem>>) attributes {dimension_semantics = [#tpu.dimension_semantics<parallel>], iteration_bounds = array<i64: 1>, scalar_prefetch = 0 : i64, scratch_operands = 0 : i64, tpu.core_type = #tpu.core_type<tc>, window_params = [{transform_indices = @transform_0, window_bounds = array<i64: 304, 4>}, {pipeline_mode = #tpu.pipeline_mode<synchronous>, transform_indices = @transform_1, window_bounds = array<i64: 4, 384>}, {pipeline_mode = #tpu.pipeline_mode<synchronous>, transform_indices = @transform_2, window_bounds = array<i64: 1, 384>}, {pipeline_mode = #tpu.pipeline_mode<synchronous>, transform_indices = @transform_3, window_bounds = array<i64: 2, 128, 128>}, {pipeline_mode = #tpu.pipeline_mode<synchronous>, transform_indices = @transform_4, window_bounds = array<i64: 2, 1, 128>}, {pipeline_mode = #tpu.pipeline_mode<synchronous>, transform_indices = @transform_5, window_bounds = array<i64: 128, 2>}, {pipeline_mode = #tpu.pipeline_mode<synchronous>, transform_indices = @transform_6, window_bounds = array<i64: 1, 2>}, {transform_indices = @transform_7, window_bounds = array<i64: 304, 2>}]} {
    %c0 = arith.constant 0 : index
    %c0_0 = arith.constant 0 : index
    %0 = vector.load %arg1[%c0, %c0_0] : memref<304x4xbf16, #tpu.memory_space<vmem>>, vector<304x4xbf16>
    %c0_1 = arith.constant 0 : index
    %c0_2 = arith.constant 0 : index
    %1 = vector.load %arg2[%c0_1, %c0_2] : memref<4x384xbf16, #tpu.memory_space<vmem>>, vector<4x384xbf16>
    %cst = arith.constant dense<0.000000e+00> : vector<304x384xf32>
    %2 = tpu.matmul %0, %1, %cst {dimension_numbers = #tpu.dot_dimension_numbers<[1], [0], [0], [1], [0, 0, 1, 1], [], []>} : vector<304x4xbf16>, vector<4x384xbf16>, vector<304x384xf32> -> vector<304x384xf32>
    %c0_3 = arith.constant 0 : index
    %c0_4 = arith.constant 0 : index
    %3 = vector.load %arg3[%c0_3, %c0_4] : memref<1x384xf32, #tpu.memory_space<vmem>>, vector<1x384xf32>
    %4 = vector.broadcast %3 : vector<1x384xf32> to vector<304x384xf32>
    %5 = arith.addf %2, %4 : vector<304x384xf32>
    %6 = vector.extract_strided_slice %5 {offsets = [0, 0], sizes = [304, 128], strides = [1, 1]} : vector<304x384xf32> to vector<304x128xf32>
    %7 = arith.truncf %6 : vector<304x128xf32> to vector<304x128xbf16>
    %8 = math.tanh %7 : vector<304x128xbf16>
    %9 = vector.extract_strided_slice %5 {offsets = [0, 128], sizes = [304, 128], strides = [1, 1]} : vector<304x384xf32> to vector<304x128xf32>
    %10 = arith.truncf %9 : vector<304x128xf32> to vector<304x128xbf16>
    %11 = math.tanh %10 : vector<304x128xbf16>
    %12 = vector.extract_strided_slice %5 {offsets = [0, 256], sizes = [304, 128], strides = [1, 1]} : vector<304x384xf32> to vector<304x128xf32>
    %13 = arith.truncf %12 : vector<304x128xf32> to vector<304x128xbf16>
    %14 = math.tanh %13 : vector<304x128xbf16>
    %15 = arith.subf %8, %11 : vector<304x128xbf16>
    %16 = arith.mulf %14, %15 : vector<304x128xbf16>
    %17 = arith.addf %11, %16 : vector<304x128xbf16>
    %c0_5 = arith.constant 0 : index
    %c0_6 = arith.constant 0 : index
    %c0_7 = arith.constant 0 : index
    %18 = vector.load %arg4[%c0_5, %c0_6, %c0_7] : memref<2x128x128xbf16, #tpu.memory_space<vmem>>, vector<1x128x128xbf16>
    %19 = vector.shape_cast %18 : vector<1x128x128xbf16> to vector<128x128xbf16>
    %cst_8 = arith.constant dense<0.000000e+00> : vector<304x128xf32>
    %20 = tpu.matmul %17, %19, %cst_8 {dimension_numbers = #tpu.dot_dimension_numbers<[1], [0], [0], [1], [0, 0, 1, 1], [], []>} : vector<304x128xbf16>, vector<128x128xbf16>, vector<304x128xf32> -> vector<304x128xf32>
    %c0_9 = arith.constant 0 : index
    %c0_10 = arith.constant 0 : index
    %c0_11 = arith.constant 0 : index
    %21 = vector.load %arg5[%c0_9, %c0_10, %c0_11] : memref<2x1x128xf32, #tpu.memory_space<vmem>>, vector<1x1x128xf32>
    %22 = vector.shape_cast %21 : vector<1x1x128xf32> to vector<1x128xf32>
    %23 = vector.broadcast %22 : vector<1x128xf32> to vector<304x128xf32>
    %24 = arith.addf %20, %23 : vector<304x128xf32>
    %25 = arith.truncf %24 : vector<304x128xf32> to vector<304x128xbf16>
    %26 = math.tanh %25 : vector<304x128xbf16>
    %27 = arith.mulf %26, %15 : vector<304x128xbf16>
    %28 = arith.addf %11, %27 : vector<304x128xbf16>
    %c1 = arith.constant 1 : index
    %c0_12 = arith.constant 0 : index
    %c0_13 = arith.constant 0 : index
    %29 = vector.load %arg4[%c1, %c0_12, %c0_13] : memref<2x128x128xbf16, #tpu.memory_space<vmem>>, vector<1x128x128xbf16>
    %30 = vector.shape_cast %29 : vector<1x128x128xbf16> to vector<128x128xbf16>
    %cst_14 = arith.constant dense<0.000000e+00> : vector<304x128xf32>
    %31 = tpu.matmul %28, %30, %cst_14 {dimension_numbers = #tpu.dot_dimension_numbers<[1], [0], [0], [1], [0, 0, 1, 1], [], []>} : vector<304x128xbf16>, vector<128x128xbf16>, vector<304x128xf32> -> vector<304x128xf32>
    %c1_15 = arith.constant 1 : index
    %c0_16 = arith.constant 0 : index
    %c0_17 = arith.constant 0 : index
    %32 = vector.load %arg5[%c1_15, %c0_16, %c0_17] : memref<2x1x128xf32, #tpu.memory_space<vmem>>, vector<1x1x128xf32>
    %33 = vector.shape_cast %32 : vector<1x1x128xf32> to vector<1x128xf32>
    %34 = vector.broadcast %33 : vector<1x128xf32> to vector<304x128xf32>
    %35 = arith.addf %31, %34 : vector<304x128xf32>
    %36 = arith.truncf %35 : vector<304x128xf32> to vector<304x128xbf16>
    %37 = math.tanh %36 : vector<304x128xbf16>
    %38 = arith.mulf %37, %15 : vector<304x128xbf16>
    %39 = arith.addf %11, %38 : vector<304x128xbf16>
    %c0_18 = arith.constant 0 : index
    %c0_19 = arith.constant 0 : index
    %40 = vector.load %arg6[%c0_18, %c0_19] : memref<128x2xbf16, #tpu.memory_space<vmem>>, vector<128x2xbf16>
    %cst_20 = arith.constant dense<0.000000e+00> : vector<304x2xf32>
    %41 = tpu.matmul %39, %40, %cst_20 {dimension_numbers = #tpu.dot_dimension_numbers<[1], [0], [0], [1], [0, 0, 1, 1], [], []>} : vector<304x128xbf16>, vector<128x2xbf16>, vector<304x2xf32> -> vector<304x2xf32>
    %c0_21 = arith.constant 0 : index
    %c0_22 = arith.constant 0 : index
    %42 = vector.load %arg7[%c0_21, %c0_22] : memref<1x2xf32, #tpu.memory_space<vmem>>, vector<1x2xf32>
    %43 = vector.broadcast %42 : vector<1x2xf32> to vector<304x2xf32>
    %44 = arith.addf %41, %43 : vector<304x2xf32>
    %c0_23 = arith.constant 0 : index
    %c0_24 = arith.constant 0 : index
    %45 = vector.load %arg8[%c0_23, %c0_24] : memref<304x2xf32, #tpu.memory_space<vmem>>, vector<304x2xf32>
    tpu.vector_store %arg8[%c0_23, %c0_24], %44 {strides = array<i32>} : memref<304x2xf32, #tpu.memory_space<vmem>>, vector<304x2xf32>,
    return
  }
  func.func @transform_0(%arg0: i32) -> (i32, i32) {
    %c0_i32 = arith.constant 0 : i32
    %c0_i32_0 = arith.constant 0 : i32
    return %arg0, %c0_i32 : i32, i32
  }
  func.func @transform_1(%arg0: i32) -> (i32, i32) {
    %c0_i32 = arith.constant 0 : i32
    %c0_i32_0 = arith.constant 0 : i32
    %c0_i32_1 = arith.constant 0 : i32
    return %c0_i32, %c0_i32_0 : i32, i32
  }
  func.func @transform_2(%arg0: i32) -> (i32, i32) {
    %c0_i32 = arith.constant 0 : i32
    %c0_i32_0 = arith.constant 0 : i32
    %c0_i32_1 = arith.constant 0 : i32
    return %c0_i32, %c0_i32_0 : i32, i32
  }
  func.func @transform_3(%arg0: i32) -> (i32, i32, i32) {
    %c0_i32 = arith.constant 0 : i32
    %c0_i32_0 = arith.constant 0 : i32
    %c0_i32_1 = arith.constant 0 : i32
    %c0_i32_2 = arith.constant 0 : i32
    return %c0_i32, %c0_i32_0, %c0_i32_1 : i32, i32, i32
  }
  func.func @transform_4(%arg0: i32) -> (i32, i32, i32) {
    %c0_i32 = arith.constant 0 : i32
    %c0_i32_0 = arith.constant 0 : i32
    %c0_i32_1 = arith.constant 0 : i32
    %c0_i32_2 = arith.constant 0 : i32
    return %c0_i32, %c0_i32_0, %c0_i32_1 : i32, i32, i32
  }
  func.func @transform_5(%arg0: i32) -> (i32, i32) {
    %c0_i32 = arith.constant 0 : i32
    %c0_i32_0 = arith.constant 0 : i32
    %c0_i32_1 = arith.constant 0 : i32
    return %c0_i32, %c0_i32_0 : i32, i32
  }
  func.func @transform_6(%arg0: i32) -> (i32, i32) {
    %c0_i32 = arith.constant 0 : i32
    %c0_i32_0 = arith.constant 0 : i32
    %c0_i32_1 = arith.constant 0 : i32
    return %c0_i32, %c0_i32_0 : i32, i32
  }
  func.func @transform_7(%arg0: i32) -> (i32, i32) {
    %c0_i32 = arith.constant 0 : i32
    %c0_i32_0 = arith.constant 0 : i32
    return %arg0, %c0_i32 : i32, i32
  }
}

</mosaic_0001>

<bundles_post_ra>
// kernel: sifan_mlp_forward.1
= control target key start
LH: loop header
LB: loop body
LE: loop exit
PB: predicated region body
PF: predicated region fallthrough
CT: control target
= control target key end

     0   :  { %v68_v0 = vlaneseq  ;;  %v2604_v1 = vmov 1983009808   ;;  %v2605_v3 = vmov 0   ;;  %vm253_vm0 = vcmask 1041408   ;;  %s4016_s0 = inlined_call_operand.vmem [shape: bf16[304,4], index: 0, kind: input, shape index: {}]   ;;  %s4017_s1 = inlined_call_operand.vmem [shape: bf16[4,384], index: 1, kind: input, shape index: {}]   ;;  %s4018_s3 = inlined_call_operand.vmem [shape: bf16[2,128,128], index: 3, kind: input, shape index: {}]   ;;  %s4019_s2 = inlined_call_operand.vmem [shape: f32[1,384], index: 2, kind: input, shape index: {}]   ;;  %s4020_s5 = inlined_call_operand.vmem [shape: bf16[128,2], index: 5, kind: input, shape index: {}]   ;;  %s4021_s4 = inlined_call_operand.vmem [shape: f32[2,1,128], index: 4, kind: input, shape index: {}]   ;;  %s4022_s6 = inlined_call_operand.vmem [shape: f32[1,2], index: 6, kind: input, shape index: {}]   ;;  %s4023_s7 = inlined_call_operand.vmem [shape: f32[304,2], index: 7, kind: output, shape index: {}]  }
   0x1   :  { %v181_v2 = vunpack.c.l.s4 %v2604_v1  ;;  %395 = vmatprep.mubr.bf16.mxu1 %v2605_v3  ;;  %295 = vmatprep.mubr.bf16.mxu0 %v2605_v3  ;;  %v65_v6 = vld [vmem:[%s4017_s1] sm:$0x3f]  ;;  %v2659_v13 = vld [vmem:[%s4016_s0 + $0x50] sm:$0xff]   ;;  %vm195_vm1 = vcmask 31744   ;;  %v4024_v15 = vmov 0.0   ;;  %v2675_v17 = vld [vmem:[%s4016_s0 + $0x58] sm:$0xff]  }
   0x2   :  { %v2650_v4 = vshrl.u32 %v68_v0, 7  ;;  %v179_v7 = vcombine.high %v65_v6, %v65_v6  ;;  %v2380_v14 = vld [vmem:[%s4016_s0] sm:$0xff]   ;;  %v2381_v18 = vld [vmem:[%s4016_s0 + $0x8] sm:$0xff]   ;;  %v2382_v20 = vld [vmem:[%s4016_s0 + $0x10] sm:$0xff]   ;;  %vm2607_vm2 = vmmov 0   ;;  %vm1764_vm3 = vcmask 15360  }
   0x3   :  { %v182_v5 = vunpack.c.0.s8 %v181_v2  ;;  %v2688_v19 = vld [vmem:[%s4016_s0 + $0x60] sm:$0xff]   ;;  %v2701_v21 = vld [vmem:[%s4016_s0 + $0x68] sm:$0xff]   ;;  %v2383_v22 = vld [vmem:[%s4016_s0 + $0x18] sm:$0xff]  }
   0x4   :  { %v2714_v23 = vld [vmem:[%s4016_s0 + $0x70] sm:$0xff]   ;;  %v2384_v24 = vld [vmem:[%s4016_s0 + $0x20] sm:$0xff]   ;;  %v2727_v25 = vld [vmem:[%s4016_s0 + $0x78] sm:$0xff]   ;;  %v70_v42 = vsub.s32 0, %v2650_v4  ;;  %v74_v44 = vsub.s32 1, %v2650_v4 }
   0x5   :  { %v185_v8 = vsub.s32 %v182_v5, %v2650_v4  ;;  %v2385_v26 = vld [vmem:[%s4016_s0 + $0x28] sm:$0xff]   ;;  %v2740_v27 = vld [vmem:[%s4016_s0 + $0x80] sm:$0xff]   ;;  %v2386_v28 = vld [vmem:[%s4016_s0 + $0x30] sm:$0xff]  }
   0x6   :  { %v2753_v29 = vld [vmem:[%s4016_s0 + $0x88] sm:$0xff]   ;;  %v2387_v30 = vld [vmem:[%s4016_s0 + $0x38] sm:$0xff]   ;;  %v2766_v31 = vld [vmem:[%s4016_s0 + $0x90] sm:$0xff]  }
   0x7   :  { %v186_v9 = vrot.slane %v65_v6, %v185_v8  ;;  %v193_v12 = vrot.slane %v179_v7, %v185_v8  ;;  %v2388_v32 = vld [vmem:[%s4016_s0 + $0x40] sm:$0xff]   ;;  %v2389_v33 = vld [vmem:[%s4016_s0 + $0x48] sm:$0xff]   ;;  %v2392_v36 = vld [vmem:[%s4018_s3 + $0x10] sm:$0xff]  }
   0x8   :  { %v2390_v34 = vld [vmem:[%s4018_s3] sm:$0xff]   ;;  %v2391_v35 = vld [vmem:[%s4018_s3 + $0x8] sm:$0xff]   ;;  %v2393_v37 = vld [vmem:[%s4018_s3 + $0x18] sm:$0xff]  }
   0x9   :  { %v194_v10 = vcombine.high %v186_v9, %v186_v9  ;;  %v255_v11 = vsel %vm253_vm0, %v186_v9, 0  ;;  %v261_v16 = vsel %vm253_vm0, %v193_v12, 0  ;;  %v2394_v38 = vld [vmem:[%s4018_s3 + $0x20] sm:$0xff]   ;;  %v2395_v39 = vld [vmem:[%s4018_s3 + $0x28] sm:$0xff]   ;;  %v2396_v40 = vld [vmem:[%s4018_s3 + $0x30] sm:$0xff]  }
   0xa   :  { %v2397_v41 = vld [vmem:[%s4018_s3 + $0x38] sm:$0xff]   ;;  %v2877_v43 = vld [vmem:[%s4019_s2] sm:$0x7] }
   0xb   :  { %2364 = vmatprep.subr.msk.bf16.mxu1 %vm253_vm0, %v194_v10  ;;  %1826 = vmatprep.subr.msk.bf16.mxu0 %vm253_vm0, %v194_v10  ;;  %v2885_v45 = vrot.slane %v2877_v43, %v70_v42  ;;  %v2888_v46 = vrot.slane %v2877_v43, %v74_v44 }
   0xc   :  { %2365 = vmatpush1.bf16.msra.mxu1 %v255_v11  ;;  %264 = vmatpush1.bf16.msra.mxu0 %v255_v11 }
   0xd   :  { %2010 = vmatprep.subr.bf16.mxu1 %v4024_v15  ;;  %2088 = vmatprep.subr.bf16.mxu0 %v4024_v15 }
   0xf   :  { %1837 = vmatmul.mubr.msk.bf16.vlgmr.msra.gmra.mrb[0].mxu1 %vm195_vm1, %v2659_v13  ;;  %1827 = vmatmul.mubr.msk.bf16.vlgmr.msra.gmra.mrb[0].mxu0 %vm195_vm1, %v2380_v14 }
  0x10   :  { %2011 = vmatpush3.bf16.msra.mxu1 %v261_v16  ;;  %405 = vmatprep.mubr.bf16.mxu1 %v2605_v3 }
  0x11   :  { %305 = vmatprep.mubr.bf16.mxu0 %v2605_v3  ;;  %2180 = vmatprep.subr.bf16.mxu1 %v4024_v15 }
  0x12   :  { %2089 = vmatpush3.bf16.msra.mxu0 %v2390_v34 }
  0x13   :  { %2090 = vmatprep.subr.bf16.mxu0 %v4024_v15 }
  0x16   :  { %2091 = vmatpush3.bf16.msra.mxu0 %v2391_v35 }
  0x17   :  { %1838 = vmatmul.mubr.msk.bf16.gmra.mrb[4].mxu1 %vm195_vm1, %v2675_v17  ;;  %1828 = vmatmul.mubr.msk.bf16.gmra.mrb[4].mxu0 %vm195_vm1, %v2381_v18 }
  0x18   :  { %415 = vmatprep.mubr.bf16.mxu1 %v2605_v3  ;;  %315 = vmatprep.mubr.bf16.mxu0 %v2605_v3 }
  0x19   :  { %2092 = vmatprep.subr.bf16.mxu0 %v4024_v15 }
  0x1a   :  { %2093 = vmatpush3.bf16.msra.mxu0 %v2392_v36 }
  0x1b   :  { %2094 = vmatprep.subr.bf16.mxu0 %v4024_v15 }
  0x1e   :  { %2095 = vmatpush3.bf16.msra.mxu0 %v2393_v37 }
  0x1f   :  { %1839 = vmatmul.mubr.msk.bf16.gmra.mrb[8].mxu1 %vm195_vm1, %v2688_v19  ;;  %1829 = vmatmul.mubr.msk.bf16.gmra.mrb[8].mxu0 %vm195_vm1, %v2382_v20 }
  0x20   :  { %425 = vmatprep.mubr.bf16.mxu1 %v2605_v3  ;;  %325 = vmatprep.mubr.bf16.mxu0 %v2605_v3 }
  0x21   :  { %2096 = vmatprep.subr.bf16.mxu0 %v4024_v15 }
  0x22   :  { %2097 = vmatpush3.bf16.msra.mxu0 %v2394_v38 }
  0x23   :  { %2098 = vmatprep.subr.bf16.mxu0 %v4024_v15 }
  0x26   :  { %2099 = vmatpush3.bf16.msra.mxu0 %v2395_v39 }
  0x27   :  { %1840 = vmatmul.mubr.msk.bf16.gmra.mrb[12].mxu1 %vm195_vm1, %v2701_v21  ;;  %1830 = vmatmul.mubr.msk.bf16.gmra.mrb[12].mxu0 %vm195_vm1, %v2383_v22 }
  0x28   :  { %435 = vmatprep.mubr.bf16.mxu1 %v2605_v3  ;;  %335 = vmatprep.mubr.bf16.mxu0 %v2605_v3 }
  0x29   :  { %2100 = vmatprep.subr.bf16.mxu0 %v4024_v15 }
  0x2a   :  { %2101 = vmatpush3.bf16.msra.mxu0 %v2396_v40 }
  0x2b   :  { %2102 = vmatprep.subr.bf16.mxu0 %v4024_v15 }
  0x2e   :  { %2103 = vmatpush3.bf16.msra.mxu0 %v2397_v41 }
  0x2f   :  { %1841 = vmatmul.mubr.msk.bf16.gmra.mrb[16].mxu1 %vm195_vm1, %v2714_v23  ;;  %1831 = vmatmul.mubr.msk.bf16.gmra.mrb[16].mxu0 %vm195_vm1, %v2384_v24 }
  0x30   :  { %445 = vmatprep.mubr.bf16.mxu1 %v2605_v3  ;;  %345 = vmatprep.mubr.bf16.mxu0 %v2605_v3 }
  0x31   :  { %2272 = vmatprep.subr.bf16.mxu0 %v4024_v15 }
  0x37   :  { %1842 = vmatmul.mubr.msk.bf16.gmra.mrb[20].mxu1 %vm195_vm1, %v2727_v25  ;;  %1832 = vmatmul.mubr.msk.bf16.gmra.mrb[20].mxu0 %vm195_vm1, %v2385_v26 }
  0x38   :  { %455 = vmatprep.mubr.bf16.mxu1 %v2605_v3  ;;  %355 = vmatprep.mubr.bf16.mxu0 %v2605_v3 }
  0x3f   :  { %1843 = vmatmul.mubr.msk.bf16.gmra.mrb[24].mxu1 %vm195_vm1, %v2740_v27  ;;  %1833 = vmatmul.mubr.msk.bf16.gmra.mrb[24].mxu0 %vm195_vm1, %v2386_v28 }
  0x40   :  { %465 = vmatprep.mubr.bf16.mxu1 %v2605_v3  ;;  %365 = vmatprep.mubr.bf16.mxu0 %v2605_v3 }
  0x47   :  { %1844 = vmatmul.mubr.msk.bf16.gmra.mrb[28].mxu1 %vm195_vm1, %v2753_v29  ;;  %1834 = vmatmul.mubr.msk.bf16.gmra.mrb[28].mxu0 %vm195_vm1, %v2387_v30 }
  0x48   :  { %475 = vmatprep.mubr.bf16.mxu1 %v2605_v3  ;;  %375 = vmatprep.mubr.bf16.mxu0 %v2605_v3 }
  0x4f   :  { %1845 = vmatmul.mubr.msk.bf16.gmra.mrb[32].mxu1 %vm195_vm1, %v2766_v31  ;;  %1835 = vmatmul.mubr.msk.bf16.gmra.mrb[32].mxu0 %vm195_vm1, %v2388_v32 }
  0x50   :  { %2012 = vmatprep.mubr.msk.bf16.mxu1 %vm2607_vm2, %v4024_v15  ;;  %385 = vmatprep.mubr.bf16.mxu0 %v2605_v3 }
  0x57   :  { %2013 = vmatmul.mubr.msk.bf16.vlgmr.msra.gmra.mrb[36].mxu1 %vm195_vm1, %v2380_v14  ;;  %1836 = vmatmul.mubr.msk.bf16.gmra.mrb[36].mxu0 %vm195_vm1, %v2389_v33 }
  0x58   :  { %2016 = vmatprep.mubr.msk.bf16.mxu1 %vm2607_vm2, %v4024_v15  ;;  %2104 = vmatprep.mubr.msk.bf16.mxu0 %vm2607_vm2, %v4024_v15 }
  0x5f   :  { %2017 = vmatmul.mubr.msk.bf16.gmra.mrb[40].mxu1 %vm195_vm1, %v2381_v18 }
  0x60   :  { %2020 = vmatprep.mubr.msk.bf16.mxu1 %vm2607_vm2, %v4024_v15 }
  0x67   :  { %2021 = vmatmul.mubr.msk.bf16.gmra.mrb[44].mxu1 %vm195_vm1, %v2382_v20 }
  0x68   :  { %2024 = vmatprep.mubr.msk.bf16.mxu1 %vm2607_vm2, %v4024_v15 }
  0x6f   :  { %2025 = vmatmul.mubr.msk.bf16.gmra.mrb[48].mxu1 %vm195_vm1, %v2383_v22 }
  0x70   :  { %2028 = vmatprep.mubr.msk.bf16.mxu1 %vm2607_vm2, %v4024_v15 }
  0x77   :  { %2029 = vmatmul.mubr.msk.bf16.gmra.mrb[52].mxu1 %vm195_vm1, %v2384_v24 }
  0x78   :  { %2032 = vmatprep.mubr.msk.bf16.mxu1 %vm2607_vm2, %v4024_v15 }
  0x7f   :  { %2033 = vmatmul.mubr.msk.bf16.gmra.mrb[56].mxu1 %vm195_vm1, %v2385_v26 }
  0x80   :  { %2036 = vmatprep.mubr.msk.bf16.mxu1 %vm2607_vm2, %v4024_v15 }
  0x87   :  { %2037 = vmatmul.mubr.msk.bf16.gmra.mrb[60].mxu1 %vm195_vm1, %v2386_v28 }
  0x88   :  { %2040 = vmatprep.mubr.msk.bf16.mxu1 %vm2607_vm2, %v4024_v15 }
  0x8f   :  { %2041 = vmatmul.mubr.msk.bf16.gmra.mrb[64].mxu1 %vm195_vm1, %v2387_v30 }
  0x90   :  { %2044 = vmatprep.mubr.msk.bf16.mxu1 %vm2607_vm2, %v4024_v15 }
  0x97   :  { %2045 = vmatmul.mubr.msk.bf16.gmra.mrb[68].mxu1 %vm195_vm1, %v2388_v32 }
  0x98   :  { %2048 = vmatprep.mubr.msk.bf16.mxu1 %vm2607_vm2, %v4024_v15 }
  0x9f   :  { %2049 = vmatmul.mubr.msk.bf16.gmra.mrb[72].mxu1 %vm195_vm1, %v2389_v33 }
  0xa0   :  { %2052 = vmatprep.mubr.msk.bf16.mxu1 %vm2607_vm2, %v4024_v15 }
  0xa7   :  { %2053 = vmatmul.mubr.msk.bf16.gmra.mrb[76].mxu1 %vm195_vm1, %v2659_v13 }
  0xa8   :  { %2056 = vmatprep.mubr.msk.bf16.mxu1 %vm2607_vm2, %v4024_v15 }
  0xaf   :  { %2057 = vmatmul.mubr.msk.bf16.gmra.mrb[80].mxu1 %vm195_vm1, %v2675_v17 }
  0xb0   :  { %2060 = vmatprep.mubr.msk.bf16.mxu1 %vm2607_vm2, %v4024_v15 }
  0xb7   :  { %2061 = vmatmul.mubr.msk.bf16.gmra.mrb[84].mxu1 %vm195_vm1, %v2688_v19 }
  0xb8   :  { %2064 = vmatprep.mubr.msk.bf16.mxu1 %vm2607_vm2, %v4024_v15 }
  0xbf   :  { %2065 = vmatmul.mubr.msk.bf16.gmra.mrb[88].mxu1 %vm195_vm1, %v2701_v21 }
  0xc0   :  { %2068 = vmatprep.mubr.msk.bf16.mxu1 %vm2607_vm2, %v4024_v15 }
  0xc7   :  { %2069 = vmatmul.mubr.msk.bf16.gmra.mrb[92].mxu1 %vm195_vm1, %v2714_v23 }
  0xc8   :  { %2072 = vmatprep.mubr.msk.bf16.mxu1 %vm2607_vm2, %v4024_v15 }
  0xcf   :  { %2073 = vmatmul.mubr.msk.bf16.gmra.mrb[96].mxu1 %vm195_vm1, %v2727_v25 }
  0xd0   :  { %2076 = vmatprep.mubr.msk.bf16.mxu1 %vm2607_vm2, %v4024_v15 }
  0xd7   :  { %2077 = vmatmul.mubr.msk.bf16.gmra.mrb[100].mxu1 %vm195_vm1, %v2740_v27 }
  0xd8   :  { %2080 = vmatprep.mubr.msk.bf16.mxu1 %vm2607_vm2, %v4024_v15 }
  0xdf   :  { %2081 = vmatmul.mubr.msk.bf16.gmra.mrb[104].mxu1 %vm195_vm1, %v2753_v29 }
  0xe0   :  { %2084 = vmatprep.mubr.msk.bf16.mxu1 %vm2607_vm2, %v4024_v15 }
  0xe2   :  { %v397_v47 = vpop.f32.mrb[0].mxu1  ;;  %v297_v48 = vpop.f32.mrb[0].mxu0 }
  0xe3   :  { %v399_v49 = vpop.f32.mrb[1].mxu1  ;;  %v2891_v50 = vadd.f32 %v297_v48, %v2885_v45  ;;  %v299_v51 = vpop.f32.mrb[1].mxu0  ;;  %v2897_v55 = vadd.f32 %v397_v47, %v2885_v45 }
  0xe4   :  { %v401_v52 = vpop.f32.mrb[2].mxu1  ;;  %v2894_v53 = vadd.f32 %v299_v51, %v2888_v46  ;;  %v301_v54 = vpop.f32.mrb[2].mxu0  ;;  %v2906_v60 = vadd.f32 %v399_v49, %v2888_v46 }
  0xe5   :  { %v2900_v56 = vadd.f32 %v401_v52, %v2885_v45  ;;  %v403_v57 = vpop.f32.mrb[3].mxu1  ;;  %v2903_v58 = vadd.f32 %v301_v54, %v2885_v45  ;;  %v303_v59 = vpop.f32.mrb[3].mxu0 }
  0xe6   :  { %v2909_v61 = vadd.f32 %v403_v57, %v2888_v46  ;;  %v2912_v62 = vadd.f32 %v303_v59, %v2888_v46 }
  0xe7   :  { %2085 = vmatmul.mubr.msk.bf16.gmra.mrb[108].mxu1 %vm195_vm1, %v2766_v31 }
  0xe8   :  { %2196 = vmatprep.mubr.msk.bf16.mxu1 %vm2607_vm2, %v4024_v15 }
  0xea   :  { %v407_v3 = vpop.f32.mrb[4].mxu1  ;;  %v307_v5 = vpop.f32.mrb[4].mxu0 }
  0xeb   :  { %v409_v6 = vpop.f32.mrb[5].mxu1  ;;  %v2927_v7 = vadd.f32 %v307_v5, %v2885_v45  ;;  %v309_v8 = vpop.f32.mrb[5].mxu0  ;;  %v2933_v12 = vadd.f32 %v407_v3, %v2885_v45 }
  0xec   :  { %v411_v9 = vpop.f32.mrb[6].mxu1  ;;  %v2930_v10 = vadd.f32 %v309_v8, %v2888_v46  ;;  %v311_v11 = vpop.f32.mrb[6].mxu0  ;;  %v2942_v18 = vadd.f32 %v409_v6, %v2888_v46 }
  0xed   :  { %v2936_v13 = vadd.f32 %v411_v9, %v2885_v45  ;;  %v413_v14 = vpop.f32.mrb[7].mxu1  ;;  %v2939_v16 = vadd.f32 %v311_v11, %v2885_v45  ;;  %v313_v17 = vpop.f32.mrb[7].mxu0 }
  0xee   :  { %v2945_v19 = vadd.f32 %v413_v14, %v2888_v46  ;;  %v2948_v20 = vadd.f32 %v313_v17, %v2888_v46 }
  0xf2   :  { %v417_v25 = vpop.f32.mrb[8].mxu1  ;;  %v317_v26 = vpop.f32.mrb[8].mxu0 }
  0xf3   :  { %v419_v27 = vpop.f32.mrb[9].mxu1  ;;  %v2959_v28 = vadd.f32 %v317_v26, %v2885_v45  ;;  %v319_v29 = vpop.f32.mrb[9].mxu0  ;;  %v2965_v33 = vadd.f32 %v417_v25, %v2885_v45 }
  0xf4   :  { %v421_v30 = vpop.f32.mrb[10].mxu1  ;;  %v2962_v31 = vadd.f32 %v319_v29, %v2888_v46  ;;  %v321_v32 = vpop.f32.mrb[10].mxu0  ;;  %v2974_v38 = vadd.f32 %v419_v27, %v2888_v46 }
  0xf5   :  { %v2968_v34 = vadd.f32 %v421_v30, %v2885_v45  ;;  %v423_v35 = vpop.f32.mrb[11].mxu1  ;;  %v2971_v36 = vadd.f32 %v321_v32, %v2885_v45  ;;  %v323_v37 = vpop.f32.mrb[11].mxu0 }
  0xf6   :  { %4050 = vst [vmem:[#allocation2_spill] sm:$0xff] %v2974_v38  ;;  %v2977_v39 = vadd.f32 %v423_v35, %v2888_v46  ;;  %v2980_v40 = vadd.f32 %v323_v37, %v2888_v46 }
  0xf8   :  { %4051 = vst [vmem:[#allocation3_spill] sm:$0xff] %v2977_v39 }
  0xfa   :  { %v427_v48 = vpop.f32.mrb[12].mxu1  ;;  %v327_v49 = vpop.f32.mrb[12].mxu0 }
  0xfb   :  { %v429_v51 = vpop.f32.mrb[13].mxu1  ;;  %v2991_v52 = vadd.f32 %v327_v49, %v2885_v45  ;;  %v329_v54 = vpop.f32.mrb[13].mxu0  ;;  %v2997_v5 = vadd.f32 %v427_v48, %v2885_v45 }
  0xfc   :  { %v431_v57 = vpop.f32.mrb[14].mxu1  ;;  %v2994_v59 = vadd.f32 %v329_v54, %v2888_v46  ;;  %v331_v3 = vpop.f32.mrb[14].mxu0  ;;  %v3006_v14 = vadd.f32 %v429_v51, %v2888_v46 }
  0xfd   :  { %4052 = vst [vmem:[#allocation4_spill] sm:$0xff] %v2997_v5  ;;  %v3000_v6 = vadd.f32 %v431_v57, %v2885_v45  ;;  %v433_v8 = vpop.f32.mrb[15].mxu1  ;;  %v3003_v9 = vadd.f32 %v331_v3, %v2885_v45  ;;  %v333_v11 = vpop.f32.mrb[15].mxu0 }
  0xfe   :  { %4054 = vst [vmem:[#allocation6_spill] sm:$0xff] %v3006_v14  ;;  %v3009_v17 = vadd.f32 %v433_v8, %v2888_v46  ;;  %v3012_v25 = vadd.f32 %v333_v11, %v2888_v46 }
  0xff   :  { %4053 = vst [vmem:[#allocation5_spill] sm:$0xff] %v3000_v6 }
 0x100   :  { %4055 = vst [vmem:[#allocation7_spill] sm:$0xff] %v3009_v17 }
 0x102   :  { %v437_v32 = vpop.f32.mrb[16].mxu1  ;;  %v337_v35 = vpop.f32.mrb[16].mxu0 }
 0x103   :  { %v439_v37 = vpop.f32.mrb[17].mxu1  ;;  %v3023_v48 = vadd.f32 %v337_v35, %v2885_v45  ;;  %v339_v49 = vpop.f32.mrb[17].mxu0  ;;  %v3029_v3 = vadd.f32 %v437_v32, %v2885_v45 }
 0x104   :  { %v441_v51 = vpop.f32.mrb[18].mxu1  ;;  %v3026_v54 = vadd.f32 %v339_v49, %v2888_v46  ;;  %v341_v57 = vpop.f32.mrb[18].mxu0  ;;  %v3038_v35 = vadd.f32 %v439_v37, %v2888_v46 }
 0x105   :  { %4056 = vst [vmem:[#allocation8_spill] sm:$0xff] %v3029_v3  ;;  %v3032_v8 = vadd.f32 %v441_v51, %v2885_v45  ;;  %v443_v11 = vpop.f32.mrb[19].mxu1  ;;  %v3035_v29 = vadd.f32 %v341_v57, %v2885_v45  ;;  %v343_v26 = vpop.f32.mrb[19].mxu0 }
 0x106   :  { %4058 = vst [vmem:[#allocation10_spill] sm:$0xff] %v3038_v35  ;;  %v3041_v44 = vadd.f32 %v443_v11, %v2888_v46  ;;  %v3044_v49 = vadd.f32 %v343_v26, %v2888_v46 }
 0x107   :  { %4057 = vst [vmem:[#allocation9_spill] sm:$0xff] %v3032_v8 }
 0x108   :  { %4059 = vst [vmem:[#allocation11_spill] sm:$0xff] %v3041_v44 }
 0x10a   :  { %v447_v37 = vpop.f32.mrb[20].mxu1  ;;  %v347_v23 = vpop.f32.mrb[20].mxu0 }
 0x10b   :  { %v449_v21 = vpop.f32.mrb[21].mxu1  ;;  %v3055_v11 = vadd.f32 %v347_v23, %v2885_v45  ;;  %v349_v26 = vpop.f32.mrb[21].mxu0  ;;  %v3061_v51 = vadd.f32 %v447_v37, %v2885_v45 }
 0x10c   :  { %v451_v1 = vpop.f32.mrb[22].mxu1  ;;  %v3058_v63 = vadd.f32 %v349_v26, %v2888_v46  ;;  %v351_v32 = vpop.f32.mrb[22].mxu0  ;;  %v3070_v23 = vadd.f32 %v449_v21, %v2888_v46 }
 0x10d   :  { %4060 = vst [vmem:[#allocation12_spill] sm:$0xff] %v3061_v51  ;;  %v3064_v57 = vadd.f32 %v451_v1, %v2885_v45  ;;  %v453_v30 = vpop.f32.mrb[23].mxu1  ;;  %v3067_v41 = vadd.f32 %v351_v32, %v2885_v45  ;;  %v353_v27 = vpop.f32.mrb[23].mxu0 }
 0x10e   :  { %4062 = vst [vmem:[#allocation14_spill] sm:$0xff] %v3070_v23  ;;  %v3073_v47 = vadd.f32 %v453_v30, %v2888_v46  ;;  %v3076_v26 = vadd.f32 %v353_v27, %v2888_v46 }
 0x10f   :  { %4061 = vst [vmem:[#allocation13_spill] sm:$0xff] %v3064_v57 }
 0x110   :  { %4063 = vst [vmem:[#allocation15_spill] sm:$0xff] %v3073_v47 }
 0x112   :  { %v457_v21 = vpop.f32.mrb[24].mxu1  ;;  %v357_v24 = vpop.f32.mrb[24].mxu0 }
 0x113   :  { %v459_v22 = vpop.f32.mrb[25].mxu1  ;;  %v3087_v30 = vadd.f32 %v357_v24, %v2885_v45  ;;  %v359_v27 = vpop.f32.mrb[25].mxu0  ;;  %v3093_v1 = vadd.f32 %v457_v21, %v2885_v45 }
 0x114   :  { %v461_v2 = vpop.f32.mrb[26].mxu1  ;;  %v3090_v0 = vadd.f32 %v359_v27, %v2888_v46  ;;  %v361_v37 = vpop.f32.mrb[26].mxu0  ;;  %v3102_v24 = vadd.f32 %v459_v22, %v2888_v46 }
 0x115   :  { %4064 = vst [vmem:[#allocation16_spill] sm:$0xff] %v3093_v1  ;;  %v3096_v32 = vadd.f32 %v461_v2, %v2885_v45  ;;  %v463_v15 = vpop.f32.mrb[27].mxu1  ;;  %v3099_v42 = vadd.f32 %v361_v37, %v2885_v45  ;;  %v363_v23 = vpop.f32.mrb[27].mxu0 }
 0x116   :  { %4066 = vst [vmem:[#allocation18_spill] sm:$0xff] %v3102_v24  ;;  %v3105_v47 = vadd.f32 %v463_v15, %v2888_v46  ;;  %v3108_v27 = vadd.f32 %v363_v23, %v2888_v46  ;;  %v2398_v15 = vld [vmem:[%s4018_s3 + $0x40] sm:$0xff]   ;;  %v4068_v24 = vmov 0.0  }
 0x117   :  { %4065 = vst [vmem:[#allocation17_spill] sm:$0xff] %v3096_v32  ;;  %2181 = vmatpush3.bf16.msra.mxu1 %v2398_v15 }
 0x118   :  { %4067 = vst [vmem:[#allocation19_spill] sm:$0xff] %v3105_v47  ;;  %2182 = vmatprep.subr.bf16.mxu1 %v4068_v24 }
 0x11a   :  { %v467_v22 = vpop.f32.mrb[28].mxu1  ;;  %v367_v57 = vpop.f32.mrb[28].mxu0 }
 0x11b   :  { %v469_v23 = vpop.f32.mrb[29].mxu1  ;;  %v3122_v35 = vadd.f32 %v367_v57, %v2885_v45  ;;  %v369_v21 = vpop.f32.mrb[29].mxu0  ;;  %v3129_v51 = vadd.f32 %v467_v22, %v2885_v45 }
 0x11c   :  { %v471_v1 = vpop.f32.mrb[30].mxu1  ;;  %v3125_v2 = vadd.f32 %v369_v21, %v2888_v46  ;;  %v371_v37 = vpop.f32.mrb[30].mxu0  ;;  %v3138_v15 = vadd.f32 %v469_v23, %v2888_v46 }
 0x11d   :  { %4069 = vst [vmem:[#allocation20_spill] sm:$0xff] %v3129_v51  ;;  %v3132_v47 = vadd.f32 %v471_v1, %v2885_v45  ;;  %v473_v32 = vpop.f32.mrb[31].mxu1  ;;  %v3135_v44 = vadd.f32 %v371_v37, %v2885_v45  ;;  %v373_v57 = vpop.f32.mrb[31].mxu0  ;;  %v78_v1 = vsub.s32 2, %v2650_v4 }
 0x11e   :  { %4071 = vst [vmem:[#allocation22_spill] sm:$0xff] %v3138_v15  ;;  %v3141_v21 = vadd.f32 %v473_v32, %v2888_v46  ;;  %v3144_v3 = vadd.f32 %v373_v57, %v2888_v46 }
 0x11f   :  { %4070 = vst [vmem:[#allocation21_spill] sm:$0xff] %v3132_v47 }
 0x120   :  { %4072 = vst [vmem:[#allocation23_spill] sm:$0xff] %v3141_v21 }
 0x122   :  { %v477_v23 = vpop.f32.mrb[32].mxu1  ;;  %v377_v14 = vpop.f32.mrb[32].mxu0 }
 0x123   :  { %v479_v17 = vpop.f32.mrb[33].mxu1  ;;  %v3155_v32 = vadd.f32 %v377_v14, %v2885_v45  ;;  %v379_v57 = vpop.f32.mrb[33].mxu0  ;;  %v3162_v51 = vadd.f32 %v477_v23, %v2885_v45 }
 0x124   :  { %v481_v5 = vpop.f32.mrb[34].mxu1  ;;  %v3158_v6 = vadd.f32 %v379_v57, %v2888_v46  ;;  %v381_v22 = vpop.f32.mrb[34].mxu0  ;;  %v3171_v21 = vadd.f32 %v479_v17, %v2888_v46  ;;  %v3188_v17 = vrot.slane %v2877_v43, %v78_v1 }
 0x125   :  { %v3165_v37 = vadd.f32 %v481_v5, %v2885_v45  ;;  %v483_v8 = vpop.f32.mrb[35].mxu1  ;;  %v3168_v15 = vadd.f32 %v381_v22, %v2885_v45  ;;  %v383_v14 = vpop.f32.mrb[35].mxu0  ;;  %v4075_v22 = vpack.c.bf16 %v2903_v58, %v2891_v50 }
 0x126   :  { %4073 = vst [vmem:[#allocation24_spill] sm:$0xff] %v3171_v21  ;;  %v3174_v57 = vadd.f32 %v483_v8, %v2888_v46  ;;  %v3177_v47 = vadd.f32 %v383_v14, %v2888_v46  ;;  %v2399_v8 = vld [vmem:[%s4018_s3 + $0x48] sm:$0xff]   ;;  %v4076_v21 = vpack.c.bf16 %v2912_v62, %v2894_v53 }
 0x127   :  { %2183 = vmatpush3.bf16.msra.mxu1 %v2399_v8  ;;  %2414 = vtanh.bf16 %v4075_v22 }
 0x128   :  { %4074 = vst [vmem:[#allocation25_spill] sm:$0xff] %v3174_v57  ;;  %2184 = vmatprep.subr.bf16.mxu1 %v4068_v24  ;;  %2416 = vtanh.bf16 %v4076_v21 }
 0x12a   :  { %v520_v14 = vpop.f32.mrb[36].mxu1  ;;  %v387_v38 = vpop.f32.mrb[36].mxu0 }
 0x12b   :  { %v2014_v39 = vpop.f32.mrb[37].mxu1  ;;  %v3194_v4 = vadd.f32 %v387_v38, %v2885_v45  ;;  %v389_v5 = vpop.f32.mrb[37].mxu0  ;;  %v521_v38 = vadd.f32 %v520_v14, %v3188_v17  ;;  %v4078_v14 = vpack.c.bf16 %v2948_v20, %v2930_v10  ;;  %v2400_v10 = vld [vmem:[%s4018_s3 + $0x50] sm:$0xff]   ;;  %v4079_v20 = vpack.c.bf16 %v2971_v36, %v2959_v28 }
 0x12c   :  { %v523_v23 = vpop.f32.mrb[38].mxu1  ;;  %v3200_v43 = vadd.f32 %v389_v5, %v2888_v46  ;;  %v391_v1 = vpop.f32.mrb[38].mxu0  ;;  %2185 = vmatpush3.bf16.msra.mxu1 %v2400_v10 }
 0x12d   :  { %v524_v39 = vadd.f32 %v523_v23, %v3188_v17  ;;  %v2015_v8 = vpop.f32.mrb[39].mxu1  ;;  %v3209_v57 = vadd.f32 %v391_v1, %v2885_v45  ;;  %v393_v50 = vpop.f32.mrb[39].mxu0  ;;  %v4077_v23 = vpack.c.bf16 %v2939_v16, %v2927_v7  ;;  %2186 = vmatprep.subr.bf16.mxu1 %v4068_v24 }
 0x12e   :  { %v3212_v58 = vadd.f32 %v393_v50, %v2888_v46 }
 0x12f   :  { %v747_v5 = vpack.c.bf16 %v524_v39, %v521_v38  ;;  %v680_v22 = vpack.c.bf16 %v3209_v57, %v3194_v4 }
 0x130   :  { %v718_v53 = vpack.c.bf16 %v3212_v58, %v3200_v43 }
 0x131   :  { %2418 = vtanh.bf16 %v747_v5 }
 0x132   :  { %v528_v62 = vpop.f32.mrb[40].mxu1  ;;  %2420 = vtanh.bf16 %v4077_v23  ;;  %v2415_v39 = vpop.eup %2414  ;;  %v4080_v23 = vpack.c.bf16 %v2980_v40, %v2962_v31 }
 0x133   :  { %v2018_v21 = vpop.f32.mrb[41].mxu1  ;;  %2422 = vtanh.bf16 %v4078_v14  ;;  %v529_v46 = vadd.f32 %v528_v62, %v3188_v17  ;;  %v3226_v50 = vpop.eup %2416 }
 0x134   :  { %v531_v45 = vpop.f32.mrb[42].mxu1  ;;  %v3229_v7 = vsub.bf16 %v2415_v39, %v3226_v50 }
 0x135   :  { %v532_v1 = vadd.f32 %v531_v45, %v3188_v17  ;;  %v2019_v38 = vpop.f32.mrb[43].mxu1 }
 0x137   :  { %v748_v8 = vpack.c.bf16 %v532_v1, %v529_v46 }
 0x139   :  { %2424 = vtanh.bf16 %v748_v8 }
 0x13a   :  { %v536_v5 = vpop.f32.mrb[44].mxu1  ;;  %2426 = vtanh.bf16 %v4079_v20 }
 0x13b   :  { %v2022_v21 = vpop.f32.mrb[45].mxu1  ;;  %2428 = vtanh.bf16 %v4080_v23  ;;  %v537_v45 = vadd.f32 %v536_v5, %v3188_v17 }
 0x13c   :  { %v2419_v16 = vpop.eup %2418  ;;  %v539_v62 = vpop.f32.mrb[46].mxu1  ;;  %v4081_v21 = vpack.c.bf16 %v3003_v9, %v2991_v52  ;;  %v2401_v52 = vld [vmem:[%s4018_s3 + $0x58] sm:$0xff]  }
 0x13d   :  { %v540_v14 = vadd.f32 %v539_v62, %v3188_v17  ;;  %v2023_v46 = vpop.f32.mrb[47].mxu1  ;;  %v804_v1 = vmul.bf16 %v2419_v16, %v3229_v7  ;;  %v2421_v38 = vpop.eup %2420  ;;  %v4082_v16 = vpack.c.bf16 %v3012_v25, %v2994_v59  ;;  %2187 = vmatpush3.bf16.msra.mxu1 %v2401_v52 }
 0x13e   :  { %v3245_v36 = vpop.eup %2422  ;;  %2188 = vmatprep.subr.bf16.mxu1 %v4068_v24 }
 0x13f   :  { %v749_v39 = vpack.c.bf16 %v540_v14, %v537_v45  ;;  %v823_v28 = vadd.bf16 %v3226_v50, %v804_v1  ;;  %v3250_v8 = vsub.bf16 %v2421_v38, %v3245_v36 }
 0x141   :  { %2430 = vtanh.bf16 %v749_v39  ;;  %2105 = vmatmul.mubr.bf16.vlgmr.msra.gmra.mrb[40].mxu0 %v823_v28  ;;  %v4083_v28 = vpack.c.bf16 %v3035_v29, %v3023_v48  ;;  %v2402_v48 = vld [vmem:[%s4018_s3 + $0x60] sm:$0xff]  }
 0x142   :  { %v544_v31 = vpop.f32.mrb[48].mxu1  ;;  %2108 = vmatprep.mubr.msk.bf16.mxu0 %vm2607_vm2, %v4068_v24  ;;  %2432 = vtanh.bf16 %v4081_v21  ;;  %2189 = vmatpush3.bf16.msra.mxu1 %v2402_v48 }
 0x143   :  { %v2026_v40 = vpop.f32.mrb[49].mxu1  ;;  %2434 = vtanh.bf16 %v4082_v16  ;;  %v545_v20 = vadd.f32 %v544_v31, %v3188_v17  ;;  %2190 = vmatprep.subr.bf16.mxu1 %v4068_v24 }
 0x144   :  { %v2425_v5 = vpop.eup %2424  ;;  %v547_v10 = vpop.f32.mrb[50].mxu1  ;;  %v4084_v40 = vpack.c.bf16 %v3044_v49, %v3026_v54 }
 0x145   :  { %v548_v62 = vadd.f32 %v547_v10, %v3188_v17  ;;  %v2027_v23 = vpop.f32.mrb[51].mxu1  ;;  %v805_v45 = vmul.bf16 %v2425_v5, %v3250_v8  ;;  %v2427_v14 = vpop.eup %2426 }
 0x146   :  { %v3262_v38 = vpop.eup %2428 }
 0x147   :  { %v750_v46 = vpack.c.bf16 %v548_v62, %v545_v20  ;;  %v824_v1 = vadd.bf16 %v3245_v36, %v805_v45  ;;  %v3270_v25 = vsub.bf16 %v2427_v14, %v3262_v38  ;;  %v2403_v14 = vld [vmem:[%s4018_s3 + $0x68] sm:$0xff]  }
 0x148   :  { %2191 = vmatpush3.bf16.msra.mxu1 %v2403_v14 }
 0x149   :  { %2436 = vtanh.bf16 %v750_v46  ;;  %2109 = vmatmul.mubr.bf16.gmra.mrb[44].mxu0 %v824_v1  ;;  %v4085_v1 = vpack.c.bf16 %v3067_v41, %v3055_v11  ;;  %v2404_v41 = vld [vmem:[%s4018_s3 + $0x70] sm:$0xff]   ;;  %2192 = vmatprep.subr.bf16.mxu1 %v4068_v24 }
 0x14a   :  { %v552_v59 = vpop.f32.mrb[52].mxu1  ;;  %2112 = vmatprep.mubr.msk.bf16.mxu0 %vm2607_vm2, %v4068_v24  ;;  %2438 = vtanh.bf16 %v4083_v28 }
 0x14b   :  { %v2030_v9 = vpop.f32.mrb[53].mxu1  ;;  %2440 = vtanh.bf16 %v4084_v40  ;;  %v553_v5 = vadd.f32 %v552_v59, %v3188_v17  ;;  %v4086_v59 = vpack.c.bf16 %v3076_v26, %v3058_v63 }
 0x14c   :  { %v2431_v39 = vpop.eup %2430  ;;  %v555_v31 = vpop.f32.mrb[54].mxu1  ;;  %2193 = vmatpush3.bf16.msra.mxu1 %v2404_v41 }
 0x14d   :  { %v556_v21 = vadd.f32 %v555_v31, %v3188_v17  ;;  %v2031_v10 = vpop.f32.mrb[55].mxu1  ;;  %v806_v16 = vmul.bf16 %v2431_v39, %v3270_v25  ;;  %v2433_v20 = vpop.eup %2432  ;;  %2194 = vmatprep.subr.bf16.mxu1 %v4068_v24 }
 0x14e   :  { %v3283_v29 = vpop.eup %2434 }
 0x14f   :  { %v751_v62 = vpack.c.bf16 %v556_v21, %v553_v5  ;;  %v825_v23 = vadd.bf16 %v3262_v38, %v806_v16  ;;  %v3291_v45 = vsub.bf16 %v2433_v20, %v3283_v29  ;;  %v4087_v20 = vpack.c.bf16 %v3099_v42, %v3087_v30 }
 0x151   :  { %2442 = vtanh.bf16 %v751_v62  ;;  %2113 = vmatmul.mubr.bf16.gmra.mrb[48].mxu0 %v825_v23  ;;  %v4088_v23 = vpack.c.bf16 %v3108_v27, %v3090_v0 }
 0x152   :  { %v560_v54 = vpop.f32.mrb[56].mxu1  ;;  %2116 = vmatprep.mubr.msk.bf16.mxu0 %vm2607_vm2, %v4068_v24  ;;  %2444 = vtanh.bf16 %v4085_v1 }
 0x153   :  { %v2034_v49 = vpop.f32.mrb[57].mxu1  ;;  %2446 = vtanh.bf16 %v4086_v59  ;;  %v561_v9 = vadd.f32 %v560_v54, %v3188_v17 }
 0x154   :  { %v2437_v46 = vpop.eup %2436  ;;  %v563_v52 = vpop.f32.mrb[58].mxu1 }
 0x155   :  { %v564_v39 = vadd.f32 %v563_v52, %v3188_v17  ;;  %v2035_v28 = vpop.f32.mrb[59].mxu1  ;;  %v807_v31 = vmul.bf16 %v2437_v46, %v3291_v45  ;;  %v2439_v40 = vpop.eup %2438 }
 0x156   :  { %v3310_v11 = vpop.eup %2440  ;;  %v4090_v28 = vpack.c.bf16 %v3144_v3, %v3125_v2 }
 0x157   :  { %v752_v5 = vpack.c.bf16 %v564_v39, %v561_v9  ;;  %v826_v21 = vadd.bf16 %v3283_v29, %v807_v31  ;;  %v3316_v10 = vsub.bf16 %v2439_v40, %v3310_v11  ;;  %v4089_v9 = vpack.c.bf16 %v3135_v44, %v3122_v35 }
 0x159   :  { %2448 = vtanh.bf16 %v752_v5  ;;  %2117 = vmatmul.mubr.bf16.gmra.mrb[52].mxu0 %v826_v21 }
 0x15a   :  { %v568_v63 = vpop.f32.mrb[60].mxu1  ;;  %2120 = vmatprep.mubr.msk.bf16.mxu0 %vm2607_vm2, %v4068_v24  ;;  %2450 = vtanh.bf16 %v4087_v20  ;;  %v4091_v20 = vpack.c.bf16 %v3168_v15, %v3155_v32 }
 0x15b   :  { %v2038_v26 = vpop.f32.mrb[61].mxu1  ;;  %2452 = vtanh.bf16 %v4088_v23  ;;  %v569_v48 = vadd.f32 %v568_v63, %v3188_v17  ;;  %v4092_v23 = vpack.c.bf16 %v3177_v47, %v3158_v6 }
 0x15c   :  { %v2443_v16 = vpop.eup %2442  ;;  %v571_v62 = vpop.f32.mrb[62].mxu1 }
 0x15d   :  { %v572_v54 = vadd.f32 %v571_v62, %v3188_v17  ;;  %v2039_v49 = vpop.f32.mrb[63].mxu1  ;;  %v808_v14 = vmul.bf16 %v2443_v16, %v3316_v10  ;;  %v2445_v46 = vpop.eup %2444 }
 0x15e   :  { %v3329_v42 = vpop.eup %2446 }
 0x15f   :  { %v753_v1 = vpack.c.bf16 %v572_v54, %v569_v48  ;;  %v827_v52 = vadd.bf16 %v3310_v11, %v808_v14  ;;  %v3334_v27 = vsub.bf16 %v2445_v46, %v3329_v42 }
 0x161   :  { %2454 = vtanh.bf16 %v753_v1  ;;  %2121 = vmatmul.mubr.bf16.gmra.mrb[56].mxu0 %v827_v52 }
 0x162   :  { %v576_v30 = vpop.f32.mrb[64].mxu1  ;;  %2124 = vmatprep.mubr.msk.bf16.mxu0 %vm2607_vm2, %v4068_v24  ;;  %2456 = vtanh.bf16 %v4089_v9 }
 0x163   :  { %v2042_v0 = vpop.f32.mrb[65].mxu1  ;;  %2458 = vtanh.bf16 %v4090_v28  ;;  %v577_v31 = vadd.f32 %v576_v30, %v3188_v17 }
 0x164   :  { %v2449_v59 = vpop.eup %2448  ;;  %v579_v39 = vpop.f32.mrb[66].mxu1 }
 0x165   :  { %v580_v40 = vadd.f32 %v579_v39, %v3188_v17  ;;  %v2043_v5 = vpop.f32.mrb[67].mxu1  ;;  %v809_v21 = vmul.bf16 %v2449_v59, %v3334_v27  ;;  %v2451_v41 = vpop.eup %2450 }
 0x166   :  { %v3346_v16 = vpop.eup %2452 }
 0x167   :  { %v754_v63 = vpack.c.bf16 %v580_v40, %v577_v31  ;;  %v828_v26 = vadd.bf16 %v3329_v42, %v809_v21  ;;  %v3351_v35 = vsub.bf16 %v2451_v41, %v3346_v16  ;;  %v4094_v41 = vpack.c.bf16 %v2909_v61, %v2906_v60 }
 0x169   :  { %2460 = vtanh.bf16 %v754_v63  ;;  %2125 = vmatmul.mubr.bf16.gmra.mrb[60].mxu0 %v828_v26 }
 0x16a   :  { %v584_v44 = vpop.f32.mrb[68].mxu1  ;;  %2128 = vmatprep.mubr.msk.bf16.mxu0 %vm2607_vm2, %v4068_v24  ;;  %2462 = vtanh.bf16 %v4091_v20 }
 0x16b   :  { %v2046_v3 = vpop.f32.mrb[69].mxu1  ;;  %2464 = vtanh.bf16 %v4092_v23  ;;  %v585_v48 = vadd.f32 %v584_v44, %v3188_v17 }
 0x16c   :  { %v2455_v2 = vpop.eup %2454  ;;  %v587_v62 = vpop.f32.mrb[70].mxu1 }
 0x16d   :  { %v588_v54 = vadd.f32 %v587_v62, %v3188_v17  ;;  %v2047_v49 = vpop.f32.mrb[71].mxu1  ;;  %v810_v14 = vmul.bf16 %v2455_v2, %v3351_v35  ;;  %v2457_v46 = vpop.eup %2456 }
 0x16e   :  { %v3363_v30 = vpop.eup %2458  ;;  %v4096_v49 = vpack.c.bf16 %v2945_v19, %v2942_v18 }
 0x16f   :  { %v755_v1 = vpack.c.bf16 %v588_v54, %v585_v48  ;;  %v829_v52 = vadd.bf16 %v3346_v16, %v810_v14  ;;  %v3368_v6 = vsub.bf16 %v2457_v46, %v3363_v30  ;;  %v4095_v48 = vpack.c.bf16 %v2936_v13, %v2933_v12 }
 0x171   :  { %2466 = vtanh.bf16 %v755_v1  ;;  %2129 = vmatmul.mubr.bf16.gmra.mrb[64].mxu0 %v829_v52 }
 0x172   :  { %v592_v15 = vpop.f32.mrb[72].mxu1  ;;  %2132 = vmatprep.mubr.msk.bf16.mxu0 %vm2607_vm2, %v4068_v24  ;;  %2468 = vtanh.bf16 %v680_v22  ;;  %v4093_v22 = vpack.c.bf16 %v2900_v56, %v2897_v55 }
 0x173   :  { %v2050_v47 = vpop.f32.mrb[73].mxu1  ;;  %2470 = vtanh.bf16 %v718_v53  ;;  %v593_v59 = vadd.f32 %v592_v15, %v3188_v17 }
 0x174   :  { %v2461_v32 = vpop.eup %2460  ;;  %v595_v0 = vpop.f32.mrb[74].mxu1 }
 0x175   :  { %v596_v9 = vadd.f32 %v595_v0, %v3188_v17  ;;  %v2051_v39 = vpop.f32.mrb[75].mxu1  ;;  %v811_v28 = vmul.bf16 %v2461_v32, %v3368_v6  ;;  %v2463_v31 = vpop.eup %2462 }
 0x176   :  { %v3380_v21 = vpop.eup %2464  ;;  %v4098_v39 = vld [vmem:[#allocation3_spill] sm:$0xff] }
 0x177   :  { %v756_v40 = vpack.c.bf16 %v596_v9, %v593_v59  ;;  %v830_v5 = vadd.bf16 %v3363_v30, %v811_v28  ;;  %v3385_v43 = vsub.bf16 %v2463_v31, %v3380_v21  ;;  %v4097_v59 = vpack.c.bf16 %v2968_v34, %v2965_v33  ;;  %v4099_v28 = vld [vmem:[#allocation2_spill] sm:$0xff] }
 0x178   :  { %v4100_v31 = vpack.c.bf16 %v4098_v39, %v4099_v28  ;;  %v4110_v28 = vld [vmem:[#allocation11_spill] sm:$0xff] }
 0x179   :  { %2472 = vtanh.bf16 %v756_v40  ;;  %2133 = vmatmul.mubr.bf16.gmra.mrb[68].mxu0 %v830_v5 }
 0x17a   :  { %v600_v57 = vpop.f32.mrb[76].mxu1  ;;  %2136 = vmatprep.mubr.msk.bf16.mxu0 %vm2607_vm2, %v4068_v24  ;;  %2474 = vtanh.bf16 %v4093_v22 }
 0x17b   :  { %v2054_v4 = vpop.f32.mrb[77].mxu1  ;;  %2476 = vtanh.bf16 %v4094_v41  ;;  %v601_v63 = vadd.f32 %v600_v57, %v3188_v17 }
 0x17c   :  { %v2467_v58 = vpop.eup %2466  ;;  %v603_v53 = vpop.f32.mrb[78].mxu1 }
 0x17d   :  { %v604_v26 = vadd.f32 %v603_v53, %v3188_v17  ;;  %v2055_v44 = vpop.f32.mrb[79].mxu1  ;;  %v812_v3 = vmul.bf16 %v2467_v58, %v3385_v43  ;;  %v2469_v2 = vpop.eup %2468 }
 0x17e   :  { %v3397_v23 = vpop.eup %2470  ;;  %v4101_v44 = vld [vmem:[#allocation5_spill] sm:$0xff] }
 0x17f   :  { %v757_v20 = vpack.c.bf16 %v604_v26, %v601_v63  ;;  %v831_v62 = vadd.bf16 %v3380_v21, %v812_v3  ;;  %v3402_v60 = vsub.bf16 %v2469_v2, %v3397_v23  ;;  %v4102_v3 = vld [vmem:[#allocation4_spill] sm:$0xff] }
 0x180   :  { %v4103_v2 = vpack.c.bf16 %v4101_v44, %v4102_v3 }
 0x181   :  { %2478 = vtanh.bf16 %v757_v20  ;;  %2137 = vmatmul.mubr.bf16.gmra.mrb[72].mxu0 %v831_v62  ;;  %v4104_v62 = vld [vmem:[#allocation7_spill] sm:$0xff] }
 0x182   :  { %v608_v55 = vpop.f32.mrb[80].mxu1  ;;  %2140 = vmatprep.mubr.msk.bf16.mxu0 %vm2607_vm2, %v4068_v24  ;;  %2480 = vtanh.bf16 %v4095_v48 }
 0x183   :  { %v2058_v56 = vpop.f32.mrb[81].mxu1  ;;  %2482 = vtanh.bf16 %v4096_v49  ;;  %v609_v14 = vadd.f32 %v608_v55, %v3188_v17  ;;  %v4105_v55 = vld [vmem:[#allocation6_spill] sm:$0xff] }
 0x184   :  { %v2473_v61 = vpop.eup %2472  ;;  %v611_v54 = vpop.f32.mrb[82].mxu1  ;;  %v4106_v56 = vpack.c.bf16 %v4104_v62, %v4105_v55  ;;  %v4114_v62 = vld [vmem:[#allocation12_spill] sm:$0xff] }
 0x185   :  { %v612_v46 = vadd.f32 %v611_v54, %v3188_v17  ;;  %v2059_v1 = vpop.f32.mrb[83].mxu1  ;;  %v813_v52 = vmul.bf16 %v2473_v61, %v3402_v60  ;;  %v2475_v15 = vpop.eup %2474 }
 0x186   :  { %v3414_v0 = vpop.eup %2476 }
 0x187   :  { %v758_v47 = vpack.c.bf16 %v612_v46, %v609_v14  ;;  %v832_v32 = vadd.bf16 %v3397_v23, %v813_v52  ;;  %v3419_v18 = vsub.bf16 %v2475_v15, %v3414_v0 }
 0x189   :  { %2484 = vtanh.bf16 %v758_v47  ;;  %2141 = vmatmul.mubr.bf16.gmra.mrb[76].mxu0 %v832_v32 }
 0x18a   :  { %v616_v12 = vpop.f32.mrb[84].mxu1  ;;  %2144 = vmatprep.mubr.msk.bf16.mxu0 %vm2607_vm2, %v4068_v24  ;;  %2486 = vtanh.bf16 %v4097_v59  ;;  %v4108_v59 = vld [vmem:[#allocation8_spill] sm:$0xff] }
 0x18b   :  { %v2062_v13 = vpop.f32.mrb[85].mxu1  ;;  %2488 = vtanh.bf16 %v4100_v31  ;;  %v617_v40 = vadd.f32 %v616_v12, %v3188_v17  ;;  %v2405_v12 = vld [vmem:[%s4018_s3 + $0x78] sm:$0xff]   ;;  %v4111_v31 = vld [vmem:[#allocation10_spill] sm:$0xff] }
 0x18c   :  { %v2479_v19 = vpop.eup %2478  ;;  %v619_v9 = vpop.f32.mrb[86].mxu1  ;;  %2195 = vmatpush3.bf16.msra.mxu1 %v2405_v12 }
 0x18d   :  { %v620_v5 = vadd.f32 %v619_v9, %v3188_v17  ;;  %v2063_v57 = vpop.f32.mrb[87].mxu1  ;;  %v814_v4 = vmul.bf16 %v2479_v19, %v3419_v18  ;;  %v2481_v58 = vpop.eup %2480  ;;  %v4107_v19 = vld [vmem:[#allocation9_spill] sm:$0xff] }
 0x18e   :  { %v3431_v41 = vpop.eup %2482  ;;  %v4109_v9 = vpack.c.bf16 %v4107_v19, %v4108_v59 }
 0x18f   :  { %v759_v22 = vpack.c.bf16 %v620_v5, %v617_v40  ;;  %v833_v53 = vadd.bf16 %v3414_v0, %v814_v4  ;;  %v3436_v63 = vsub.bf16 %v2481_v58, %v3431_v41  ;;  %v4112_v40 = vpack.c.bf16 %v4110_v28, %v4111_v31  ;;  %v4119_v28 = vld [vmem:[#allocation17_spill] sm:$0xff]  ;;  %v4120_v31 = vld [vmem:[#allocation16_spill] sm:$0xff] }
 0x191   :  { %2490 = vtanh.bf16 %v759_v22  ;;  %2145 = vmatmul.mubr.bf16.gmra.mrb[80].mxu0 %v833_v53 }
 0x192   :  { %v624_v33 = vpop.f32.mrb[88].mxu1  ;;  %2148 = vmatprep.mubr.msk.bf16.mxu0 %vm2607_vm2, %v4068_v24  ;;  %2492 = vtanh.bf16 %v4103_v2 }
 0x193   :  { %v2066_v34 = vpop.f32.mrb[89].mxu1  ;;  %2494 = vtanh.bf16 %v4106_v56  ;;  %v625_v61 = vadd.f32 %v624_v33, %v3188_v17 }
 0x194   :  { %v2485_v26 = vpop.eup %2484  ;;  %v627_v20 = vpop.f32.mrb[90].mxu1 }
 0x195   :  { %v628_v48 = vadd.f32 %v627_v20, %v3188_v17  ;;  %v2067_v54 = vpop.f32.mrb[91].mxu1  ;;  %v815_v49 = vmul.bf16 %v2485_v26, %v3436_v63  ;;  %v2487_v14 = vpop.eup %2486  ;;  %v4113_v20 = vld [vmem:[#allocation13_spill] sm:$0xff] }
 0x196   :  { %v3448_v52 = vpop.eup %2488  ;;  %v4115_v55 = vpack.c.bf16 %v4113_v20, %v4114_v62 }
 0x197   :  { %v760_v46 = vpack.c.bf16 %v628_v48, %v625_v61  ;;  %v834_v1 = vadd.bf16 %v3431_v41, %v815_v49  ;;  %v3453_v32 = vsub.bf16 %v2487_v14, %v3448_v52  ;;  %v4116_v61 = vld [vmem:[#allocation15_spill] sm:$0xff]  ;;  %v4117_v48 = vld [vmem:[#allocation14_spill] sm:$0xff] }
 0x198   :  { %v4118_v54 = vpack.c.bf16 %v4116_v61, %v4117_v48 }
 0x199   :  { %2496 = vtanh.bf16 %v760_v46  ;;  %2149 = vmatmul.mubr.bf16.gmra.mrb[84].mxu0 %v834_v1 }
 0x19a   :  { %v632_v15 = vpop.f32.mrb[92].mxu1  ;;  %2152 = vmatprep.mubr.msk.bf16.mxu0 %vm2607_vm2, %v4068_v24  ;;  %2498 = vtanh.bf16 %v4109_v9 }
 0x19b   :  { %v2070_v47 = vpop.f32.mrb[93].mxu1  ;;  %2500 = vtanh.bf16 %v4112_v40  ;;  %v633_v5 = vadd.f32 %v632_v15, %v3188_v17  ;;  %v4121_v40 = vpack.c.bf16 %v4119_v28, %v4120_v31 }
 0x19c   :  { %v2491_v13 = vpop.eup %2490  ;;  %v635_v39 = vpop.f32.mrb[94].mxu1 }
 0x19d   :  { %v636_v57 = vadd.f32 %v635_v39, %v3188_v17  ;;  %v2071_v4 = vpop.f32.mrb[95].mxu1  ;;  %v816_v58 = vmul.bf16 %v2491_v13, %v3453_v32  ;;  %v2493_v22 = vpop.eup %2492 }
 0x19e   :  { %v3468_v34 = vpop.eup %2494  ;;  %v4123_v4 = vld [vmem:[#allocation18_spill] sm:$0xff] }
 0x19f   :  { %v761_v53 = vpack.c.bf16 %v636_v57, %v633_v5  ;;  %v835_v33 = vadd.bf16 %v3448_v52, %v816_v58  ;;  %v3473_v3 = vsub.bf16 %v2493_v22, %v3468_v34  ;;  %v4122_v57 = vld [vmem:[#allocation19_spill] sm:$0xff] }
 0x1a0   :  { %v4124_v58 = vpack.c.bf16 %v4122_v57, %v4123_v4 }
 0x1a1   :  { %2502 = vtanh.bf16 %v761_v53  ;;  %2153 = vmatmul.mubr.bf16.gmra.mrb[88].mxu0 %v835_v33 }
 0x1a2   :  { %v640_v26 = vpop.f32.mrb[96].mxu1  ;;  %2156 = vmatprep.mubr.msk.bf16.mxu0 %vm2607_vm2, %v4068_v24  ;;  %2504 = vtanh.bf16 %v4115_v55 }
 0x1a3   :  { %v2074_v44 = vpop.f32.mrb[97].mxu1  ;;  %2506 = vtanh.bf16 %v4118_v54  ;;  %v641_v49 = vadd.f32 %v640_v26, %v3188_v17  ;;  %v4125_v54 = vld [vmem:[#allocation21_spill] sm:$0xff] }
 0x1a4   :  { %v2497_v2 = vpop.eup %2496  ;;  %v643_v56 = vpop.f32.mrb[98].mxu1 }
 0x1a5   :  { %v644_v14 = vadd.f32 %v643_v56, %v3188_v17  ;;  %v2075_v46 = vpop.f32.mrb[99].mxu1  ;;  %v817_v1 = vmul.bf16 %v2497_v2, %v3473_v3  ;;  %v2499_v15 = vpop.eup %2498 }
 0x1a6   :  { %v3485_v13 = vpop.eup %2500 }
 0x1a7   :  { %v762_v47 = vpack.c.bf16 %v644_v14, %v641_v49  ;;  %v836_v12 = vadd.bf16 %v3468_v34, %v817_v1  ;;  %v3490_v9 = vsub.bf16 %v2499_v15, %v3485_v13  ;;  %v4126_v49 = vld [vmem:[#allocation20_spill] sm:$0xff]  ;;  %v4128_v1 = vld [vmem:[#allocation23_spill] sm:$0xff]  ;;  %v4129_v15 = vld [vmem:[#allocation22_spill] sm:$0xff] }
 0x1a8   :  { %v4127_v14 = vpack.c.bf16 %v4125_v54, %v4126_v49 }
 0x1a9   :  { %2508 = vtanh.bf16 %v762_v47  ;;  %2157 = vmatmul.mubr.bf16.gmra.mrb[92].mxu0 %v836_v12  ;;  %v4130_v47 = vpack.c.bf16 %v4128_v1, %v4129_v15 }
 0x1aa   :  { %v648_v19 = vpop.f32.mrb[100].mxu1  ;;  %2160 = vmatprep.mubr.msk.bf16.mxu0 %vm2607_vm2, %v4068_v24  ;;  %2510 = vtanh.bf16 %v4121_v40 }
 0x1ab   :  { %v2078_v59 = vpop.f32.mrb[101].mxu1  ;;  %2512 = vtanh.bf16 %v4124_v58  ;;  %v649_v22 = vadd.f32 %v648_v19, %v3188_v17 }
 0x1ac   :  { %v2503_v39 = vpop.eup %2502  ;;  %v651_v5 = vpop.f32.mrb[102].mxu1 }
 0x1ad   :  { %v652_v53 = vadd.f32 %v651_v5, %v3188_v17  ;;  %v2079_v33 = vpop.f32.mrb[103].mxu1  ;;  %v818_v26 = vmul.bf16 %v2503_v39, %v3490_v9  ;;  %v2505_v44 = vpop.eup %2504 }
 0x1ae   :  { %v3502_v62 = vpop.eup %2506 }
 0x1af   :  { %v763_v2 = vpack.c.bf16 %v652_v53, %v649_v22  ;;  %v837_v20 = vadd.bf16 %v3485_v13, %v818_v26  ;;  %v3507_v61 = vsub.bf16 %v2505_v44, %v3502_v62  ;;  %v4131_v53 = vpack.c.bf16 %v3165_v37, %v3162_v51  ;;  %v4132_v26 = vld [vmem:[#allocation25_spill] sm:$0xff]  ;;  %v4133_v44 = vld [vmem:[#allocation24_spill] sm:$0xff] }
 0x1b1   :  { %2514 = vtanh.bf16 %v763_v2  ;;  %2161 = vmatmul.mubr.bf16.gmra.mrb[96].mxu0 %v837_v20  ;;  %v4134_v2 = vpack.c.bf16 %v4132_v26, %v4133_v44 }
 0x1b2   :  { %v656_v55 = vpop.f32.mrb[104].mxu1  ;;  %2164 = vmatprep.mubr.msk.bf16.mxu0 %vm2607_vm2, %v4068_v24  ;;  %2516 = vtanh.bf16 %v4127_v14 }
 0x1b3   :  { %v2082_v56 = vpop.f32.mrb[105].mxu1  ;;  %2518 = vtanh.bf16 %v4130_v47  ;;  %v657_v12 = vadd.f32 %v656_v55, %v3188_v17 }
 0x1b4   :  { %v2509_v48 = vpop.eup %2508  ;;  %v659_v46 = vpop.f32.mrb[106].mxu1 }
 0x1b5   :  { %v660_v19 = vadd.f32 %v659_v46, %v3188_v17  ;;  %v2083_v59 = vpop.f32.mrb[107].mxu1  ;;  %v819_v39 = vmul.bf16 %v2509_v48, %v3507_v61  ;;  %v2511_v28 = vpop.eup %2510 }
 0x1b6   :  { %v3519_v5 = vpop.eup %2512 }
 0x1b7   :  { %v764_v31 = vpack.c.bf16 %v660_v19, %v657_v12  ;;  %v838_v40 = vadd.bf16 %v3502_v62, %v819_v39  ;;  %v3524_v58 = vsub.bf16 %v2511_v28, %v3519_v5  ;;  %v2406_v28 = vld [vmem:[%s4020_s5] sm:$0xff]  }
 0x1b8   :  { %2273 = vmatpush3.bf16.msra.mxu0 %v2406_v28 }
 0x1b9   :  { %2520 = vtanh.bf16 %v764_v31  ;;  %2165 = vmatmul.mubr.bf16.gmra.mrb[100].mxu0 %v838_v40  ;;  %2274 = vmatprep.subr.bf16.mxu0 %v4068_v24  ;;  %v2407_v31 = vld [vmem:[%s4020_s5 + $0x8] sm:$0xff]   ;;  %v3566_v40 = vld [vmem:[%s4021_s4] ss:$0 sm:$0xff] }
 0x1ba   :  { %v664_v57 = vpop.f32.mrb[108].mxu1  ;;  %2168 = vmatprep.mubr.msk.bf16.mxu0 %vm2607_vm2, %v4068_v24  ;;  %2522 = vtanh.bf16 %v4131_v53 }
 0x1bb   :  { %v2086_v4 = vpop.f32.mrb[109].mxu1  ;;  %2524 = vtanh.bf16 %v4134_v2  ;;  %v665_v20 = vadd.f32 %v664_v57, %v3188_v17 }
 0x1bc   :  { %v2515_v22 = vpop.eup %2514  ;;  %v667_v33 = vpop.f32.mrb[110].mxu1  ;;  %2275 = vmatpush3.bf16.msra.mxu0 %v2407_v31 }
 0x1bd   :  { %v668_v55 = vadd.f32 %v667_v33, %v3188_v17  ;;  %v2087_v56 = vpop.f32.mrb[111].mxu1  ;;  %v820_v48 = vmul.bf16 %v2515_v22, %v3524_v58  ;;  %v2517_v54 = vpop.eup %2516  ;;  %2276 = vmatprep.subr.bf16.mxu0 %v4068_v24 }
 0x1be   :  { %v3536_v46 = vpop.eup %2518 }
 0x1bf   :  { %v765_v49 = vpack.c.bf16 %v668_v55, %v665_v20  ;;  %v839_v14 = vadd.bf16 %v3519_v5, %v820_v48  ;;  %v3541_v51 = vsub.bf16 %v2517_v54, %v3536_v46 }
 0x1c1   :  { %2526 = vtanh.bf16 %v765_v49  ;;  %2169 = vmatmul.mubr.bf16.gmra.mrb[104].mxu0 %v839_v14 }
 0x1c2   :  { %2172 = vmatprep.mubr.msk.bf16.mxu0 %vm2607_vm2, %v4068_v24 }
 0x1c4   :  { %v2521_v37 = vpop.eup %2520 }
 0x1c5   :  { %v821_v17 = vmul.bf16 %v2521_v37, %v3541_v51  ;;  %v2523_v1 = vpop.eup %2522 }
 0x1c6   :  { %v3545_v47 = vpop.eup %2524 }
 0x1c7   :  { %v840_v15 = vadd.bf16 %v3536_v46, %v821_v17  ;;  %v3550_v12 = vsub.bf16 %v2523_v1, %v3545_v47  ;;  %v2408_v17 = vld [vmem:[%s4020_s5 + $0x10] sm:$0xff]  }
 0x1c8   :  { %2277 = vmatpush3.bf16.msra.mxu0 %v2408_v17 }
 0x1c9   :  { %2173 = vmatmul.mubr.bf16.gmra.mrb[108].mxu0 %v840_v15  ;;  %2278 = vmatprep.subr.bf16.mxu0 %v4068_v24 }
 0x1ca   :  { %2176 = vmatprep.mubr.msk.bf16.mxu0 %vm2607_vm2, %v4068_v24 }
 0x1cc   :  { %v2527_v19 = vpop.eup %2526 }
 0x1cd   :  { %v822_v59 = vmul.bf16 %v2527_v19, %v3550_v12 }
 0x1cf   :  { %v841_v39 = vadd.bf16 %v3545_v47, %v822_v59 }
 0x1d1   :  { %2177 = vmatmul.mubr.bf16.gmra.mrb[112].mxu0 %v841_v39 }
 0x1d2   :  { %2288 = vmatprep.mubr.msk.bf16.mxu0 %vm2607_vm2, %v4068_v24 }
 0x214   :  { %v947_v57 = vpop.f32.mrb[40].mxu0 }
 0x215   :  { %v2106_v4 = vpop.f32.mrb[41].mxu0  ;;  %v948_v53 = vadd.f32 %v3566_v40, %v947_v57 }
 0x216   :  { %v950_v22 = vpop.f32.mrb[42].mxu0 }
 0x217   :  { %v951_v33 = vadd.f32 %v3566_v40, %v950_v22  ;;  %v2107_v26 = vpop.f32.mrb[43].mxu0 }
 0x219   :  { %v1098_v44 = vpack.c.bf16 %v951_v33, %v948_v53 }
 0x21b   :  { %2528 = vtanh.bf16 %v1098_v44 }
 0x21c   :  { %v955_v2 = vpop.f32.mrb[44].mxu0 }
 0x21d   :  { %v2110_v20 = vpop.f32.mrb[45].mxu0  ;;  %v956_v56 = vadd.f32 %v3566_v40, %v955_v2 }
 0x21e   :  { %v958_v55 = vpop.f32.mrb[46].mxu0 }
 0x21f   :  { %v959_v48 = vadd.f32 %v3566_v40, %v958_v55  ;;  %v2111_v54 = vpop.f32.mrb[47].mxu0 }
 0x221   :  { %v1099_v49 = vpack.c.bf16 %v959_v48, %v956_v56  ;;  %v2409_v48 = vld [vmem:[%s4020_s5 + $0x18] sm:$0xff]  }
 0x222   :  { %2279 = vmatpush3.bf16.msra.mxu0 %v2409_v48 }
 0x223   :  { %2530 = vtanh.bf16 %v1099_v49  ;;  %2280 = vmatprep.subr.bf16.mxu0 %v4068_v24 }
 0x224   :  { %v963_v14 = vpop.f32.mrb[48].mxu0 }
 0x225   :  { %v2114_v37 = vpop.f32.mrb[49].mxu0  ;;  %v964_v19 = vadd.f32 %v3566_v40, %v963_v14 }
 0x226   :  { %v2529_v1 = vpop.eup %2528  ;;  %v966_v15 = vpop.f32.mrb[50].mxu0 }
 0x227   :  { %v967_v59 = vadd.f32 %v3566_v40, %v966_v15  ;;  %v2115_v39 = vpop.f32.mrb[51].mxu0  ;;  %v1136_v28 = vmul.bf16 %v2529_v1, %v3229_v7 }
 0x229   :  { %v1100_v31 = vpack.c.bf16 %v967_v59, %v964_v19  ;;  %v1155_v57 = vadd.bf16 %v3226_v50, %v1136_v28  ;;  %v2410_v28 = vld [vmem:[%s4020_s5 + $0x20] sm:$0xff]  }
 0x22a   :  { %2281 = vmatpush3.bf16.msra.mxu0 %v2410_v28 }
 0x22b   :  { %2532 = vtanh.bf16 %v1100_v31  ;;  %2197 = vmatmul.mubr.bf16.vlgmr.msra.gmra.mrb[112].mxu1 %v1155_v57  ;;  %2282 = vmatprep.subr.bf16.mxu0 %v4068_v24 }
 0x22c   :  { %v971_v4 = vpop.f32.mrb[52].mxu0  ;;  %2200 = vmatprep.mubr.msk.bf16.mxu1 %vm2607_vm2, %v4068_v24 }
 0x22d   :  { %v2118_v22 = vpop.f32.mrb[53].mxu0  ;;  %v972_v26 = vadd.f32 %v3566_v40, %v971_v4  ;;  %v2411_v4 = vld [vmem:[%s4020_s5 + $0x28] sm:$0xff]  }
 0x22e   :  { %v2531_v53 = vpop.eup %2530  ;;  %v974_v33 = vpop.f32.mrb[54].mxu0  ;;  %2283 = vmatpush3.bf16.msra.mxu0 %v2411_v4 }
 0x22f   :  { %v975_v44 = vadd.f32 %v3566_v40, %v974_v33  ;;  %v2119_v2 = vpop.f32.mrb[55].mxu0  ;;  %v1137_v20 = vmul.bf16 %v2531_v53, %v3250_v8  ;;  %2284 = vmatprep.subr.bf16.mxu0 %v4068_v24 }
 0x231   :  { %v1101_v55 = vpack.c.bf16 %v975_v44, %v972_v26  ;;  %v1156_v56 = vadd.bf16 %v3245_v36, %v1137_v20 }
 0x233   :  { %2534 = vtanh.bf16 %v1101_v55  ;;  %2201 = vmatmul.mubr.bf16.gmra.mrb[116].mxu1 %v1156_v56  ;;  %v2412_v56 = vld [vmem:[%s4020_s5 + $0x30] sm:$0xff]  }
 0x234   :  { %v979_v54 = vpop.f32.mrb[56].mxu0  ;;  %2204 = vmatprep.mubr.msk.bf16.mxu1 %vm2607_vm2, %v4068_v24  ;;  %2285 = vmatpush3.bf16.msra.mxu0 %v2412_v56 }
 0x235   :  { %v2122_v49 = vpop.f32.mrb[57].mxu0  ;;  %v980_v17 = vadd.f32 %v3566_v40, %v979_v54  ;;  %2286 = vmatprep.subr.bf16.mxu0 %v4068_v24 }
 0x236   :  { %v2533_v14 = vpop.eup %2532  ;;  %v982_v37 = vpop.f32.mrb[58].mxu0 }
 0x237   :  { %v983_v1 = vadd.f32 %v3566_v40, %v982_v37  ;;  %v2123_v15 = vpop.f32.mrb[59].mxu0  ;;  %v1138_v19 = vmul.bf16 %v2533_v14, %v3270_v25 }
 0x239   :  { %v1102_v59 = vpack.c.bf16 %v983_v1, %v980_v17  ;;  %v1157_v39 = vadd.bf16 %v3262_v38, %v1138_v19 }
 0x23b   :  { %2536 = vtanh.bf16 %v1102_v59  ;;  %2205 = vmatmul.mubr.bf16.gmra.mrb[120].mxu1 %v1157_v39 }
 0x23c   :  { %v987_v31 = vpop.f32.mrb[60].mxu0  ;;  %2208 = vmatprep.mubr.msk.bf16.mxu1 %vm2607_vm2, %v4068_v24 }
 0x23d   :  { %v2126_v57 = vpop.f32.mrb[61].mxu0  ;;  %v988_v33 = vadd.f32 %v3566_v40, %v987_v31 }
 0x23e   :  { %v2535_v22 = vpop.eup %2534  ;;  %v990_v53 = vpop.f32.mrb[62].mxu0 }
 0x23f   :  { %v991_v26 = vadd.f32 %v3566_v40, %v990_v53  ;;  %v2127_v44 = vpop.f32.mrb[63].mxu0  ;;  %v1139_v2 = vmul.bf16 %v2535_v22, %v3291_v45 }
 0x241   :  { %v1103_v20 = vpack.c.bf16 %v991_v26, %v988_v33  ;;  %v1158_v55 = vadd.bf16 %v3283_v29, %v1139_v2 }
 0x243   :  { %2538 = vtanh.bf16 %v1103_v20  ;;  %2209 = vmatmul.mubr.bf16.gmra.mrb[124].mxu1 %v1158_v55 }
 0x244   :  { %v995_v48 = vpop.f32.mrb[64].mxu0  ;;  %2212 = vmatprep.mubr.msk.bf16.mxu1 %vm2607_vm2, %v4068_v24 }
 0x245   :  { %v2130_v54 = vpop.f32.mrb[65].mxu0  ;;  %v996_v37 = vadd.f32 %v3566_v40, %v995_v48 }
 0x246   :  { %v2537_v49 = vpop.eup %2536  ;;  %v998_v14 = vpop.f32.mrb[66].mxu0 }
 0x247   :  { %v999_v17 = vadd.f32 %v3566_v40, %v998_v14  ;;  %v2131_v1 = vpop.f32.mrb[67].mxu0  ;;  %v1140_v15 = vmul.bf16 %v2537_v49, %v3316_v10 }
 0x249   :  { %v1104_v19 = vpack.c.bf16 %v999_v17, %v996_v37  ;;  %v1159_v59 = vadd.bf16 %v3310_v11, %v1140_v15 }
 0x24b   :  { %2540 = vtanh.bf16 %v1104_v19  ;;  %2213 = vmatmul.mubr.bf16.gmra.mrb[128].mxu1 %v1159_v59 }
 0x24c   :  { %v1003_v39 = vpop.f32.mrb[68].mxu0  ;;  %2216 = vmatprep.mubr.msk.bf16.mxu1 %vm2607_vm2, %v4068_v24 }
 0x24d   :  { %v2134_v28 = vpop.f32.mrb[69].mxu0  ;;  %v1004_v4 = vadd.f32 %v3566_v40, %v1003_v39 }
 0x24e   :  { %v2539_v31 = vpop.eup %2538  ;;  %v1006_v57 = vpop.f32.mrb[70].mxu0 }
 0x24f   :  { %v1007_v22 = vadd.f32 %v3566_v40, %v1006_v57  ;;  %v2135_v53 = vpop.f32.mrb[71].mxu0  ;;  %v1141_v33 = vmul.bf16 %v2539_v31, %v3334_v27 }
 0x251   :  { %v1105_v26 = vpack.c.bf16 %v1007_v22, %v1004_v4  ;;  %v1160_v44 = vadd.bf16 %v3329_v42, %v1141_v33 }
 0x253   :  { %2542 = vtanh.bf16 %v1105_v26  ;;  %2217 = vmatmul.mubr.bf16.gmra.mrb[132].mxu1 %v1160_v44 }
 0x254   :  { %v1011_v2 = vpop.f32.mrb[72].mxu0  ;;  %2220 = vmatprep.mubr.msk.bf16.mxu1 %vm2607_vm2, %v4068_v24 }
 0x255   :  { %v2138_v20 = vpop.f32.mrb[73].mxu0  ;;  %v1012_v48 = vadd.f32 %v3566_v40, %v1011_v2 }
 0x256   :  { %v2541_v55 = vpop.eup %2540  ;;  %v1014_v56 = vpop.f32.mrb[74].mxu0 }
 0x257   :  { %v1015_v54 = vadd.f32 %v3566_v40, %v1014_v56  ;;  %v2139_v49 = vpop.f32.mrb[75].mxu0  ;;  %v1142_v14 = vmul.bf16 %v2541_v55, %v3351_v35 }
 0x259   :  { %v1106_v37 = vpack.c.bf16 %v1015_v54, %v1012_v48  ;;  %v1161_v17 = vadd.bf16 %v3346_v16, %v1142_v14 }
 0x25b   :  { %2544 = vtanh.bf16 %v1106_v37  ;;  %2221 = vmatmul.mubr.bf16.gmra.mrb[136].mxu1 %v1161_v17 }
 0x25c   :  { %v1019_v1 = vpop.f32.mrb[76].mxu0  ;;  %2224 = vmatprep.mubr.msk.bf16.mxu1 %vm2607_vm2, %v4068_v24 }
 0x25d   :  { %v2142_v15 = vpop.f32.mrb[77].mxu0  ;;  %v1020_v39 = vadd.f32 %v3566_v40, %v1019_v1 }
 0x25e   :  { %v2543_v19 = vpop.eup %2542  ;;  %v1022_v59 = vpop.f32.mrb[78].mxu0 }
 0x25f   :  { %v1023_v28 = vadd.f32 %v3566_v40, %v1022_v59  ;;  %v2143_v31 = vpop.f32.mrb[79].mxu0  ;;  %v1143_v57 = vmul.bf16 %v2543_v19, %v3368_v6 }
 0x261   :  { %v1107_v4 = vpack.c.bf16 %v1023_v28, %v1020_v39  ;;  %v1162_v22 = vadd.bf16 %v3363_v30, %v1143_v57 }
 0x263   :  { %2546 = vtanh.bf16 %v1107_v4  ;;  %2225 = vmatmul.mubr.bf16.gmra.mrb[140].mxu1 %v1162_v22 }
 0x264   :  { %v1027_v53 = vpop.f32.mrb[80].mxu0  ;;  %2228 = vmatprep.mubr.msk.bf16.mxu1 %vm2607_vm2, %v4068_v24 }
 0x265   :  { %v2146_v33 = vpop.f32.mrb[81].mxu0  ;;  %v1028_v2 = vadd.f32 %v3566_v40, %v1027_v53 }
 0x266   :  { %v2545_v26 = vpop.eup %2544  ;;  %v1030_v44 = vpop.f32.mrb[82].mxu0 }
 0x267   :  { %v1031_v20 = vadd.f32 %v3566_v40, %v1030_v44  ;;  %v2147_v55 = vpop.f32.mrb[83].mxu0  ;;  %v1144_v56 = vmul.bf16 %v2545_v26, %v3385_v43 }
 0x269   :  { %v1108_v48 = vpack.c.bf16 %v1031_v20, %v1028_v2  ;;  %v1163_v54 = vadd.bf16 %v3380_v21, %v1144_v56 }
 0x26b   :  { %2548 = vtanh.bf16 %v1108_v48  ;;  %2229 = vmatmul.mubr.bf16.gmra.mrb[144].mxu1 %v1163_v54 }
 0x26c   :  { %v1035_v49 = vpop.f32.mrb[84].mxu0  ;;  %2232 = vmatprep.mubr.msk.bf16.mxu1 %vm2607_vm2, %v4068_v24 }
 0x26d   :  { %v2150_v14 = vpop.f32.mrb[85].mxu0  ;;  %v1036_v1 = vadd.f32 %v3566_v40, %v1035_v49 }
 0x26e   :  { %v2547_v37 = vpop.eup %2546  ;;  %v1038_v17 = vpop.f32.mrb[86].mxu0 }
 0x26f   :  { %v1039_v15 = vadd.f32 %v3566_v40, %v1038_v17  ;;  %v2151_v19 = vpop.f32.mrb[87].mxu0  ;;  %v1145_v59 = vmul.bf16 %v2547_v37, %v3402_v60 }
 0x271   :  { %v1109_v39 = vpack.c.bf16 %v1039_v15, %v1036_v1  ;;  %v1164_v28 = vadd.bf16 %v3397_v23, %v1145_v59 }
 0x273   :  { %2550 = vtanh.bf16 %v1109_v39  ;;  %2233 = vmatmul.mubr.bf16.gmra.mrb[148].mxu1 %v1164_v28  ;;  %v2413_v39 = vld [vmem:[%s4020_s5 + $0x38] sm:$0xff]  }
 0x274   :  { %v1043_v31 = vpop.f32.mrb[88].mxu0  ;;  %2236 = vmatprep.mubr.msk.bf16.mxu1 %vm2607_vm2, %v4068_v24  ;;  %2287 = vmatpush3.bf16.msra.mxu0 %v2413_v39 }
 0x275   :  { %v2154_v57 = vpop.f32.mrb[89].mxu0  ;;  %v1044_v53 = vadd.f32 %v3566_v40, %v1043_v31 }
 0x276   :  { %v2549_v4 = vpop.eup %2548  ;;  %v1046_v22 = vpop.f32.mrb[90].mxu0 }
 0x277   :  { %v1047_v33 = vadd.f32 %v3566_v40, %v1046_v22  ;;  %v2155_v26 = vpop.f32.mrb[91].mxu0  ;;  %v1146_v44 = vmul.bf16 %v2549_v4, %v3419_v18 }
 0x279   :  { %v1110_v2 = vpack.c.bf16 %v1047_v33, %v1044_v53  ;;  %v1165_v20 = vadd.bf16 %v3414_v0, %v1146_v44 }
 0x27b   :  { %2552 = vtanh.bf16 %v1110_v2  ;;  %2237 = vmatmul.mubr.bf16.gmra.mrb[152].mxu1 %v1165_v20 }
 0x27c   :  { %v1051_v55 = vpop.f32.mrb[92].mxu0  ;;  %2240 = vmatprep.mubr.msk.bf16.mxu1 %vm2607_vm2, %v4068_v24 }
 0x27d   :  { %v2158_v56 = vpop.f32.mrb[93].mxu0  ;;  %v1052_v49 = vadd.f32 %v3566_v40, %v1051_v55 }
 0x27e   :  { %v2551_v48 = vpop.eup %2550  ;;  %v1054_v54 = vpop.f32.mrb[94].mxu0 }
 0x27f   :  { %v1055_v14 = vadd.f32 %v3566_v40, %v1054_v54  ;;  %v2159_v37 = vpop.f32.mrb[95].mxu0  ;;  %v1147_v17 = vmul.bf16 %v2551_v48, %v3436_v63 }
 0x281   :  { %v1111_v1 = vpack.c.bf16 %v1055_v14, %v1052_v49  ;;  %v1166_v15 = vadd.bf16 %v3431_v41, %v1147_v17 }
 0x283   :  { %2554 = vtanh.bf16 %v1111_v1  ;;  %2241 = vmatmul.mubr.bf16.gmra.mrb[156].mxu1 %v1166_v15 }
 0x284   :  { %v1059_v19 = vpop.f32.mrb[96].mxu0  ;;  %2244 = vmatprep.mubr.msk.bf16.mxu1 %vm2607_vm2, %v4068_v24 }
 0x285   :  { %v2162_v59 = vpop.f32.mrb[97].mxu0  ;;  %v1060_v57 = vadd.f32 %v3566_v40, %v1059_v19 }
 0x286   :  { %v2553_v28 = vpop.eup %2552  ;;  %v1062_v31 = vpop.f32.mrb[98].mxu0 }
 0x287   :  { %v1063_v4 = vadd.f32 %v3566_v40, %v1062_v31  ;;  %v2163_v22 = vpop.f32.mrb[99].mxu0  ;;  %v1148_v53 = vmul.bf16 %v2553_v28, %v3453_v32 }
 0x289   :  { %v1112_v33 = vpack.c.bf16 %v1063_v4, %v1060_v57  ;;  %v1167_v26 = vadd.bf16 %v3448_v52, %v1148_v53 }
 0x28b   :  { %2556 = vtanh.bf16 %v1112_v33  ;;  %2245 = vmatmul.mubr.bf16.gmra.mrb[160].mxu1 %v1167_v26 }
 0x28c   :  { %v1067_v44 = vpop.f32.mrb[100].mxu0  ;;  %2248 = vmatprep.mubr.msk.bf16.mxu1 %vm2607_vm2, %v4068_v24 }
 0x28d   :  { %v2166_v2 = vpop.f32.mrb[101].mxu0  ;;  %v1068_v56 = vadd.f32 %v3566_v40, %v1067_v44 }
 0x28e   :  { %v2555_v20 = vpop.eup %2554  ;;  %v1070_v55 = vpop.f32.mrb[102].mxu0 }
 0x28f   :  { %v1071_v48 = vadd.f32 %v3566_v40, %v1070_v55  ;;  %v2167_v54 = vpop.f32.mrb[103].mxu0  ;;  %v1149_v49 = vmul.bf16 %v2555_v20, %v3473_v3 }
 0x291   :  { %v1113_v14 = vpack.c.bf16 %v1071_v48, %v1068_v56  ;;  %v1168_v37 = vadd.bf16 %v3468_v34, %v1149_v49 }
 0x293   :  { %2558 = vtanh.bf16 %v1113_v14  ;;  %2249 = vmatmul.mubr.bf16.gmra.mrb[164].mxu1 %v1168_v37 }
 0x294   :  { %v1075_v17 = vpop.f32.mrb[104].mxu0  ;;  %2252 = vmatprep.mubr.msk.bf16.mxu1 %vm2607_vm2, %v4068_v24 }
 0x295   :  { %v2170_v1 = vpop.f32.mrb[105].mxu0  ;;  %v1076_v59 = vadd.f32 %v3566_v40, %v1075_v17 }
 0x296   :  { %v2557_v15 = vpop.eup %2556  ;;  %v1078_v19 = vpop.f32.mrb[106].mxu0 }
 0x297   :  { %v1079_v39 = vadd.f32 %v3566_v40, %v1078_v19  ;;  %v2171_v28 = vpop.f32.mrb[107].mxu0  ;;  %v1150_v31 = vmul.bf16 %v2557_v15, %v3490_v9 }
 0x299   :  { %v1114_v57 = vpack.c.bf16 %v1079_v39, %v1076_v59  ;;  %v1169_v4 = vadd.bf16 %v3485_v13, %v1150_v31 }
 0x29b   :  { %2560 = vtanh.bf16 %v1114_v57  ;;  %2253 = vmatmul.mubr.bf16.gmra.mrb[168].mxu1 %v1169_v4 }
 0x29c   :  { %v1083_v22 = vpop.f32.mrb[108].mxu0  ;;  %2256 = vmatprep.mubr.msk.bf16.mxu1 %vm2607_vm2, %v4068_v24 }
 0x29d   :  { %v2174_v53 = vpop.f32.mrb[109].mxu0  ;;  %v1084_v44 = vadd.f32 %v3566_v40, %v1083_v22 }
 0x29e   :  { %v2559_v33 = vpop.eup %2558  ;;  %v1086_v26 = vpop.f32.mrb[110].mxu0  ;;  %v3707_v53 = vld [vmem:[%s4021_s4 + $0x1] ss:$0 sm:$0xff] }
 0x29f   :  { %v1087_v2 = vadd.f32 %v3566_v40, %v1086_v26  ;;  %v2175_v20 = vpop.f32.mrb[111].mxu0  ;;  %v1151_v55 = vmul.bf16 %v2559_v33, %v3507_v61 }
 0x2a1   :  { %v1115_v56 = vpack.c.bf16 %v1087_v2, %v1084_v44  ;;  %v1170_v48 = vadd.bf16 %v3502_v62, %v1151_v55 }
 0x2a3   :  { %2562 = vtanh.bf16 %v1115_v56  ;;  %2257 = vmatmul.mubr.bf16.gmra.mrb[172].mxu1 %v1170_v48 }
 0x2a4   :  { %v1091_v54 = vpop.f32.mrb[112].mxu0  ;;  %2260 = vmatprep.mubr.msk.bf16.mxu1 %vm2607_vm2, %v4068_v24 }
 0x2a5   :  { %v2178_v49 = vpop.f32.mrb[113].mxu0  ;;  %v1092_v17 = vadd.f32 %v3566_v40, %v1091_v54 }
 0x2a6   :  { %v2561_v14 = vpop.eup %2560  ;;  %v1094_v37 = vpop.f32.mrb[114].mxu0 }
 0x2a7   :  { %v1095_v1 = vadd.f32 %v3566_v40, %v1094_v37  ;;  %v2179_v15 = vpop.f32.mrb[115].mxu0  ;;  %v1152_v19 = vmul.bf16 %v2561_v14, %v3524_v58 }
 0x2a9   :  { %v1116_v59 = vpack.c.bf16 %v1095_v1, %v1092_v17  ;;  %v1171_v39 = vadd.bf16 %v3519_v5, %v1152_v19 }
 0x2ab   :  { %2564 = vtanh.bf16 %v1116_v59  ;;  %2261 = vmatmul.mubr.bf16.gmra.mrb[176].mxu1 %v1171_v39 }
 0x2ac   :  { %2264 = vmatprep.mubr.msk.bf16.mxu1 %vm2607_vm2, %v4068_v24 }
 0x2ae   :  { %v2563_v28 = vpop.eup %2562 }
 0x2af   :  { %v1153_v31 = vmul.bf16 %v2563_v28, %v3541_v51 }
 0x2b1   :  { %v1172_v57 = vadd.bf16 %v3536_v46, %v1153_v31 }
 0x2b3   :  { %2265 = vmatmul.mubr.bf16.gmra.mrb[180].mxu1 %v1172_v57 }
 0x2b4   :  { %2268 = vmatprep.mubr.msk.bf16.mxu1 %vm2607_vm2, %v4068_v24 }
 0x2b6   :  { %v2565_v40 = vpop.eup %2564 }
 0x2b7   :  { %v1154_v4 = vmul.bf16 %v2565_v40, %v3550_v12 }
 0x2b9   :  { %v1173_v22 = vadd.bf16 %v3545_v47, %v1154_v4 }
 0x2bb   :  { %2269 = vmatmul.mubr.bf16.gmra.mrb[184].mxu1 %v1173_v22 }
 0x2fe   :  { %v1281_v33 = vpop.f32.mrb[112].mxu1 }
 0x2ff   :  { %v2198_v26 = vpop.f32.mrb[113].mxu1  ;;  %v1282_v2 = vadd.f32 %v3707_v53, %v1281_v33 }
 0x300   :  { %v1284_v44 = vpop.f32.mrb[114].mxu1 }
 0x301   :  { %v1285_v20 = vadd.f32 %v3707_v53, %v1284_v44  ;;  %v2199_v55 = vpop.f32.mrb[115].mxu1 }
 0x303   :  { %v1432_v56 = vpack.c.bf16 %v1285_v20, %v1282_v2 }
 0x305   :  { %2566 = vtanh.bf16 %v1432_v56 }
 0x306   :  { %v1289_v48 = vpop.f32.mrb[116].mxu1 }
 0x307   :  { %v2202_v54 = vpop.f32.mrb[117].mxu1  ;;  %v1290_v14 = vadd.f32 %v3707_v53, %v1289_v48 }
 0x308   :  { %v1292_v49 = vpop.f32.mrb[118].mxu1 }
 0x309   :  { %v1293_v37 = vadd.f32 %v3707_v53, %v1292_v49  ;;  %v2203_v17 = vpop.f32.mrb[119].mxu1 }
 0x30b   :  { %v1433_v1 = vpack.c.bf16 %v1293_v37, %v1290_v14 }
 0x30d   :  { %2568 = vtanh.bf16 %v1433_v1 }
 0x30e   :  { %v1297_v15 = vpop.f32.mrb[120].mxu1 }
 0x30f   :  { %v2206_v19 = vpop.f32.mrb[121].mxu1  ;;  %v1298_v28 = vadd.f32 %v3707_v53, %v1297_v15 }
 0x310   :  { %v2567_v59 = vpop.eup %2566  ;;  %v1300_v39 = vpop.f32.mrb[122].mxu1 }
 0x311   :  { %v1301_v31 = vadd.f32 %v3707_v53, %v1300_v39  ;;  %v2207_v57 = vpop.f32.mrb[123].mxu1  ;;  %v1470_v40 = vmul.bf16 %v2567_v59, %v3229_v7 }
 0x313   :  { %v1434_v4 = vpack.c.bf16 %v1301_v31, %v1298_v28  ;;  %v1489_v22 = vadd.bf16 %v3226_v50, %v1470_v40 }
 0x315   :  { %2570 = vtanh.bf16 %v1434_v4  ;;  %2289 = vmatmul.mubr.bf16.vlgmr.msra.gmra.mrb[116].mxu0 %v1489_v22 }
 0x316   :  { %v1305_v33 = vpop.f32.mrb[124].mxu1  ;;  %2292 = vmatprep.mubr.msk.bf16.mxu0 %vm2607_vm2, %v4068_v24 }
 0x317   :  { %v2210_v26 = vpop.f32.mrb[125].mxu1  ;;  %v1306_v20 = vadd.f32 %v3707_v53, %v1305_v33 }
 0x318   :  { %v2569_v44 = vpop.eup %2568  ;;  %v1308_v2 = vpop.f32.mrb[126].mxu1 }
 0x319   :  { %v1309_v55 = vadd.f32 %v3707_v53, %v1308_v2  ;;  %v2211_v56 = vpop.f32.mrb[127].mxu1  ;;  %v1471_v48 = vmul.bf16 %v2569_v44, %v3250_v8 }
 0x31b   :  { %v1435_v7 = vpack.c.bf16 %v1309_v55, %v1306_v20  ;;  %v1490_v54 = vadd.bf16 %v3245_v36, %v1471_v48 }
 0x31d   :  { %2572 = vtanh.bf16 %v1435_v7  ;;  %2293 = vmatmul.mubr.bf16.gmra.mrb[120].mxu0 %v1490_v54 }
 0x31e   :  { %v1313_v50 = vpop.f32.mrb[128].mxu1  ;;  %2296 = vmatprep.mubr.msk.bf16.mxu0 %vm2607_vm2, %v4068_v24 }
 0x31f   :  { %v2214_v49 = vpop.f32.mrb[129].mxu1  ;;  %v1314_v17 = vadd.f32 %v3707_v53, %v1313_v50 }
 0x320   :  { %v2571_v14 = vpop.eup %2570  ;;  %v1316_v37 = vpop.f32.mrb[130].mxu1 }
 0x321   :  { %v1317_v1 = vadd.f32 %v3707_v53, %v1316_v37  ;;  %v2215_v15 = vpop.f32.mrb[131].mxu1  ;;  %v1472_v19 = vmul.bf16 %v2571_v14, %v3270_v25 }
 0x323   :  { %v1436_v8 = vpack.c.bf16 %v1317_v1, %v1314_v17  ;;  %v1491_v59 = vadd.bf16 %v3262_v38, %v1472_v19 }
 0x325   :  { %2574 = vtanh.bf16 %v1436_v8  ;;  %2297 = vmatmul.mubr.bf16.gmra.mrb[124].mxu0 %v1491_v59 }
 0x326   :  { %v1321_v36 = vpop.f32.mrb[132].mxu1  ;;  %2300 = vmatprep.mubr.msk.bf16.mxu0 %vm2607_vm2, %v4068_v24 }
 0x327   :  { %v2218_v39 = vpop.f32.mrb[133].mxu1  ;;  %v1322_v57 = vadd.f32 %v3707_v53, %v1321_v36 }
 0x328   :  { %v2573_v28 = vpop.eup %2572  ;;  %v1324_v31 = vpop.f32.mrb[134].mxu1 }
 0x329   :  { %v1325_v40 = vadd.f32 %v3707_v53, %v1324_v31  ;;  %v2219_v4 = vpop.f32.mrb[135].mxu1  ;;  %v1473_v22 = vmul.bf16 %v2573_v28, %v3291_v45 }
 0x32b   :  { %v1437_v25 = vpack.c.bf16 %v1325_v40, %v1322_v57  ;;  %v1492_v33 = vadd.bf16 %v3283_v29, %v1473_v22 }
 0x32d   :  { %2576 = vtanh.bf16 %v1437_v25  ;;  %2301 = vmatmul.mubr.bf16.gmra.mrb[128].mxu0 %v1492_v33 }
 0x32e   :  { %v1329_v38 = vpop.f32.mrb[136].mxu1  ;;  %2304 = vmatprep.mubr.msk.bf16.mxu0 %vm2607_vm2, %v4068_v24 }
 0x32f   :  { %v2222_v26 = vpop.f32.mrb[137].mxu1  ;;  %v1330_v20 = vadd.f32 %v3707_v53, %v1329_v38 }
 0x330   :  { %v2575_v44 = vpop.eup %2574  ;;  %v1332_v2 = vpop.f32.mrb[138].mxu1 }
 0x331   :  { %v1333_v55 = vadd.f32 %v3707_v53, %v1332_v2  ;;  %v2223_v56 = vpop.f32.mrb[139].mxu1  ;;  %v1474_v48 = vmul.bf16 %v2575_v44, %v3316_v10 }
 0x333   :  { %v1438_v45 = vpack.c.bf16 %v1333_v55, %v1330_v20  ;;  %v1493_v7 = vadd.bf16 %v3310_v11, %v1474_v48 }
 0x335   :  { %2578 = vtanh.bf16 %v1438_v45  ;;  %2305 = vmatmul.mubr.bf16.gmra.mrb[132].mxu0 %v1493_v7 }
 0x336   :  { %v1337_v29 = vpop.f32.mrb[140].mxu1  ;;  %2308 = vmatprep.mubr.msk.bf16.mxu0 %vm2607_vm2, %v4068_v24 }
 0x337   :  { %v2226_v54 = vpop.f32.mrb[141].mxu1  ;;  %v1338_v14 = vadd.f32 %v3707_v53, %v1337_v29 }
 0x338   :  { %v2577_v50 = vpop.eup %2576  ;;  %v1340_v49 = vpop.f32.mrb[142].mxu1 }
 0x339   :  { %v1341_v37 = vadd.f32 %v3707_v53, %v1340_v49  ;;  %v2227_v17 = vpop.f32.mrb[143].mxu1  ;;  %v1475_v1 = vmul.bf16 %v2577_v50, %v3334_v27 }
 0x33b   :  { %v1439_v10 = vpack.c.bf16 %v1341_v37, %v1338_v14  ;;  %v1494_v15 = vadd.bf16 %v3329_v42, %v1475_v1 }
 0x33d   :  { %2580 = vtanh.bf16 %v1439_v10  ;;  %2309 = vmatmul.mubr.bf16.gmra.mrb[136].mxu0 %v1494_v15 }
 0x33e   :  { %v1345_v11 = vpop.f32.mrb[144].mxu1  ;;  %2312 = vmatprep.mubr.msk.bf16.mxu0 %vm2607_vm2, %v4068_v24 }
 0x33f   :  { %v2230_v19 = vpop.f32.mrb[145].mxu1  ;;  %v1346_v36 = vadd.f32 %v3707_v53, %v1345_v11 }
 0x340   :  { %v2579_v8 = vpop.eup %2578  ;;  %v1348_v59 = vpop.f32.mrb[146].mxu1 }
 0x341   :  { %v1349_v39 = vadd.f32 %v3707_v53, %v1348_v59  ;;  %v2231_v28 = vpop.f32.mrb[147].mxu1  ;;  %v1476_v31 = vmul.bf16 %v2579_v8, %v3351_v35 }
 0x343   :  { %v1440_v27 = vpack.c.bf16 %v1349_v39, %v1346_v36  ;;  %v1495_v57 = vadd.bf16 %v3346_v16, %v1476_v31 }
 0x345   :  { %2582 = vtanh.bf16 %v1440_v27  ;;  %2313 = vmatmul.mubr.bf16.gmra.mrb[140].mxu0 %v1495_v57 }
 0x346   :  { %v1353_v42 = vpop.f32.mrb[148].mxu1  ;;  %2316 = vmatprep.mubr.msk.bf16.mxu0 %vm2607_vm2, %v4068_v24 }
 0x347   :  { %v2234_v40 = vpop.f32.mrb[149].mxu1  ;;  %v1354_v25 = vadd.f32 %v3707_v53, %v1353_v42 }
 0x348   :  { %v2581_v4 = vpop.eup %2580  ;;  %v1356_v22 = vpop.f32.mrb[150].mxu1 }
 0x349   :  { %v1357_v33 = vadd.f32 %v3707_v53, %v1356_v22  ;;  %v2235_v38 = vpop.f32.mrb[151].mxu1  ;;  %v1477_v26 = vmul.bf16 %v2581_v4, %v3368_v6 }
 0x34b   :  { %v1441_v35 = vpack.c.bf16 %v1357_v33, %v1354_v25  ;;  %v1496_v44 = vadd.bf16 %v3363_v30, %v1477_v26 }
 0x34d   :  { %2584 = vtanh.bf16 %v1441_v35  ;;  %2317 = vmatmul.mubr.bf16.gmra.mrb[144].mxu0 %v1496_v44 }
 0x34e   :  { %v1361_v16 = vpop.f32.mrb[152].mxu1  ;;  %2320 = vmatprep.mubr.msk.bf16.mxu0 %vm2607_vm2, %v4068_v24 }
 0x34f   :  { %v2238_v2 = vpop.f32.mrb[153].mxu1  ;;  %v1362_v56 = vadd.f32 %v3707_v53, %v1361_v16 }
 0x350   :  { %v2583_v20 = vpop.eup %2582  ;;  %v1364_v55 = vpop.f32.mrb[154].mxu1 }
 0x351   :  { %v1365_v48 = vadd.f32 %v3707_v53, %v1364_v55  ;;  %v2239_v45 = vpop.f32.mrb[155].mxu1  ;;  %v1478_v7 = vmul.bf16 %v2583_v20, %v3385_v43 }
 0x353   :  { %v1442_v6 = vpack.c.bf16 %v1365_v48, %v1362_v56  ;;  %v1497_v29 = vadd.bf16 %v3380_v21, %v1478_v7 }
 0x355   :  { %2586 = vtanh.bf16 %v1442_v6  ;;  %2321 = vmatmul.mubr.bf16.gmra.mrb[148].mxu0 %v1497_v29 }
 0x356   :  { %v1369_v30 = vpop.f32.mrb[156].mxu1  ;;  %2324 = vmatprep.mubr.msk.bf16.mxu0 %vm2607_vm2, %v4068_v24 }
 0x357   :  { %v2242_v54 = vpop.f32.mrb[157].mxu1  ;;  %v1370_v14 = vadd.f32 %v3707_v53, %v1369_v30 }
 0x358   :  { %v2585_v50 = vpop.eup %2584  ;;  %v1372_v49 = vpop.f32.mrb[158].mxu1 }
 0x359   :  { %v1373_v37 = vadd.f32 %v3707_v53, %v1372_v49  ;;  %v2243_v17 = vpop.f32.mrb[159].mxu1  ;;  %v1479_v1 = vmul.bf16 %v2585_v50, %v3402_v60 }
 0x35b   :  { %v1443_v43 = vpack.c.bf16 %v1373_v37, %v1370_v14  ;;  %v1498_v10 = vadd.bf16 %v3397_v23, %v1479_v1 }
 0x35d   :  { %2588 = vtanh.bf16 %v1443_v43  ;;  %2325 = vmatmul.mubr.bf16.gmra.mrb[152].mxu0 %v1498_v10 }
 0x35e   :  { %v1377_v21 = vpop.f32.mrb[160].mxu1  ;;  %2328 = vmatprep.mubr.msk.bf16.mxu0 %vm2607_vm2, %v4068_v24 }
 0x35f   :  { %v2246_v15 = vpop.f32.mrb[161].mxu1  ;;  %v1378_v8 = vadd.f32 %v3707_v53, %v1377_v21 }
 0x360   :  { %v2587_v11 = vpop.eup %2586  ;;  %v1380_v19 = vpop.f32.mrb[162].mxu1 }
 0x361   :  { %v1381_v59 = vadd.f32 %v3707_v53, %v1380_v19  ;;  %v2247_v36 = vpop.f32.mrb[163].mxu1  ;;  %v1480_v39 = vmul.bf16 %v2587_v11, %v3419_v18 }
 0x363   :  { %v1444_v60 = vpack.c.bf16 %v1381_v59, %v1378_v8  ;;  %v1499_v28 = vadd.bf16 %v3414_v0, %v1480_v39 }
 0x365   :  { %2590 = vtanh.bf16 %v1444_v60  ;;  %2329 = vmatmul.mubr.bf16.gmra.mrb[156].mxu0 %v1499_v28 }
 0x366   :  { %v1385_v23 = vpop.f32.mrb[164].mxu1  ;;  %2332 = vmatprep.mubr.msk.bf16.mxu0 %vm2607_vm2, %v4068_v24 }
 0x367   :  { %v2250_v31 = vpop.f32.mrb[165].mxu1  ;;  %v1386_v42 = vadd.f32 %v3707_v53, %v1385_v23 }
 0x368   :  { %v2589_v27 = vpop.eup %2588  ;;  %v1388_v57 = vpop.f32.mrb[166].mxu1 }
 0x369   :  { %v1389_v40 = vadd.f32 %v3707_v53, %v1388_v57  ;;  %v2251_v4 = vpop.f32.mrb[167].mxu1  ;;  %v1481_v22 = vmul.bf16 %v2589_v27, %v3436_v63 }
 0x36b   :  { %v1445_v18 = vpack.c.bf16 %v1389_v40, %v1386_v42  ;;  %v1500_v25 = vadd.bf16 %v3431_v41, %v1481_v22 }
 0x36d   :  { %2592 = vtanh.bf16 %v1445_v18  ;;  %2333 = vmatmul.mubr.bf16.gmra.mrb[160].mxu0 %v1500_v25 }
 0x36e   :  { %v1393_v0 = vpop.f32.mrb[168].mxu1  ;;  %2336 = vmatprep.mubr.msk.bf16.mxu0 %vm2607_vm2, %v4068_v24 }
 0x36f   :  { %v2254_v33 = vpop.f32.mrb[169].mxu1  ;;  %v1394_v35 = vadd.f32 %v3707_v53, %v1393_v0 }
 0x370   :  { %v2591_v38 = vpop.eup %2590  ;;  %v1396_v26 = vpop.f32.mrb[170].mxu1 }
 0x371   :  { %v1397_v44 = vadd.f32 %v3707_v53, %v1396_v26  ;;  %v2255_v16 = vpop.f32.mrb[171].mxu1  ;;  %v1482_v2 = vmul.bf16 %v2591_v38, %v3453_v32 }
 0x373   :  { %v1446_v63 = vpack.c.bf16 %v1397_v44, %v1394_v35  ;;  %v1501_v20 = vadd.bf16 %v3448_v52, %v1482_v2 }
 0x375   :  { %2594 = vtanh.bf16 %v1446_v63  ;;  %2337 = vmatmul.mubr.bf16.gmra.mrb[164].mxu0 %v1501_v20 }
 0x376   :  { %v1401_v41 = vpop.f32.mrb[172].mxu1  ;;  %2340 = vmatprep.mubr.msk.bf16.mxu0 %vm2607_vm2, %v4068_v24 }
 0x377   :  { %v2258_v55 = vpop.f32.mrb[173].mxu1  ;;  %v1402_v45 = vadd.f32 %v3707_v53, %v1401_v41 }
 0x378   :  { %v2593_v56 = vpop.eup %2592  ;;  %v1404_v48 = vpop.f32.mrb[174].mxu1 }
 0x379   :  { %v1405_v7 = vadd.f32 %v3707_v53, %v1404_v48  ;;  %v2259_v6 = vpop.f32.mrb[175].mxu1  ;;  %v1483_v29 = vmul.bf16 %v2593_v56, %v3473_v3 }
 0x37b   :  { %v1447_v32 = vpack.c.bf16 %v1405_v7, %v1402_v45  ;;  %v1502_v30 = vadd.bf16 %v3468_v34, %v1483_v29 }
 0x37d   :  { %2596 = vtanh.bf16 %v1447_v32  ;;  %2341 = vmatmul.mubr.bf16.gmra.mrb[168].mxu0 %v1502_v30 }
 0x37e   :  { %v1409_v52 = vpop.f32.mrb[176].mxu1  ;;  %2344 = vmatprep.mubr.msk.bf16.mxu0 %vm2607_vm2, %v4068_v24 }
 0x37f   :  { %v2262_v54 = vpop.f32.mrb[177].mxu1  ;;  %v1410_v14 = vadd.f32 %v3707_v53, %v1409_v52 }
 0x380   :  { %v2595_v50 = vpop.eup %2594  ;;  %v1412_v49 = vpop.f32.mrb[178].mxu1 }
 0x381   :  { %v1413_v37 = vadd.f32 %v3707_v53, %v1412_v49  ;;  %v2263_v17 = vpop.f32.mrb[179].mxu1  ;;  %v1484_v1 = vmul.bf16 %v2595_v50, %v3490_v9 }
 0x383   :  { %v1448_v3 = vpack.c.bf16 %v1413_v37, %v1410_v14  ;;  %v1503_v43 = vadd.bf16 %v3485_v13, %v1484_v1 }
 0x385   :  { %2598 = vtanh.bf16 %v1448_v3  ;;  %2345 = vmatmul.mubr.bf16.gmra.mrb[172].mxu0 %v1503_v43 }
 0x386   :  { %v1417_v34 = vpop.f32.mrb[180].mxu1  ;;  %2348 = vmatprep.mubr.msk.bf16.mxu0 %vm2607_vm2, %v4068_v24 }
 0x387   :  { %v2266_v10 = vpop.f32.mrb[181].mxu1  ;;  %v1418_v11 = vadd.f32 %v3707_v53, %v1417_v34 }
 0x388   :  { %v2597_v21 = vpop.eup %2596  ;;  %v1420_v15 = vpop.f32.mrb[182].mxu1 }
 0x389   :  { %v1421_v19 = vadd.f32 %v3707_v53, %v1420_v15  ;;  %v2267_v8 = vpop.f32.mrb[183].mxu1  ;;  %v1485_v59 = vmul.bf16 %v2597_v21, %v3507_v61 }
 0x38b   :  { %v1449_v9 = vpack.c.bf16 %v1421_v19, %v1418_v11  ;;  %v1504_v36 = vadd.bf16 %v3502_v62, %v1485_v59 }
 0x38d   :  { %2600 = vtanh.bf16 %v1449_v9  ;;  %2349 = vmatmul.mubr.bf16.gmra.mrb[176].mxu0 %v1504_v36 }
 0x38e   :  { %v1425_v13 = vpop.f32.mrb[184].mxu1  ;;  %2352 = vmatprep.mubr.msk.bf16.mxu0 %vm2607_vm2, %v4068_v24 }
 0x38f   :  { %v2270_v39 = vpop.f32.mrb[185].mxu1  ;;  %v1426_v23 = vadd.f32 %v3707_v53, %v1425_v13 }
 0x390   :  { %v2599_v60 = vpop.eup %2598  ;;  %v1428_v28 = vpop.f32.mrb[186].mxu1 }
 0x391   :  { %v1429_v31 = vadd.f32 %v3707_v53, %v1428_v28  ;;  %v2271_v27 = vpop.f32.mrb[187].mxu1  ;;  %v1486_v57 = vmul.bf16 %v2599_v60, %v3524_v58 }
 0x393   :  { %v1450_v61 = vpack.c.bf16 %v1429_v31, %v1426_v23  ;;  %v1505_v42 = vadd.bf16 %v3519_v5, %v1486_v57  ;;  %v3824_v5 = vld [vmem:[%s4022_s6] ss:$0 sm:$0xff] }
 0x395   :  { %2602 = vtanh.bf16 %v1450_v61  ;;  %2353 = vmatmul.mubr.bf16.gmra.mrb[180].mxu0 %v1505_v42 }
 0x396   :  { %2356 = vmatprep.mubr.msk.bf16.mxu0 %vm2607_vm2, %v4068_v24 }
 0x398   :  { %v2601_v62 = vpop.eup %2600 }
 0x399   :  { %v1487_v40 = vmul.bf16 %v2601_v62, %v3541_v51 }
 0x39b   :  { %v1506_v4 = vadd.bf16 %v3536_v46, %v1487_v40 }
 0x39d   :  { %2357 = vmatmul.mubr.bf16.gmra.mrb[184].mxu0 %v1506_v4 }
 0x39e   :  { %2360 = vmatprep.mubr.msk.bf16.mxu0 %vm2607_vm2, %v4068_v24 }
 0x3a0   :  { %v2603_v53 = vpop.eup %2602 }
 0x3a1   :  { %v1488_v58 = vmul.bf16 %v2603_v53, %v3550_v12 }
 0x3a3   :  { %v1507_v22 = vadd.bf16 %v3545_v47, %v1488_v58 }
 0x3a5   :  { %2361 = vmatmul.mubr.bf16.gmra.mrb[188].mxu0 %v1507_v22 }
 0x3e8   :  { %v1613_v18 = vpop.f32.mrb[116].mxu0 }
 0x3e9   :  { %v1614_v51 = vadd.f32 %v3824_v5, %v1613_v18  ;;  %v2290_v46 = vpop.f32.mrb[117].mxu0 }
 0x3ea   :  { %v1616_v25 = vpop.f32.mrb[118].mxu0 }
 0x3eb   :  { %1765 = vst.msk [vmem:[%s4023_s7] sm:$0xff] %vm1764_vm3, %v1614_v51  ;;  %v1617_v24 = vadd.f32 %v3824_v5, %v1616_v25  ;;  %v2291_v47 = vpop.f32.mrb[119].mxu0 }
 0x3ed   :  { %1766 = vst.msk [vmem:[%s4023_s7 + $0x8] sm:$0xff] %vm1764_vm3, %v1617_v24 }
 0x3f0   :  { %v1621_v12 = vpop.f32.mrb[120].mxu0 }
 0x3f1   :  { %v1622_v0 = vadd.f32 %v3824_v5, %v1621_v12  ;;  %v2294_v33 = vpop.f32.mrb[121].mxu0 }
 0x3f2   :  { %v1624_v38 = vpop.f32.mrb[122].mxu0 }
 0x3f3   :  { %1767 = vst.msk [vmem:[%s4023_s7 + $0x10] sm:$0xff] %vm1764_vm3, %v1622_v0  ;;  %v1625_v26 = vadd.f32 %v3824_v5, %v1624_v38  ;;  %v2295_v35 = vpop.f32.mrb[123].mxu0 }
 0x3f5   :  { %1768 = vst.msk [vmem:[%s4023_s7 + $0x18] sm:$0xff] %vm1764_vm3, %v1625_v26 }
 0x3f8   :  { %v1629_v44 = vpop.f32.mrb[124].mxu0 }
 0x3f9   :  { %v1630_v16 = vadd.f32 %v3824_v5, %v1629_v44  ;;  %v2298_v2 = vpop.f32.mrb[125].mxu0 }
 0x3fa   :  { %v1632_v63 = vpop.f32.mrb[126].mxu0 }
 0x3fb   :  { %1769 = vst.msk [vmem:[%s4023_s7 + $0x20] sm:$0xff] %vm1764_vm3, %v1630_v16  ;;  %v1633_v20 = vadd.f32 %v3824_v5, %v1632_v63  ;;  %v2299_v41 = vpop.f32.mrb[127].mxu0 }
 0x3fd   :  { %1770 = vst.msk [vmem:[%s4023_s7 + $0x28] sm:$0xff] %vm1764_vm3, %v1633_v20 }
 0x400   :  { %v1637_v55 = vpop.f32.mrb[128].mxu0 }
 0x401   :  { %v1638_v56 = vadd.f32 %v3824_v5, %v1637_v55  ;;  %v2302_v48 = vpop.f32.mrb[129].mxu0 }
 0x402   :  { %v1640_v45 = vpop.f32.mrb[130].mxu0 }
 0x403   :  { %1771 = vst.msk [vmem:[%s4023_s7 + $0x30] sm:$0xff] %vm1764_vm3, %v1638_v56  ;;  %v1641_v7 = vadd.f32 %v3824_v5, %v1640_v45  ;;  %v2303_v6 = vpop.f32.mrb[131].mxu0 }
 0x405   :  { %1772 = vst.msk [vmem:[%s4023_s7 + $0x38] sm:$0xff] %vm1764_vm3, %v1641_v7 }
 0x408   :  { %v1645_v29 = vpop.f32.mrb[132].mxu0 }
 0x409   :  { %v1646_v32 = vadd.f32 %v3824_v5, %v1645_v29  ;;  %v2306_v30 = vpop.f32.mrb[133].mxu0 }
 0x40a   :  { %v1648_v52 = vpop.f32.mrb[134].mxu0 }
 0x40b   :  { %1773 = vst.msk [vmem:[%s4023_s7 + $0x40] sm:$0xff] %vm1764_vm3, %v1646_v32  ;;  %v1649_v54 = vadd.f32 %v3824_v5, %v1648_v52  ;;  %v2307_v50 = vpop.f32.mrb[135].mxu0 }
 0x40d   :  { %1774 = vst.msk [vmem:[%s4023_s7 + $0x48] sm:$0xff] %vm1764_vm3, %v1649_v54 }
 0x410   :  { %v1653_v49 = vpop.f32.mrb[136].mxu0 }
 0x411   :  { %v1654_v14 = vadd.f32 %v3824_v5, %v1653_v49  ;;  %v2310_v37 = vpop.f32.mrb[137].mxu0 }
 0x412   :  { %v1656_v17 = vpop.f32.mrb[138].mxu0 }
 0x413   :  { %1775 = vst.msk [vmem:[%s4023_s7 + $0x50] sm:$0xff] %vm1764_vm3, %v1654_v14  ;;  %v1657_v1 = vadd.f32 %v3824_v5, %v1656_v17  ;;  %v2311_v3 = vpop.f32.mrb[139].mxu0 }
 0x415   :  { %1776 = vst.msk [vmem:[%s4023_s7 + $0x58] sm:$0xff] %vm1764_vm3, %v1657_v1 }
 0x418   :  { %v1661_v43 = vpop.f32.mrb[140].mxu0 }
 0x419   :  { %v1662_v34 = vadd.f32 %v3824_v5, %v1661_v43  ;;  %v2314_v10 = vpop.f32.mrb[141].mxu0 }
 0x41a   :  { %v1664_v21 = vpop.f32.mrb[142].mxu0 }
 0x41b   :  { %1777 = vst.msk [vmem:[%s4023_s7 + $0x60] sm:$0xff] %vm1764_vm3, %v1662_v34  ;;  %v1665_v15 = vadd.f32 %v3824_v5, %v1664_v21  ;;  %v2315_v11 = vpop.f32.mrb[143].mxu0 }
 0x41d   :  { %1778 = vst.msk [vmem:[%s4023_s7 + $0x68] sm:$0xff] %vm1764_vm3, %v1665_v15 }
 0x420   :  { %v1669_v19 = vpop.f32.mrb[144].mxu0 }
 0x421   :  { %v1670_v8 = vadd.f32 %v3824_v5, %v1669_v19  ;;  %v2318_v59 = vpop.f32.mrb[145].mxu0 }
 0x422   :  { %v1672_v9 = vpop.f32.mrb[146].mxu0 }
 0x423   :  { %1779 = vst.msk [vmem:[%s4023_s7 + $0x70] sm:$0xff] %vm1764_vm3, %v1670_v8  ;;  %v1673_v36 = vadd.f32 %v3824_v5, %v1672_v9  ;;  %v2319_v13 = vpop.f32.mrb[147].mxu0 }
 0x425   :  { %1780 = vst.msk [vmem:[%s4023_s7 + $0x78] sm:$0xff] %vm1764_vm3, %v1673_v36 }
 0x428   :  { %v1677_v39 = vpop.f32.mrb[148].mxu0 }
 0x429   :  { %v1678_v60 = vadd.f32 %v3824_v5, %v1677_v39  ;;  %v2322_v28 = vpop.f32.mrb[149].mxu0 }
 0x42a   :  { %v1680_v23 = vpop.f32.mrb[150].mxu0 }
 0x42b   :  { %1781 = vst.msk [vmem:[%s4023_s7 + $0x80] sm:$0xff] %vm1764_vm3, %v1678_v60  ;;  %v1681_v31 = vadd.f32 %v3824_v5, %v1680_v23  ;;  %v2323_v27 = vpop.f32.mrb[151].mxu0 }
 0x42d   :  { %1782 = vst.msk [vmem:[%s4023_s7 + $0x88] sm:$0xff] %vm1764_vm3, %v1681_v31 }
 0x430   :  { %v1685_v57 = vpop.f32.mrb[152].mxu0 }
 0x431   :  { %v1686_v61 = vadd.f32 %v3824_v5, %v1685_v57  ;;  %v2326_v42 = vpop.f32.mrb[153].mxu0 }
 0x432   :  { %v1688_v62 = vpop.f32.mrb[154].mxu0 }
 0x433   :  { %1783 = vst.msk [vmem:[%s4023_s7 + $0x90] sm:$0xff] %vm1764_vm3, %v1686_v61  ;;  %v1689_v40 = vadd.f32 %v3824_v5, %v1688_v62  ;;  %v2327_v4 = vpop.f32.mrb[155].mxu0 }
 0x435   :  { %1784 = vst.msk [vmem:[%s4023_s7 + $0x98] sm:$0xff] %vm1764_vm3, %v1689_v40 }
 0x438   :  { %v1693_v53 = vpop.f32.mrb[156].mxu0 }
 0x439   :  { %v1694_v58 = vadd.f32 %v3824_v5, %v1693_v53  ;;  %v2330_v22 = vpop.f32.mrb[157].mxu0 }
 0x43a   :  { %v1696_v18 = vpop.f32.mrb[158].mxu0 }
 0x43b   :  { %1785 = vst.msk [vmem:[%s4023_s7 + $0xa0] sm:$0xff] %vm1764_vm3, %v1694_v58  ;;  %v1697_v51 = vadd.f32 %v3824_v5, %v1696_v18  ;;  %v2331_v46 = vpop.f32.mrb[159].mxu0 }
 0x43d   :  { %1786 = vst.msk [vmem:[%s4023_s7 + $0xa8] sm:$0xff] %vm1764_vm3, %v1697_v51 }
 0x440   :  { %v1701_v25 = vpop.f32.mrb[160].mxu0 }
 0x441   :  { %v1702_v24 = vadd.f32 %v3824_v5, %v1701_v25  ;;  %v2334_v47 = vpop.f32.mrb[161].mxu0 }
 0x442   :  { %v1704_v12 = vpop.f32.mrb[162].mxu0 }
 0x443   :  { %1787 = vst.msk [vmem:[%s4023_s7 + $0xb0] sm:$0xff] %vm1764_vm3, %v1702_v24  ;;  %v1705_v0 = vadd.f32 %v3824_v5, %v1704_v12  ;;  %v2335_v33 = vpop.f32.mrb[163].mxu0 }
 0x445   :  { %1788 = vst.msk [vmem:[%s4023_s7 + $0xb8] sm:$0xff] %vm1764_vm3, %v1705_v0 }
 0x448   :  { %v1709_v38 = vpop.f32.mrb[164].mxu0 }
 0x449   :  { %v1710_v26 = vadd.f32 %v3824_v5, %v1709_v38  ;;  %v2338_v35 = vpop.f32.mrb[165].mxu0 }
 0x44a   :  { %v1712_v44 = vpop.f32.mrb[166].mxu0 }
 0x44b   :  { %1789 = vst.msk [vmem:[%s4023_s7 + $0xc0] sm:$0xff] %vm1764_vm3, %v1710_v26  ;;  %v1713_v16 = vadd.f32 %v3824_v5, %v1712_v44  ;;  %v2339_v2 = vpop.f32.mrb[167].mxu0 }
 0x44d   :  { %1790 = vst.msk [vmem:[%s4023_s7 + $0xc8] sm:$0xff] %vm1764_vm3, %v1713_v16 }
 0x450   :  { %v1717_v63 = vpop.f32.mrb[168].mxu0 }
 0x451   :  { %v1718_v20 = vadd.f32 %v3824_v5, %v1717_v63  ;;  %v2342_v41 = vpop.f32.mrb[169].mxu0 }
 0x452   :  { %v1720_v55 = vpop.f32.mrb[170].mxu0 }
 0x453   :  { %1791 = vst.msk [vmem:[%s4023_s7 + $0xd0] sm:$0xff] %vm1764_vm3, %v1718_v20  ;;  %v1721_v56 = vadd.f32 %v3824_v5, %v1720_v55  ;;  %v2343_v48 = vpop.f32.mrb[171].mxu0 }
 0x455   :  { %1792 = vst.msk [vmem:[%s4023_s7 + $0xd8] sm:$0xff] %vm1764_vm3, %v1721_v56 }
 0x458   :  { %v1725_v45 = vpop.f32.mrb[172].mxu0 }
 0x459   :  { %v1726_v7 = vadd.f32 %v3824_v5, %v1725_v45  ;;  %v2346_v6 = vpop.f32.mrb[173].mxu0 }
 0x45a   :  { %v1728_v29 = vpop.f32.mrb[174].mxu0 }
 0x45b   :  { %1793 = vst.msk [vmem:[%s4023_s7 + $0xe0] sm:$0xff] %vm1764_vm3, %v1726_v7  ;;  %v1729_v32 = vadd.f32 %v3824_v5, %v1728_v29  ;;  %v2347_v30 = vpop.f32.mrb[175].mxu0 }
 0x45d   :  { %1794 = vst.msk [vmem:[%s4023_s7 + $0xe8] sm:$0xff] %vm1764_vm3, %v1729_v32 }
 0x460   :  { %v1733_v52 = vpop.f32.mrb[176].mxu0 }
 0x461   :  { %v1734_v54 = vadd.f32 %v3824_v5, %v1733_v52  ;;  %v2350_v50 = vpop.f32.mrb[177].mxu0 }
 0x462   :  { %v1736_v49 = vpop.f32.mrb[178].mxu0 }
 0x463   :  { %1795 = vst.msk [vmem:[%s4023_s7 + $0xf0] sm:$0xff] %vm1764_vm3, %v1734_v54  ;;  %v1737_v14 = vadd.f32 %v3824_v5, %v1736_v49  ;;  %v2351_v37 = vpop.f32.mrb[179].mxu0 }
 0x465   :  { %1796 = vst.msk [vmem:[%s4023_s7 + $0xf8] sm:$0xff] %vm1764_vm3, %v1737_v14 }
 0x468   :  { %v1741_v17 = vpop.f32.mrb[180].mxu0 }
 0x469   :  { %v1742_v1 = vadd.f32 %v3824_v5, %v1741_v17  ;;  %v2354_v3 = vpop.f32.mrb[181].mxu0 }
 0x46a   :  { %v1744_v43 = vpop.f32.mrb[182].mxu0 }
 0x46b   :  { %1797 = vst.msk [vmem:[%s4023_s7 + $0x100] sm:$0xff] %vm1764_vm3, %v1742_v1  ;;  %v1745_v34 = vadd.f32 %v3824_v5, %v1744_v43  ;;  %v2355_v10 = vpop.f32.mrb[183].mxu0 }
 0x46d   :  { %1798 = vst.msk [vmem:[%s4023_s7 + $0x108] sm:$0xff] %vm1764_vm3, %v1745_v34 }
 0x470   :  { %v1749_v21 = vpop.f32.mrb[184].mxu0 }
 0x471   :  { %v1750_v15 = vadd.f32 %v3824_v5, %v1749_v21  ;;  %v2358_v11 = vpop.f32.mrb[185].mxu0 }
 0x472   :  { %v1752_v19 = vpop.f32.mrb[186].mxu0 }
 0x473   :  { %1799 = vst.msk [vmem:[%s4023_s7 + $0x110] sm:$0xff] %vm1764_vm3, %v1750_v15  ;;  %v1753_v8 = vadd.f32 %v3824_v5, %v1752_v19  ;;  %v2359_v59 = vpop.f32.mrb[187].mxu0 }
 0x475   :  { %1800 = vst.msk [vmem:[%s4023_s7 + $0x118] sm:$0xff] %vm1764_vm3, %v1753_v8 }
 0x478   :  { %v1757_v9 = vpop.f32.mrb[188].mxu0 }
 0x479   :  { %v1758_v36 = vadd.f32 %v3824_v5, %v1757_v9  ;;  %v2362_v13 = vpop.f32.mrb[189].mxu0 }
 0x47a   :  { %v1760_v39 = vpop.f32.mrb[190].mxu0 }
 0x47b   :  { %1801 = vst.msk [vmem:[%s4023_s7 + $0x120] sm:$0xff] %vm1764_vm3, %v1758_v36  ;;  %v1761_v60 = vadd.f32 %v3824_v5, %v1760_v39  ;;  %v2363_v28 = vpop.f32.mrb[191].mxu0 }
 0x47d   :  { %1802 = vst.msk [vmem:[%s4023_s7 + $0x128] sm:$0xff] %vm1764_vm3, %v1761_v60 }

// kernel: sifan_mlp_forward.1
= control target key start
LH: loop header
LB: loop body
LE: loop exit
PB: predicated region body
PF: predicated region fallthrough
CT: control target
= control target key end

     0   :  { %v68_v0 = vlaneseq  ;;  %v2604_v1 = vmov 1983009808   ;;  %v2605_v3 = vmov 0   ;;  %vm253_vm0 = vcmask 1041408   ;;  %s4016_s0 = inlined_call_operand.vmem [shape: bf16[304,4], index: 0, kind: input, shape index: {}]   ;;  %s4017_s1 = inlined_call_operand.vmem [shape: bf16[4,384], index: 1, kind: input, shape index: {}]   ;;  %s4018_s3 = inlined_call_operand.vmem [shape: bf16[2,128,128], index: 3, kind: input, shape index: {}]   ;;  %s4019_s2 = inlined_call_operand.vmem [shape: f32[1,384], index: 2, kind: input, shape index: {}]   ;;  %s4020_s5 = inlined_call_operand.vmem [shape: bf16[128,2], index: 5, kind: input, shape index: {}]   ;;  %s4021_s4 = inlined_call_operand.vmem [shape: f32[2,1,128], index: 4, kind: input, shape index: {}]   ;;  %s4022_s6 = inlined_call_operand.vmem [shape: f32[1,2], index: 6, kind: input, shape index: {}]   ;;  %s4023_s7 = inlined_call_operand.vmem [shape: f32[304,2], index: 7, kind: output, shape index: {}]  }
   0x1   :  { %v181_v2 = vunpack.c.l.s4 %v2604_v1  ;;  %395 = vmatprep.mubr.bf16.mxu1 %v2605_v3  ;;  %295 = vmatprep.mubr.bf16.mxu0 %v2605_v3  ;;  %v65_v6 = vld [vmem:[%s4017_s1] sm:$0x3f]  ;;  %v2659_v13 = vld [vmem:[%s4016_s0 + $0x50] sm:$0xff]   ;;  %vm195_vm1 = vcmask 31744   ;;  %v4024_v15 = vmov 0.0   ;;  %v2675_v17 = vld [vmem:[%s4016_s0 + $0x58] sm:$0xff]  }
   0x2   :  { %v2650_v4 = vshrl.u32 %v68_v0, 7  ;;  %v179_v7 = vcombine.high %v65_v6, %v65_v6  ;;  %v2380_v14 = vld [vmem:[%s4016_s0] sm:$0xff]   ;;  %v2381_v18 = vld [vmem:[%s4016_s0 + $0x8] sm:$0xff]   ;;  %v2382_v20 = vld [vmem:[%s4016_s0 + $0x10] sm:$0xff]   ;;  %vm2607_vm2 = vmmov 0   ;;  %vm1764_vm3 = vcmask 15360  }
   0x3   :  { %v182_v5 = vunpack.c.0.s8 %v181_v2  ;;  %v2688_v19 = vld [vmem:[%s4016_s0 + $0x60] sm:$0xff]   ;;  %v2701_v21 = vld [vmem:[%s4016_s0 + $0x68] sm:$0xff]   ;;  %v2383_v22 = vld [vmem:[%s4016_s0 + $0x18] sm:$0xff]  }
   0x4   :  { %v2714_v23 = vld [vmem:[%s4016_s0 + $0x70] sm:$0xff]   ;;  %v2384_v24 = vld [vmem:[%s4016_s0 + $0x20] sm:$0xff]   ;;  %v2727_v25 = vld [vmem:[%s4016_s0 + $0x78] sm:$0xff]   ;;  %v70_v42 = vsub.s32 0, %v2650_v4  ;;  %v74_v44 = vsub.s32 1, %v2650_v4 }
   0x5   :  { %v185_v8 = vsub.s32 %v182_v5, %v2650_v4  ;;  %v2385_v26 = vld [vmem:[%s4016_s0 + $0x28] sm:$0xff]   ;;  %v2740_v27 = vld [vmem:[%s4016_s0 + $0x80] sm:$0xff]   ;;  %v2386_v28 = vld [vmem:[%s4016_s0 + $0x30] sm:$0xff]  }
   0x6   :  { %v2753_v29 = vld [vmem:[%s4016_s0 + $0x88] sm:$0xff]   ;;  %v2387_v30 = vld [vmem:[%s4016_s0 + $0x38] sm:$0xff]   ;;  %v2766_v31 = vld [vmem:[%s4016_s0 + $0x90] sm:$0xff]  }
   0x7   :  { %v186_v9 = vrot.slane %v65_v6, %v185_v8  ;;  %v193_v12 = vrot.slane %v179_v7, %v185_v8  ;;  %v2388_v32 = vld [vmem:[%s4016_s0 + $0x40] sm:$0xff]   ;;  %v2389_v33 = vld [vmem:[%s4016_s0 + $0x48] sm:$0xff]   ;;  %v2392_v36 = vld [vmem:[%s4018_s3 + $0x10] sm:$0xff]  }
   0x8   :  { %v2390_v34 = vld [vmem:[%s4018_s3] sm:$0xff]   ;;  %v2391_v35 = vld [vmem:[%s4018_s3 + $0x8] sm:$0xff]   ;;  %v2393_v37 = vld [vmem:[%s4018_s3 + $0x18] sm:$0xff]  }
   0x9   :  { %v194_v10 = vcombine.high %v186_v9, %v186_v9  ;;  %v255_v11 = vsel %vm253_vm0, %v186_v9, 0  ;;  %v261_v16 = vsel %vm253_vm0, %v193_v12, 0  ;;  %v2394_v38 = vld [vmem:[%s4018_s3 + $0x20] sm:$0xff]   ;;  %v2395_v39 = vld [vmem:[%s4018_s3 + $0x28] sm:$0xff]   ;;  %v2396_v40 = vld [vmem:[%s4018_s3 + $0x30] sm:$0xff]  }
   0xa   :  { %v2397_v41 = vld [vmem:[%s4018_s3 + $0x38] sm:$0xff]   ;;  %v2877_v43 = vld [vmem:[%s4019_s2] sm:$0x7] }
   0xb   :  { %2364 = vmatprep.subr.msk.bf16.mxu1 %vm253_vm0, %v194_v10  ;;  %1826 = vmatprep.subr.msk.bf16.mxu0 %vm253_vm0, %v194_v10  ;;  %v2885_v45 = vrot.slane %v2877_v43, %v70_v42  ;;  %v2888_v46 = vrot.slane %v2877_v43, %v74_v44 }
   0xc   :  { %2365 = vmatpush1.bf16.msra.mxu1 %v255_v11  ;;  %264 = vmatpush1.bf16.msra.mxu0 %v255_v11 }
   0xd   :  { %2010 = vmatprep.subr.bf16.mxu1 %v4024_v15  ;;  %2088 = vmatprep.subr.bf16.mxu0 %v4024_v15 }
   0xf   :  { %1837 = vmatmul.mubr.msk.bf16.vlgmr.msra.gmra.mrb[0].mxu1 %vm195_vm1, %v2659_v13  ;;  %1827 = vmatmul.mubr.msk.bf16.vlgmr.msra.gmra.mrb[0].mxu0 %vm195_vm1, %v2380_v14 }
  0x10   :  { %2011 = vmatpush3.bf16.msra.mxu1 %v261_v16  ;;  %405 = vmatprep.mubr.bf16.mxu1 %v2605_v3 }
  0x11   :  { %305 = vmatprep.mubr.bf16.mxu0 %v2605_v3  ;;  %2180 = vmatprep.subr.bf16.mxu1 %v4024_v15 }
  0x12   :  { %2089 = vmatpush3.bf16.msra.mxu0 %v2390_v34 }
  0x13   :  { %2090 = vmatprep.subr.bf16.mxu0 %v4024_v15 }
  0x16   :  { %2091 = vmatpush3.bf16.msra.mxu0 %v2391_v35 }
  0x17   :  { %1838 = vmatmul.mubr.msk.bf16.gmra.mrb[4].mxu1 %vm195_vm1, %v2675_v17  ;;  %1828 = vmatmul.mubr.msk.bf16.gmra.mrb[4].mxu0 %vm195_vm1, %v2381_v18 }
  0x18   :  { %415 = vmatprep.mubr.bf16.mxu1 %v2605_v3  ;;  %315 = vmatprep.mubr.bf16.mxu0 %v2605_v3 }
  0x19   :  { %2092 = vmatprep.subr.bf16.mxu0 %v4024_v15 }
  0x1a   :  { %2093 = vmatpush3.bf16.msra.mxu0 %v2392_v36 }
  0x1b   :  { %2094 = vmatprep.subr.bf16.mxu0 %v4024_v15 }
  0x1e   :  { %2095 = vmatpush3.bf16.msra.mxu0 %v2393_v37 }
  0x1f   :  { %1839 = vmatmul.mubr.msk.bf16.gmra.mrb[8].mxu1 %vm195_vm1, %v2688_v19  ;;  %1829 = vmatmul.mubr.msk.bf16.gmra.mrb[8].mxu0 %vm195_vm1, %v2382_v20 }
  0x20   :  { %425 = vmatprep.mubr.bf16.mxu1 %v2605_v3  ;;  %325 = vmatprep.mubr.bf16.mxu0 %v2605_v3 }
  0x21   :  { %2096 = vmatprep.subr.bf16.mxu0 %v4024_v15 }
  0x22   :  { %2097 = vmatpush3.bf16.msra.mxu0 %v2394_v38 }
  0x23   :  { %2098 = vmatprep.subr.bf16.mxu0 %v4024_v15 }
  0x26   :  { %2099 = vmatpush3.bf16.msra.mxu0 %v2395_v39 }
  0x27   :  { %1840 = vmatmul.mubr.msk.bf16.gmra.mrb[12].mxu1 %vm195_vm1, %v2701_v21  ;;  %1830 = vmatmul.mubr.msk.bf16.gmra.mrb[12].mxu0 %vm195_vm1, %v2383_v22 }
  0x28   :  { %435 = vmatprep.mubr.bf16.mxu1 %v2605_v3  ;;  %335 = vmatprep.mubr.bf16.mxu0 %v2605_v3 }
  0x29   :  { %2100 = vmatprep.subr.bf16.mxu0 %v4024_v15 }
  0x2a   :  { %2101 = vmatpush3.bf16.msra.mxu0 %v2396_v40 }
  0x2b   :  { %2102 = vmatprep.subr.bf16.mxu0 %v4024_v15 }
  0x2e   :  { %2103 = vmatpush3.bf16.msra.mxu0 %v2397_v41 }
  0x2f   :  { %1841 = vmatmul.mubr.msk.bf16.gmra.mrb[16].mxu1 %vm195_vm1, %v2714_v23  ;;  %1831 = vmatmul.mubr.msk.bf16.gmra.mrb[16].mxu0 %vm195_vm1, %v2384_v24 }
  0x30   :  { %445 = vmatprep.mubr.bf16.mxu1 %v2605_v3  ;;  %345 = vmatprep.mubr.bf16.mxu0 %v2605_v3 }
  0x31   :  { %2272 = vmatprep.subr.bf16.mxu0 %v4024_v15 }
  0x37   :  { %1842 = vmatmul.mubr.msk.bf16.gmra.mrb[20].mxu1 %vm195_vm1, %v2727_v25  ;;  %1832 = vmatmul.mubr.msk.bf16.gmra.mrb[20].mxu0 %vm195_vm1, %v2385_v26 }
  0x38   :  { %455 = vmatprep.mubr.bf16.mxu1 %v2605_v3  ;;  %355 = vmatprep.mubr.bf16.mxu0 %v2605_v3 }
  0x3f   :  { %1843 = vmatmul.mubr.msk.bf16.gmra.mrb[24].mxu1 %vm195_vm1, %v2740_v27  ;;  %1833 = vmatmul.mubr.msk.bf16.gmra.mrb[24].mxu0 %vm195_vm1, %v2386_v28 }
  0x40   :  { %465 = vmatprep.mubr.bf16.mxu1 %v2605_v3  ;;  %365 = vmatprep.mubr.bf16.mxu0 %v2605_v3 }
  0x47   :  { %1844 = vmatmul.mubr.msk.bf16.gmra.mrb[28].mxu1 %vm195_vm1, %v2753_v29  ;;  %1834 = vmatmul.mubr.msk.bf16.gmra.mrb[28].mxu0 %vm195_vm1, %v2387_v30 }
  0x48   :  { %475 = vmatprep.mubr.bf16.mxu1 %v2605_v3  ;;  %375 = vmatprep.mubr.bf16.mxu0 %v2605_v3 }
  0x4f   :  { %1845 = vmatmul.mubr.msk.bf16.gmra.mrb[32].mxu1 %vm195_vm1, %v2766_v31  ;;  %1835 = vmatmul.mubr.msk.bf16.gmra.mrb[32].mxu0 %vm195_vm1, %v2388_v32 }
  0x50   :  { %2012 = vmatprep.mubr.msk.bf16.mxu1 %vm2607_vm2, %v4024_v15  ;;  %385 = vmatprep.mubr.bf16.mxu0 %v2605_v3 }
  0x57   :  { %2013 = vmatmul.mubr.msk.bf16.vlgmr.msra.gmra.mrb[36].mxu1 %vm195_vm1, %v2380_v14  ;;  %1836 = vmatmul.mubr.msk.bf16.gmra.mrb[36].mxu0 %vm195_vm1, %v2389_v33 }
  0x58   :  { %2016 = vmatprep.mubr.msk.bf16.mxu1 %vm2607_vm2, %v4024_v15  ;;  %2104 = vmatprep.mubr.msk.bf16.mxu0 %vm2607_vm2, %v4024_v15 }
  0x5f   :  { %2017 = vmatmul.mubr.msk.bf16.gmra.mrb[40].mxu1 %vm195_vm1, %v2381_v18 }
  0x60   :  { %2020 = vmatprep.mubr.msk.bf16.mxu1 %vm2607_vm2, %v4024_v15 }
  0x67   :  { %2021 = vmatmul.mubr.msk.bf16.gmra.mrb[44].mxu1 %vm195_vm1, %v2382_v20 }
  0x68   :  { %2024 = vmatprep.mubr.msk.bf16.mxu1 %vm2607_vm2, %v4024_v15 }
  0x6f   :  { %2025 = vmatmul.mubr.msk.bf16.gmra.mrb[48].mxu1 %vm195_vm1, %v2383_v22 }
  0x70   :  { %2028 = vmatprep.mubr.msk.bf16.mxu1 %vm2607_vm2, %v4024_v15 }
  0x77   :  { %2029 = vmatmul.mubr.msk.bf16.gmra.mrb[52].mxu1 %vm195_vm1, %v2384_v24 }
  0x78   :  { %2032 = vmatprep.mubr.msk.bf16.mxu1 %vm2607_vm2, %v4024_v15 }
  0x7f   :  { %2033 = vmatmul.mubr.msk.bf16.gmra.mrb[56].mxu1 %vm195_vm1, %v2385_v26 }
  0x80   :  { %2036 = vmatprep.mubr.msk.bf16.mxu1 %vm2607_vm2, %v4024_v15 }
  0x87   :  { %2037 = vmatmul.mubr.msk.bf16.gmra.mrb[60].mxu1 %vm195_vm1, %v2386_v28 }
  0x88   :  { %2040 = vmatprep.mubr.msk.bf16.mxu1 %vm2607_vm2, %v4024_v15 }
  0x8f   :  { %2041 = vmatmul.mubr.msk.bf16.gmra.mrb[64].mxu1 %vm195_vm1, %v2387_v30 }
  0x90   :  { %2044 = vmatprep.mubr.msk.bf16.mxu1 %vm2607_vm2, %v4024_v15 }
  0x97   :  { %2045 = vmatmul.mubr.msk.bf16.gmra.mrb[68].mxu1 %vm195_vm1, %v2388_v32 }
  0x98   :  { %2048 = vmatprep.mubr.msk.bf16.mxu1 %vm2607_vm2, %v4024_v15 }
  0x9f   :  { %2049 = vmatmul.mubr.msk.bf16.gmra.mrb[72].mxu1 %vm195_vm1, %v2389_v33 }
  0xa0   :  { %2052 = vmatprep.mubr.msk.bf16.mxu1 %vm2607_vm2, %v4024_v15 }
  0xa7   :  { %2053 = vmatmul.mubr.msk.bf16.gmra.mrb[76].mxu1 %vm195_vm1, %v2659_v13 }
  0xa8   :  { %2056 = vmatprep.mubr.msk.bf16.mxu1 %vm2607_vm2, %v4024_v15 }
  0xaf   :  { %2057 = vmatmul.mubr.msk.bf16.gmra.mrb[80].mxu1 %vm195_vm1, %v2675_v17 }
  0xb0   :  { %2060 = vmatprep.mubr.msk.bf16.mxu1 %vm2607_vm2, %v4024_v15 }
  0xb7   :  { %2061 = vmatmul.mubr.msk.bf16.gmra.mrb[84].mxu1 %vm195_vm1, %v2688_v19 }
  0xb8   :  { %2064 = vmatprep.mubr.msk.bf16.mxu1 %vm2607_vm2, %v4024_v15 }
  0xbf   :  { %2065 = vmatmul.mubr.msk.bf16.gmra.mrb[88].mxu1 %vm195_vm1, %v2701_v21 }
  0xc0   :  { %2068 = vmatprep.mubr.msk.bf16.mxu1 %vm2607_vm2, %v4024_v15 }
  0xc7   :  { %2069 = vmatmul.mubr.msk.bf16.gmra.mrb[92].mxu1 %vm195_vm1, %v2714_v23 }
  0xc8   :  { %2072 = vmatprep.mubr.msk.bf16.mxu1 %vm2607_vm2, %v4024_v15 }
  0xcf   :  { %2073 = vmatmul.mubr.msk.bf16.gmra.mrb[96].mxu1 %vm195_vm1, %v2727_v25 }
  0xd0   :  { %2076 = vmatprep.mubr.msk.bf16.mxu1 %vm2607_vm2, %v4024_v15 }
  0xd7   :  { %2077 = vmatmul.mubr.msk.bf16.gmra.mrb[100].mxu1 %vm195_vm1, %v2740_v27 }
  0xd8   :  { %2080 = vmatprep.mubr.msk.bf16.mxu1 %vm2607_vm2, %v4024_v15 }
  0xdf   :  { %2081 = vmatmul.mubr.msk.bf16.gmra.mrb[104].mxu1 %vm195_vm1, %v2753_v29 }
  0xe0   :  { %2084 = vmatprep.mubr.msk.bf16.mxu1 %vm2607_vm2, %v4024_v15 }
  0xe2   :  { %v397_v47 = vpop.f32.mrb[0].mxu1  ;;  %v297_v48 = vpop.f32.mrb[0].mxu0 }
  0xe3   :  { %v399_v49 = vpop.f32.mrb[1].mxu1  ;;  %v2891_v50 = vadd.f32 %v297_v48, %v2885_v45  ;;  %v299_v51 = vpop.f32.mrb[1].mxu0  ;;  %v2897_v55 = vadd.f32 %v397_v47, %v2885_v45 }
  0xe4   :  { %v401_v52 = vpop.f32.mrb[2].mxu1  ;;  %v2894_v53 = vadd.f32 %v299_v51, %v2888_v46  ;;  %v301_v54 = vpop.f32.mrb[2].mxu0  ;;  %v2906_v60 = vadd.f32 %v399_v49, %v2888_v46 }
  0xe5   :  { %v2900_v56 = vadd.f32 %v401_v52, %v2885_v45  ;;  %v403_v57 = vpop.f32.mrb[3].mxu1  ;;  %v2903_v58 = vadd.f32 %v301_v54, %v2885_v45  ;;  %v303_v59 = vpop.f32.mrb[3].mxu0 }
  0xe6   :  { %v2909_v61 = vadd.f32 %v403_v57, %v2888_v46  ;;  %v2912_v62 = vadd.f32 %v303_v59, %v2888_v46 }
  0xe7   :  { %2085 = vmatmul.mubr.msk.bf16.gmra.mrb[108].mxu1 %vm195_vm1, %v2766_v31 }
  0xe8   :  { %2196 = vmatprep.mubr.msk.bf16.mxu1 %vm2607_vm2, %v4024_v15 }
  0xea   :  { %v407_v3 = vpop.f32.mrb[4].mxu1  ;;  %v307_v5 = vpop.f32.mrb[4].mxu0 }
  0xeb   :  { %v409_v6 = vpop.f32.mrb[5].mxu1  ;;  %v2927_v7 = vadd.f32 %v307_v5, %v2885_v45  ;;  %v309_v8 = vpop.f32.mrb[5].mxu0  ;;  %v2933_v12 = vadd.f32 %v407_v3, %v2885_v45 }
  0xec   :  { %v411_v9 = vpop.f32.mrb[6].mxu1  ;;  %v2930_v10 = vadd.f32 %v309_v8, %v2888_v46  ;;  %v311_v11 = vpop.f32.mrb[6].mxu0  ;;  %v2942_v18 = vadd.f32 %v409_v6, %v2888_v46 }
  0xed   :  { %v2936_v13 = vadd.f32 %v411_v9, %v2885_v45  ;;  %v413_v14 = vpop.f32.mrb[7].mxu1  ;;  %v2939_v16 = vadd.f32 %v311_v11, %v2885_v45  ;;  %v313_v17 = vpop.f32.mrb[7].mxu0 }
  0xee   :  { %v2945_v19 = vadd.f32 %v413_v14, %v2888_v46  ;;  %v2948_v20 = vadd.f32 %v313_v17, %v2888_v46 }
  0xf2   :  { %v417_v25 = vpop.f32.mrb[8].mxu1  ;;  %v317_v26 = vpop.f32.mrb[8].mxu0 }
  0xf3   :  { %v419_v27 = vpop.f32.mrb[9].mxu1  ;;  %v2959_v28 = vadd.f32 %v317_v26, %v2885_v45  ;;  %v319_v29 = vpop.f32.mrb[9].mxu0  ;;  %v2965_v33 = vadd.f32 %v417_v25, %v2885_v45 }
  0xf4   :  { %v421_v30 = vpop.f32.mrb[10].mxu1  ;;  %v2962_v31 = vadd.f32 %v319_v29, %v2888_v46  ;;  %v321_v32 = vpop.f32.mrb[10].mxu0  ;;  %v2974_v38 = vadd.f32 %v419_v27, %v2888_v46 }
  0xf5   :  { %v2968_v34 = vadd.f32 %v421_v30, %v2885_v45  ;;  %v423_v35 = vpop.f32.mrb[11].mxu1  ;;  %v2971_v36 = vadd.f32 %v321_v32, %v2885_v45  ;;  %v323_v37 = vpop.f32.mrb[11].mxu0 }
  0xf6   :  { %4050 = vst [vmem:[#allocation2_spill] sm:$0xff] %v2974_v38  ;;  %v2977_v39 = vadd.f32 %v423_v35, %v2888_v46  ;;  %v2980_v40 = vadd.f32 %v323_v37, %v2888_v46 }
  0xf8   :  { %4051 = vst [vmem:[#allocation3_spill] sm:$0xff] %v2977_v39 }
  0xfa   :  { %v427_v48 = vpop.f32.mrb[12].mxu1  ;;  %v327_v49 = vpop.f32.mrb[12].mxu0 }
  0xfb   :  { %v429_v51 = vpop.f32.mrb[13].mxu1  ;;  %v2991_v52 = vadd.f32 %v327_v49, %v2885_v45  ;;  %v329_v54 = vpop.f32.mrb[13].mxu0  ;;  %v2997_v5 = vadd.f32 %v427_v48, %v2885_v45 }
  0xfc   :  { %v431_v57 = vpop.f32.mrb[14].mxu1  ;;  %v2994_v59 = vadd.f32 %v329_v54, %v2888_v46  ;;  %v331_v3 = vpop.f32.mrb[14].mxu0  ;;  %v3006_v14 = vadd.f32 %v429_v51, %v2888_v46 }
  0xfd   :  { %4052 = vst [vmem:[#allocation4_spill] sm:$0xff] %v2997_v5  ;;  %v3000_v6 = vadd.f32 %v431_v57, %v2885_v45  ;;  %v433_v8 = vpop.f32.mrb[15].mxu1  ;;  %v3003_v9 = vadd.f32 %v331_v3, %v2885_v45  ;;  %v333_v11 = vpop.f32.mrb[15].mxu0 }
  0xfe   :  { %4054 = vst [vmem:[#allocation6_spill] sm:$0xff] %v3006_v14  ;;  %v3009_v17 = vadd.f32 %v433_v8, %v2888_v46  ;;  %v3012_v25 = vadd.f32 %v333_v11, %v2888_v46 }
  0xff   :  { %4053 = vst [vmem:[#allocation5_spill] sm:$0xff] %v3000_v6 }
 0x100   :  { %4055 = vst [vmem:[#allocation7_spill] sm:$0xff] %v3009_v17 }
 0x102   :  { %v437_v32 = vpop.f32.mrb[16].mxu1  ;;  %v337_v35 = vpop.f32.mrb[16].mxu0 }
 0x103   :  { %v439_v37 = vpop.f32.mrb[17].mxu1  ;;  %v3023_v48 = vadd.f32 %v337_v35, %v2885_v45  ;;  %v339_v49 = vpop.f32.mrb[17].mxu0  ;;  %v3029_v3 = vadd.f32 %v437_v32, %v2885_v45 }
 0x104   :  { %v441_v51 = vpop.f32.mrb[18].mxu1  ;;  %v3026_v54 = vadd.f32 %v339_v49, %v2888_v46  ;;  %v341_v57 = vpop.f32.mrb[18].mxu0  ;;  %v3038_v35 = vadd.f32 %v439_v37, %v2888_v46 }
 0x105   :  { %4056 = vst [vmem:[#allocation8_spill] sm:$0xff] %v3029_v3  ;;  %v3032_v8 = vadd.f32 %v441_v51, %v2885_v45  ;;  %v443_v11 = vpop.f32.mrb[19].mxu1  ;;  %v3035_v29 = vadd.f32 %v341_v57, %v2885_v45  ;;  %v343_v26 = vpop.f32.mrb[19].mxu0 }
 0x106   :  { %4058 = vst [vmem:[#allocation10_spill] sm:$0xff] %v3038_v35  ;;  %v3041_v44 = vadd.f32 %v443_v11, %v2888_v46  ;;  %v3044_v49 = vadd.f32 %v343_v26, %v2888_v46 }
 0x107   :  { %4057 = vst [vmem:[#allocation9_spill] sm:$0xff] %v3032_v8 }
 0x108   :  { %4059 = vst [vmem:[#allocation11_spill] sm:$0xff] %v3041_v44 }
 0x10a   :  { %v447_v37 = vpop.f32.mrb[20].mxu1  ;;  %v347_v23 = vpop.f32.mrb[20].mxu0 }
 0x10b   :  { %v449_v21 = vpop.f32.mrb[21].mxu1  ;;  %v3055_v11 = vadd.f32 %v347_v23, %v2885_v45  ;;  %v349_v26 = vpop.f32.mrb[21].mxu0  ;;  %v3061_v51 = vadd.f32 %v447_v37, %v2885_v45 }
 0x10c   :  { %v451_v1 = vpop.f32.mrb[22].mxu1  ;;  %v3058_v63 = vadd.f32 %v349_v26, %v2888_v46  ;;  %v351_v32 = vpop.f32.mrb[22].mxu0  ;;  %v3070_v23 = vadd.f32 %v449_v21, %v2888_v46 }
 0x10d   :  { %4060 = vst [vmem:[#allocation12_spill] sm:$0xff] %v3061_v51  ;;  %v3064_v57 = vadd.f32 %v451_v1, %v2885_v45  ;;  %v453_v30 = vpop.f32.mrb[23].mxu1  ;;  %v3067_v41 = vadd.f32 %v351_v32, %v2885_v45  ;;  %v353_v27 = vpop.f32.mrb[23].mxu0 }
 0x10e   :  { %4062 = vst [vmem:[#allocation14_spill] sm:$0xff] %v3070_v23  ;;  %v3073_v47 = vadd.f32 %v453_v30, %v2888_v46  ;;  %v3076_v26 = vadd.f32 %v353_v27, %v2888_v46 }
 0x10f   :  { %4061 = vst [vmem:[#allocation13_spill] sm:$0xff] %v3064_v57 }
 0x110   :  { %4063 = vst [vmem:[#allocation15_spill] sm:$0xff] %v3073_v47 }
 0x112   :  { %v457_v21 = vpop.f32.mrb[24].mxu1  ;;  %v357_v24 = vpop.f32.mrb[24].mxu0 }
 0x113   :  { %v459_v22 = vpop.f32.mrb[25].mxu1  ;;  %v3087_v30 = vadd.f32 %v357_v24, %v2885_v45  ;;  %v359_v27 = vpop.f32.mrb[25].mxu0  ;;  %v3093_v1 = vadd.f32 %v457_v21, %v2885_v45 }
 0x114   :  { %v461_v2 = vpop.f32.mrb[26].mxu1  ;;  %v3090_v0 = vadd.f32 %v359_v27, %v2888_v46  ;;  %v361_v37 = vpop.f32.mrb[26].mxu0  ;;  %v3102_v24 = vadd.f32 %v459_v22, %v2888_v46 }
 0x115   :  { %4064 = vst [vmem:[#allocation16_spill] sm:$0xff] %v3093_v1  ;;  %v3096_v32 = vadd.f32 %v461_v2, %v2885_v45  ;;  %v463_v15 = vpop.f32.mrb[27].mxu1  ;;  %v3099_v42 = vadd.f32 %v361_v37, %v2885_v45  ;;  %v363_v23 = vpop.f32.mrb[27].mxu0 }
 0x116   :  { %4066 = vst [vmem:[#allocation18_spill] sm:$0xff] %v3102_v24  ;;  %v3105_v47 = vadd.f32 %v463_v15, %v2888_v46  ;;  %v3108_v27 = vadd.f32 %v363_v23, %v2888_v46  ;;  %v2398_v15 = vld [vmem:[%s4018_s3 + $0x40] sm:$0xff]   ;;  %v4068_v24 = vmov 0.0  }
 0x117   :  { %4065 = vst [vmem:[#allocation17_spill] sm:$0xff] %v3096_v32  ;;  %2181 = vmatpush3.bf16.msra.mxu1 %v2398_v15 }
 0x118   :  { %4067 = vst [vmem:[#allocation19_spill] sm:$0xff] %v3105_v47  ;;  %2182 = vmatprep.subr.bf16.mxu1 %v4068_v24 }
 0x11a   :  { %v467_v22 = vpop.f32.mrb[28].mxu1  ;;  %v367_v57 = vpop.f32.mrb[28].mxu0 }
 0x11b   :  { %v469_v23 = vpop.f32.mrb[29].mxu1  ;;  %v3122_v35 = vadd.f32 %v367_v57, %v2885_v45  ;;  %v369_v21 = vpop.f32.mrb[29].mxu0  ;;  %v3129_v51 = vadd.f32 %v467_v22, %v2885_v45 }
 0x11c   :  { %v471_v1 = vpop.f32.mrb[30].mxu1  ;;  %v3125_v2 = vadd.f32 %v369_v21, %v2888_v46  ;;  %v371_v37 = vpop.f32.mrb[30].mxu0  ;;  %v3138_v15 = vadd.f32 %v469_v23, %v2888_v46 }
 0x11d   :  { %4069 = vst [vmem:[#allocation20_spill] sm:$0xff] %v3129_v51  ;;  %v3132_v47 = vadd.f32 %v471_v1, %v2885_v45  ;;  %v473_v32 = vpop.f32.mrb[31].mxu1  ;;  %v3135_v44 = vadd.f32 %v371_v37, %v2885_v45  ;;  %v373_v57 = vpop.f32.mrb[31].mxu0  ;;  %v78_v1 = vsub.s32 2, %v2650_v4 }
 0x11e   :  { %4071 = vst [vmem:[#allocation22_spill] sm:$0xff] %v3138_v15  ;;  %v3141_v21 = vadd.f32 %v473_v32, %v2888_v46  ;;  %v3144_v3 = vadd.f32 %v373_v57, %v2888_v46 }
 0x11f   :  { %4070 = vst [vmem:[#allocation21_spill] sm:$0xff] %v3132_v47 }
 0x120   :  { %4072 = vst [vmem:[#allocation23_spill] sm:$0xff] %v3141_v21 }
 0x122   :  { %v477_v23 = vpop.f32.mrb[32].mxu1  ;;  %v377_v14 = vpop.f32.mrb[32].mxu0 }
 0x123   :  { %v479_v17 = vpop.f32.mrb[33].mxu1  ;;  %v3155_v32 = vadd.f32 %v377_v14, %v2885_v45  ;;  %v379_v57 = vpop.f32.mrb[33].mxu0  ;;  %v3162_v51 = vadd.f32 %v477_v23, %v2885_v45 }
 0x124   :  { %v481_v5 = vpop.f32.mrb[34].mxu1  ;;  %v3158_v6 = vadd.f32 %v379_v57, %v2888_v46  ;;  %v381_v22 = vpop.f32.mrb[34].mxu0  ;;  %v3171_v21 = vadd.f32 %v479_v17, %v2888_v46  ;;  %v3188_v17 = vrot.slane %v2877_v43, %v78_v1 }
 0x125   :  { %v3165_v37 = vadd.f32 %v481_v5, %v2885_v45  ;;  %v483_v8 = vpop.f32.mrb[35].mxu1  ;;  %v3168_v15 = vadd.f32 %v381_v22, %v2885_v45  ;;  %v383_v14 = vpop.f32.mrb[35].mxu0  ;;  %v4075_v22 = vpack.c.bf16 %v2903_v58, %v2891_v50 }
 0x126   :  { %4073 = vst [vmem:[#allocation24_spill] sm:$0xff] %v3171_v21  ;;  %v3174_v57 = vadd.f32 %v483_v8, %v2888_v46  ;;  %v3177_v47 = vadd.f32 %v383_v14, %v2888_v46  ;;  %v2399_v8 = vld [vmem:[%s4018_s3 + $0x48] sm:$0xff]   ;;  %v4076_v21 = vpack.c.bf16 %v2912_v62, %v2894_v53 }
 0x127   :  { %2183 = vmatpush3.bf16.msra.mxu1 %v2399_v8  ;;  %2414 = vtanh.bf16 %v4075_v22 }
 0x128   :  { %4074 = vst [vmem:[#allocation25_spill] sm:$0xff] %v3174_v57  ;;  %2184 = vmatprep.subr.bf16.mxu1 %v4068_v24  ;;  %2416 = vtanh.bf16 %v4076_v21 }
 0x12a   :  { %v520_v14 = vpop.f32.mrb[36].mxu1  ;;  %v387_v38 = vpop.f32.mrb[36].mxu0 }
 0x12b   :  { %v2014_v39 = vpop.f32.mrb[37].mxu1  ;;  %v3194_v4 = vadd.f32 %v387_v38, %v2885_v45  ;;  %v389_v5 = vpop.f32.mrb[37].mxu0  ;;  %v521_v38 = vadd.f32 %v520_v14, %v3188_v17  ;;  %v4078_v14 = vpack.c.bf16 %v2948_v20, %v2930_v10  ;;  %v2400_v10 = vld [vmem:[%s4018_s3 + $0x50] sm:$0xff]   ;;  %v4079_v20 = vpack.c.bf16 %v2971_v36, %v2959_v28 }
 0x12c   :  { %v523_v23 = vpop.f32.mrb[38].mxu1  ;;  %v3200_v43 = vadd.f32 %v389_v5, %v2888_v46  ;;  %v391_v1 = vpop.f32.mrb[38].mxu0  ;;  %2185 = vmatpush3.bf16.msra.mxu1 %v2400_v10 }
 0x12d   :  { %v524_v39 = vadd.f32 %v523_v23, %v3188_v17  ;;  %v2015_v8 = vpop.f32.mrb[39].mxu1  ;;  %v3209_v57 = vadd.f32 %v391_v1, %v2885_v45  ;;  %v393_v50 = vpop.f32.mrb[39].mxu0  ;;  %v4077_v23 = vpack.c.bf16 %v2939_v16, %v2927_v7  ;;  %2186 = vmatprep.subr.bf16.mxu1 %v4068_v24 }
 0x12e   :  { %v3212_v58 = vadd.f32 %v393_v50, %v2888_v46 }
 0x12f   :  { %v747_v5 = vpack.c.bf16 %v524_v39, %v521_v38  ;;  %v680_v22 = vpack.c.bf16 %v3209_v57, %v3194_v4 }
 0x130   :  { %v718_v53 = vpack.c.bf16 %v3212_v58, %v3200_v43 }
 0x131   :  { %2418 = vtanh.bf16 %v747_v5 }
 0x132   :  { %v528_v62 = vpop.f32.mrb[40].mxu1  ;;  %2420 = vtanh.bf16 %v4077_v23  ;;  %v2415_v39 = vpop.eup %2414  ;;  %v4080_v23 = vpack.c.bf16 %v2980_v40, %v2962_v31 }
 0x133   :  { %v2018_v21 = vpop.f32.mrb[41].mxu1  ;;  %2422 = vtanh.bf16 %v4078_v14  ;;  %v529_v46 = vadd.f32 %v528_v62, %v3188_v17  ;;  %v3226_v50 = vpop.eup %2416 }
 0x134   :  { %v531_v45 = vpop.f32.mrb[42].mxu1  ;;  %v3229_v7 = vsub.bf16 %v2415_v39, %v3226_v50 }
 0x135   :  { %v532_v1 = vadd.f32 %v531_v45, %v3188_v17  ;;  %v2019_v38 = vpop.f32.mrb[43].mxu1 }
 0x137   :  { %v748_v8 = vpack.c.bf16 %v532_v1, %v529_v46 }
 0x139   :  { %2424 = vtanh.bf16 %v748_v8 }
 0x13a   :  { %v536_v5 = vpop.f32.mrb[44].mxu1  ;;  %2426 = vtanh.bf16 %v4079_v20 }
 0x13b   :  { %v2022_v21 = vpop.f32.mrb[45].mxu1  ;;  %2428 = vtanh.bf16 %v4080_v23  ;;  %v537_v45 = vadd.f32 %v536_v5, %v3188_v17 }
 0x13c   :  { %v2419_v16 = vpop.eup %2418  ;;  %v539_v62 = vpop.f32.mrb[46].mxu1  ;;  %v4081_v21 = vpack.c.bf16 %v3003_v9, %v2991_v52  ;;  %v2401_v52 = vld [vmem:[%s4018_s3 + $0x58] sm:$0xff]  }
 0x13d   :  { %v540_v14 = vadd.f32 %v539_v62, %v3188_v17  ;;  %v2023_v46 = vpop.f32.mrb[47].mxu1  ;;  %v804_v1 = vmul.bf16 %v2419_v16, %v3229_v7  ;;  %v2421_v38 = vpop.eup %2420  ;;  %v4082_v16 = vpack.c.bf16 %v3012_v25, %v2994_v59  ;;  %2187 = vmatpush3.bf16.msra.mxu1 %v2401_v52 }
 0x13e   :  { %v3245_v36 = vpop.eup %2422  ;;  %2188 = vmatprep.subr.bf16.mxu1 %v4068_v24 }
 0x13f   :  { %v749_v39 = vpack.c.bf16 %v540_v14, %v537_v45  ;;  %v823_v28 = vadd.bf16 %v3226_v50, %v804_v1  ;;  %v3250_v8 = vsub.bf16 %v2421_v38, %v3245_v36 }
 0x141   :  { %2430 = vtanh.bf16 %v749_v39  ;;  %2105 = vmatmul.mubr.bf16.vlgmr.msra.gmra.mrb[40].mxu0 %v823_v28  ;;  %v4083_v28 = vpack.c.bf16 %v3035_v29, %v3023_v48  ;;  %v2402_v48 = vld [vmem:[%s4018_s3 + $0x60] sm:$0xff]  }
 0x142   :  { %v544_v31 = vpop.f32.mrb[48].mxu1  ;;  %2108 = vmatprep.mubr.msk.bf16.mxu0 %vm2607_vm2, %v4068_v24  ;;  %2432 = vtanh.bf16 %v4081_v21  ;;  %2189 = vmatpush3.bf16.msra.mxu1 %v2402_v48 }
 0x143   :  { %v2026_v40 = vpop.f32.mrb[49].mxu1  ;;  %2434 = vtanh.bf16 %v4082_v16  ;;  %v545_v20 = vadd.f32 %v544_v31, %v3188_v17  ;;  %2190 = vmatprep.subr.bf16.mxu1 %v4068_v24 }
 0x144   :  { %v2425_v5 = vpop.eup %2424  ;;  %v547_v10 = vpop.f32.mrb[50].mxu1  ;;  %v4084_v40 = vpack.c.bf16 %v3044_v49, %v3026_v54 }
 0x145   :  { %v548_v62 = vadd.f32 %v547_v10, %v3188_v17  ;;  %v2027_v23 = vpop.f32.mrb[51].mxu1  ;;  %v805_v45 = vmul.bf16 %v2425_v5, %v3250_v8  ;;  %v2427_v14 = vpop.eup %2426 }
 0x146   :  { %v3262_v38 = vpop.eup %2428 }
 0x147   :  { %v750_v46 = vpack.c.bf16 %v548_v62, %v545_v20  ;;  %v824_v1 = vadd.bf16 %v3245_v36, %v805_v45  ;;  %v3270_v25 = vsub.bf16 %v2427_v14, %v3262_v38  ;;  %v2403_v14 = vld [vmem:[%s4018_s3 + $0x68] sm:$0xff]  }
 0x148   :  { %2191 = vmatpush3.bf16.msra.mxu1 %v2403_v14 }
 0x149   :  { %2436 = vtanh.bf16 %v750_v46  ;;  %2109 = vmatmul.mubr.bf16.gmra.mrb[44].mxu0 %v824_v1  ;;  %v4085_v1 = vpack.c.bf16 %v3067_v41, %v3055_v11  ;;  %v2404_v41 = vld [vmem:[%s4018_s3 + $0x70] sm:$0xff]   ;;  %2192 = vmatprep.subr.bf16.mxu1 %v4068_v24 }
 0x14a   :  { %v552_v59 = vpop.f32.mrb[52].mxu1  ;;  %2112 = vmatprep.mubr.msk.bf16.mxu0 %vm2607_vm2, %v4068_v24  ;;  %2438 = vtanh.bf16 %v4083_v28 }
 0x14b   :  { %v2030_v9 = vpop.f32.mrb[53].mxu1  ;;  %2440 = vtanh.bf16 %v4084_v40  ;;  %v553_v5 = vadd.f32 %v552_v59, %v3188_v17  ;;  %v4086_v59 = vpack.c.bf16 %v3076_v26, %v3058_v63 }
 0x14c   :  { %v2431_v39 = vpop.eup %2430  ;;  %v555_v31 = vpop.f32.mrb[54].mxu1  ;;  %2193 = vmatpush3.bf16.msra.mxu1 %v2404_v41 }
 0x14d   :  { %v556_v21 = vadd.f32 %v555_v31, %v3188_v17  ;;  %v2031_v10 = vpop.f32.mrb[55].mxu1  ;;  %v806_v16 = vmul.bf16 %v2431_v39, %v3270_v25  ;;  %v2433_v20 = vpop.eup %2432  ;;  %2194 = vmatprep.subr.bf16.mxu1 %v4068_v24 }
 0x14e   :  { %v3283_v29 = vpop.eup %2434 }
 0x14f   :  { %v751_v62 = vpack.c.bf16 %v556_v21, %v553_v5  ;;  %v825_v23 = vadd.bf16 %v3262_v38, %v806_v16  ;;  %v3291_v45 = vsub.bf16 %v2433_v20, %v3283_v29  ;;  %v4087_v20 = vpack.c.bf16 %v3099_v42, %v3087_v30 }
 0x151   :  { %2442 = vtanh.bf16 %v751_v62  ;;  %2113 = vmatmul.mubr.bf16.gmra.mrb[48].mxu0 %v825_v23  ;;  %v4088_v23 = vpack.c.bf16 %v3108_v27, %v3090_v0 }
 0x152   :  { %v560_v54 = vpop.f32.mrb[56].mxu1  ;;  %2116 = vmatprep.mubr.msk.bf16.mxu0 %vm2607_vm2, %v4068_v24  ;;  %2444 = vtanh.bf16 %v4085_v1 }
 0x153   :  { %v2034_v49 = vpop.f32.mrb[57].mxu1  ;;  %2446 = vtanh.bf16 %v4086_v59  ;;  %v561_v9 = vadd.f32 %v560_v54, %v3188_v17 }
 0x154   :  { %v2437_v46 = vpop.eup %2436  ;;  %v563_v52 = vpop.f32.mrb[58].mxu1 }
 0x155   :  { %v564_v39 = vadd.f32 %v563_v52, %v3188_v17  ;;  %v2035_v28 = vpop.f32.mrb[59].mxu1  ;;  %v807_v31 = vmul.bf16 %v2437_v46, %v3291_v45  ;;  %v2439_v40 = vpop.eup %2438 }
 0x156   :  { %v3310_v11 = vpop.eup %2440  ;;  %v4090_v28 = vpack.c.bf16 %v3144_v3, %v3125_v2 }
 0x157   :  { %v752_v5 = vpack.c.bf16 %v564_v39, %v561_v9  ;;  %v826_v21 = vadd.bf16 %v3283_v29, %v807_v31  ;;  %v3316_v10 = vsub.bf16 %v2439_v40, %v3310_v11  ;;  %v4089_v9 = vpack.c.bf16 %v3135_v44, %v3122_v35 }
 0x159   :  { %2448 = vtanh.bf16 %v752_v5  ;;  %2117 = vmatmul.mubr.bf16.gmra.mrb[52].mxu0 %v826_v21 }
 0x15a   :  { %v568_v63 = vpop.f32.mrb[60].mxu1  ;;  %2120 = vmatprep.mubr.msk.bf16.mxu0 %vm2607_vm2, %v4068_v24  ;;  %2450 = vtanh.bf16 %v4087_v20  ;;  %v4091_v20 = vpack.c.bf16 %v3168_v15, %v3155_v32 }
 0x15b   :  { %v2038_v26 = vpop.f32.mrb[61].mxu1  ;;  %2452 = vtanh.bf16 %v4088_v23  ;;  %v569_v48 = vadd.f32 %v568_v63, %v3188_v17  ;;  %v4092_v23 = vpack.c.bf16 %v3177_v47, %v3158_v6 }
 0x15c   :  { %v2443_v16 = vpop.eup %2442  ;;  %v571_v62 = vpop.f32.mrb[62].mxu1 }
 0x15d   :  { %v572_v54 = vadd.f32 %v571_v62, %v3188_v17  ;;  %v2039_v49 = vpop.f32.mrb[63].mxu1  ;;  %v808_v14 = vmul.bf16 %v2443_v16, %v3316_v10  ;;  %v2445_v46 = vpop.eup %2444 }
 0x15e   :  { %v3329_v42 = vpop.eup %2446 }
 0x15f   :  { %v753_v1 = vpack.c.bf16 %v572_v54, %v569_v48  ;;  %v827_v52 = vadd.bf16 %v3310_v11, %v808_v14  ;;  %v3334_v27 = vsub.bf16 %v2445_v46, %v3329_v42 }
 0x161   :  { %2454 = vtanh.bf16 %v753_v1  ;;  %2121 = vmatmul.mubr.bf16.gmra.mrb[56].mxu0 %v827_v52 }
 0x162   :  { %v576_v30 = vpop.f32.mrb[64].mxu1  ;;  %2124 = vmatprep.mubr.msk.bf16.mxu0 %vm2607_vm2, %v4068_v24  ;;  %2456 = vtanh.bf16 %v4089_v9 }
 0x163   :  { %v2042_v0 = vpop.f32.mrb[65].mxu1  ;;  %2458 = vtanh.bf16 %v4090_v28  ;;  %v577_v31 = vadd.f32 %v576_v30, %v3188_v17 }
 0x164   :  { %v2449_v59 = vpop.eup %2448  ;;  %v579_v39 = vpop.f32.mrb[66].mxu1 }
 0x165   :  { %v580_v40 = vadd.f32 %v579_v39, %v3188_v17  ;;  %v2043_v5 = vpop.f32.mrb[67].mxu1  ;;  %v809_v21 = vmul.bf16 %v2449_v59, %v3334_v27  ;;  %v2451_v41 = vpop.eup %2450 }
 0x166   :  { %v3346_v16 = vpop.eup %2452 }
 0x167   :  { %v754_v63 = vpack.c.bf16 %v580_v40, %v577_v31  ;;  %v828_v26 = vadd.bf16 %v3329_v42, %v809_v21  ;;  %v3351_v35 = vsub.bf16 %v2451_v41, %v3346_v16  ;;  %v4094_v41 = vpack.c.bf16 %v2909_v61, %v2906_v60 }
 0x169   :  { %2460 = vtanh.bf16 %v754_v63  ;;  %2125 = vmatmul.mubr.bf16.gmra.mrb[60].mxu0 %v828_v26 }
 0x16a   :  { %v584_v44 = vpop.f32.mrb[68].mxu1  ;;  %2128 = vmatprep.mubr.msk.bf16.mxu0 %vm2607_vm2, %v4068_v24  ;;  %2462 = vtanh.bf16 %v4091_v20 }
 0x16b   :  { %v2046_v3 = vpop.f32.mrb[69].mxu1  ;;  %2464 = vtanh.bf16 %v4092_v23  ;;  %v585_v48 = vadd.f32 %v584_v44, %v3188_v17 }
 0x16c   :  { %v2455_v2 = vpop.eup %2454  ;;  %v587_v62 = vpop.f32.mrb[70].mxu1 }
 0x16d   :  { %v588_v54 = vadd.f32 %v587_v62, %v3188_v17  ;;  %v2047_v49 = vpop.f32.mrb[71].mxu1  ;;  %v810_v14 = vmul.bf16 %v2455_v2, %v3351_v35  ;;  %v2457_v46 = vpop.eup %2456 }
 0x16e   :  { %v3363_v30 = vpop.eup %2458  ;;  %v4096_v49 = vpack.c.bf16 %v2945_v19, %v2942_v18 }
 0x16f   :  { %v755_v1 = vpack.c.bf16 %v588_v54, %v585_v48  ;;  %v829_v52 = vadd.bf16 %v3346_v16, %v810_v14  ;;  %v3368_v6 = vsub.bf16 %v2457_v46, %v3363_v30  ;;  %v4095_v48 = vpack.c.bf16 %v2936_v13, %v2933_v12 }
 0x171   :  { %2466 = vtanh.bf16 %v755_v1  ;;  %2129 = vmatmul.mubr.bf16.gmra.mrb[64].mxu0 %v829_v52 }
 0x172   :  { %v592_v15 = vpop.f32.mrb[72].mxu1  ;;  %2132 = vmatprep.mubr.msk.bf16.mxu0 %vm2607_vm2, %v4068_v24  ;;  %2468 = vtanh.bf16 %v680_v22  ;;  %v4093_v22 = vpack.c.bf16 %v2900_v56, %v2897_v55 }
 0x173   :  { %v2050_v47 = vpop.f32.mrb[73].mxu1  ;;  %2470 = vtanh.bf16 %v718_v53  ;;  %v593_v59 = vadd.f32 %v592_v15, %v3188_v17 }
 0x174   :  { %v2461_v32 = vpop.eup %2460  ;;  %v595_v0 = vpop.f32.mrb[74].mxu1 }
 0x175   :  { %v596_v9 = vadd.f32 %v595_v0, %v3188_v17  ;;  %v2051_v39 = vpop.f32.mrb[75].mxu1  ;;  %v811_v28 = vmul.bf16 %v2461_v32, %v3368_v6  ;;  %v2463_v31 = vpop.eup %2462 }
 0x176   :  { %v3380_v21 = vpop.eup %2464  ;;  %v4098_v39 = vld [vmem:[#allocation3_spill] sm:$0xff] }
 0x177   :  { %v756_v40 = vpack.c.bf16 %v596_v9, %v593_v59  ;;  %v830_v5 = vadd.bf16 %v3363_v30, %v811_v28  ;;  %v3385_v43 = vsub.bf16 %v2463_v31, %v3380_v21  ;;  %v4097_v59 = vpack.c.bf16 %v2968_v34, %v2965_v33  ;;  %v4099_v28 = vld [vmem:[#allocation2_spill] sm:$0xff] }
 0x178   :  { %v4100_v31 = vpack.c.bf16 %v4098_v39, %v4099_v28  ;;  %v4110_v28 = vld [vmem:[#allocation11_spill] sm:$0xff] }
 0x179   :  { %2472 = vtanh.bf16 %v756_v40  ;;  %2133 = vmatmul.mubr.bf16.gmra.mrb[68].mxu0 %v830_v5 }
 0x17a   :  { %v600_v57 = vpop.f32.mrb[76].mxu1  ;;  %2136 = vmatprep.mubr.msk.bf16.mxu0 %vm2607_vm2, %v4068_v24  ;;  %2474 = vtanh.bf16 %v4093_v22 }
 0x17b   :  { %v2054_v4 = vpop.f32.mrb[77].mxu1  ;;  %2476 = vtanh.bf16 %v4094_v41  ;;  %v601_v63 = vadd.f32 %v600_v57, %v3188_v17 }
 0x17c   :  { %v2467_v58 = vpop.eup %2466  ;;  %v603_v53 = vpop.f32.mrb[78].mxu1 }
 0x17d   :  { %v604_v26 = vadd.f32 %v603_v53, %v3188_v17  ;;  %v2055_v44 = vpop.f32.mrb[79].mxu1  ;;  %v812_v3 = vmul.bf16 %v2467_v58, %v3385_v43  ;;  %v2469_v2 = vpop.eup %2468 }
 0x17e   :  { %v3397_v23 = vpop.eup %2470  ;;  %v4101_v44 = vld [vmem:[#allocation5_spill] sm:$0xff] }
 0x17f   :  { %v757_v20 = vpack.c.bf16 %v604_v26, %v601_v63  ;;  %v831_v62 = vadd.bf16 %v3380_v21, %v812_v3  ;;  %v3402_v60 = vsub.bf16 %v2469_v2, %v3397_v23  ;;  %v4102_v3 = vld [vmem:[#allocation4_spill] sm:$0xff] }
 0x180   :  { %v4103_v2 = vpack.c.bf16 %v4101_v44, %v4102_v3 }
 0x181   :  { %2478 = vtanh.bf16 %v757_v20  ;;  %2137 = vmatmul.mubr.bf16.gmra.mrb[72].mxu0 %v831_v62  ;;  %v4104_v62 = vld [vmem:[#allocation7_spill] sm:$0xff] }
 0x182   :  { %v608_v55 = vpop.f32.mrb[80].mxu1  ;;  %2140 = vmatprep.mubr.msk.bf16.mxu0 %vm2607_vm2, %v4068_v24  ;;  %2480 = vtanh.bf16 %v4095_v48 }
 0x183   :  { %v2058_v56 = vpop.f32.mrb[81].mxu1  ;;  %2482 = vtanh.bf16 %v4096_v49  ;;  %v609_v14 = vadd.f32 %v608_v55, %v3188_v17  ;;  %v4105_v55 = vld [vmem:[#allocation6_spill] sm:$0xff] }
 0x184   :  { %v2473_v61 = vpop.eup %2472  ;;  %v611_v54 = vpop.f32.mrb[82].mxu1  ;;  %v4106_v56 = vpack.c.bf16 %v4104_v62, %v4105_v55  ;;  %v4114_v62 = vld [vmem:[#allocation12_spill] sm:$0xff] }
 0x185   :  { %v612_v46 = vadd.f32 %v611_v54, %v3188_v17  ;;  %v2059_v1 = vpop.f32.mrb[83].mxu1  ;;  %v813_v52 = vmul.bf16 %v2473_v61, %v3402_v60  ;;  %v2475_v15 = vpop.eup %2474 }
 0x186   :  { %v3414_v0 = vpop.eup %2476 }
 0x187   :  { %v758_v47 = vpack.c.bf16 %v612_v46, %v609_v14  ;;  %v832_v32 = vadd.bf16 %v3397_v23, %v813_v52  ;;  %v3419_v18 = vsub.bf16 %v2475_v15, %v3414_v0 }
 0x189   :  { %2484 = vtanh.bf16 %v758_v47  ;;  %2141 = vmatmul.mubr.bf16.gmra.mrb[76].mxu0 %v832_v32 }
 0x18a   :  { %v616_v12 = vpop.f32.mrb[84].mxu1  ;;  %2144 = vmatprep.mubr.msk.bf16.mxu0 %vm2607_vm2, %v4068_v24  ;;  %2486 = vtanh.bf16 %v4097_v59  ;;  %v4108_v59 = vld [vmem:[#allocation8_spill] sm:$0xff] }
 0x18b   :  { %v2062_v13 = vpop.f32.mrb[85].mxu1  ;;  %2488 = vtanh.bf16 %v4100_v31  ;;  %v617_v40 = vadd.f32 %v616_v12, %v3188_v17  ;;  %v2405_v12 = vld [vmem:[%s4018_s3 + $0x78] sm:$0xff]   ;;  %v4111_v31 = vld [vmem:[#allocation10_spill] sm:$0xff] }
 0x18c   :  { %v2479_v19 = vpop.eup %2478  ;;  %v619_v9 = vpop.f32.mrb[86].mxu1  ;;  %2195 = vmatpush3.bf16.msra.mxu1 %v2405_v12 }
 0x18d   :  { %v620_v5 = vadd.f32 %v619_v9, %v3188_v17  ;;  %v2063_v57 = vpop.f32.mrb[87].mxu1  ;;  %v814_v4 = vmul.bf16 %v2479_v19, %v3419_v18  ;;  %v2481_v58 = vpop.eup %2480  ;;  %v4107_v19 = vld [vmem:[#allocation9_spill] sm:$0xff] }
 0x18e   :  { %v3431_v41 = vpop.eup %2482  ;;  %v4109_v9 = vpack.c.bf16 %v4107_v19, %v4108_v59 }
 0x18f   :  { %v759_v22 = vpack.c.bf16 %v620_v5, %v617_v40  ;;  %v833_v53 = vadd.bf16 %v3414_v0, %v814_v4  ;;  %v3436_v63 = vsub.bf16 %v2481_v58, %v3431_v41  ;;  %v4112_v40 = vpack.c.bf16 %v4110_v28, %v4111_v31  ;;  %v4119_v28 = vld [vmem:[#allocation17_spill] sm:$0xff]  ;;  %v4120_v31 = vld [vmem:[#allocation16_spill] sm:$0xff] }
 0x191   :  { %2490 = vtanh.bf16 %v759_v22  ;;  %2145 = vmatmul.mubr.bf16.gmra.mrb[80].mxu0 %v833_v53 }
 0x192   :  { %v624_v33 = vpop.f32.mrb[88].mxu1  ;;  %2148 = vmatprep.mubr.msk.bf16.mxu0 %vm2607_vm2, %v4068_v24  ;;  %2492 = vtanh.bf16 %v4103_v2 }
 0x193   :  { %v2066_v34 = vpop.f32.mrb[89].mxu1  ;;  %2494 = vtanh.bf16 %v4106_v56  ;;  %v625_v61 = vadd.f32 %v624_v33, %v3188_v17 }
 0x194   :  { %v2485_v26 = vpop.eup %2484  ;;  %v627_v20 = vpop.f32.mrb[90].mxu1 }
 0x195   :  { %v628_v48 = vadd.f32 %v627_v20, %v3188_v17  ;;  %v2067_v54 = vpop.f32.mrb[91].mxu1  ;;  %v815_v49 = vmul.bf16 %v2485_v26, %v3436_v63  ;;  %v2487_v14 = vpop.eup %2486  ;;  %v4113_v20 = vld [vmem:[#allocation13_spill] sm:$0xff] }
 0x196   :  { %v3448_v52 = vpop.eup %2488  ;;  %v4115_v55 = vpack.c.bf16 %v4113_v20, %v4114_v62 }
 0x197   :  { %v760_v46 = vpack.c.bf16 %v628_v48, %v625_v61  ;;  %v834_v1 = vadd.bf16 %v3431_v41, %v815_v49  ;;  %v3453_v32 = vsub.bf16 %v2487_v14, %v3448_v52  ;;  %v4116_v61 = vld [vmem:[#allocation15_spill] sm:$0xff]  ;;  %v4117_v48 = vld [vmem:[#allocation14_spill] sm:$0xff] }
 0x198   :  { %v4118_v54 = vpack.c.bf16 %v4116_v61, %v4117_v48 }
 0x199   :  { %2496 = vtanh.bf16 %v760_v46  ;;  %2149 = vmatmul.mubr.bf16.gmra.mrb[84].mxu0 %v834_v1 }
 0x19a   :  { %v632_v15 = vpop.f32.mrb[92].mxu1  ;;  %2152 = vmatprep.mubr.msk.bf16.mxu0 %vm2607_vm2, %v4068_v24  ;;  %2498 = vtanh.bf16 %v4109_v9 }
 0x19b   :  { %v2070_v47 = vpop.f32.mrb[93].mxu1  ;;  %2500 = vtanh.bf16 %v4112_v40  ;;  %v633_v5 = vadd.f32 %v632_v15, %v3188_v17  ;;  %v4121_v40 = vpack.c.bf16 %v4119_v28, %v4120_v31 }
 0x19c   :  { %v2491_v13 = vpop.eup %2490  ;;  %v635_v39 = vpop.f32.mrb[94].mxu1 }
 0x19d   :  { %v636_v57 = vadd.f32 %v635_v39, %v3188_v17  ;;  %v2071_v4 = vpop.f32.mrb[95].mxu1  ;;  %v816_v58 = vmul.bf16 %v2491_v13, %v3453_v32  ;;  %v2493_v22 = vpop.eup %2492 }
 0x19e   :  { %v3468_v34 = vpop.eup %2494  ;;  %v4123_v4 = vld [vmem:[#allocation18_spill] sm:$0xff] }
 0x19f   :  { %v761_v53 = vpack.c.bf16 %v636_v57, %v633_v5  ;;  %v835_v33 = vadd.bf16 %v3448_v52, %v816_v58  ;;  %v3473_v3 = vsub.bf16 %v2493_v22, %v3468_v34  ;;  %v4122_v57 = vld [vmem:[#allocation19_spill] sm:$0xff] }
 0x1a0   :  { %v4124_v58 = vpack.c.bf16 %v4122_v57, %v4123_v4 }
 0x1a1   :  { %2502 = vtanh.bf16 %v761_v53  ;;  %2153 = vmatmul.mubr.bf16.gmra.mrb[88].mxu0 %v835_v33 }
 0x1a2   :  { %v640_v26 = vpop.f32.mrb[96].mxu1  ;;  %2156 = vmatprep.mubr.msk.bf16.mxu0 %vm2607_vm2, %v4068_v24  ;;  %2504 = vtanh.bf16 %v4115_v55 }
 0x1a3   :  { %v2074_v44 = vpop.f32.mrb[97].mxu1  ;;  %2506 = vtanh.bf16 %v4118_v54  ;;  %v641_v49 = vadd.f32 %v640_v26, %v3188_v17  ;;  %v4125_v54 = vld [vmem:[#allocation21_spill] sm:$0xff] }
 0x1a4   :  { %v2497_v2 = vpop.eup %2496  ;;  %v643_v56 = vpop.f32.mrb[98].mxu1 }
 0x1a5   :  { %v644_v14 = vadd.f32 %v643_v56, %v3188_v17  ;;  %v2075_v46 = vpop.f32.mrb[99].mxu1  ;;  %v817_v1 = vmul.bf16 %v2497_v2, %v3473_v3  ;;  %v2499_v15 = vpop.eup %2498 }
 0x1a6   :  { %v3485_v13 = vpop.eup %2500 }
 0x1a7   :  { %v762_v47 = vpack.c.bf16 %v644_v14, %v641_v49  ;;  %v836_v12 = vadd.bf16 %v3468_v34, %v817_v1  ;;  %v3490_v9 = vsub.bf16 %v2499_v15, %v3485_v13  ;;  %v4126_v49 = vld [vmem:[#allocation20_spill] sm:$0xff]  ;;  %v4128_v1 = vld [vmem:[#allocation23_spill] sm:$0xff]  ;;  %v4129_v15 = vld [vmem:[#allocation22_spill] sm:$0xff] }
 0x1a8   :  { %v4127_v14 = vpack.c.bf16 %v4125_v54, %v4126_v49 }
 0x1a9   :  { %2508 = vtanh.bf16 %v762_v47  ;;  %2157 = vmatmul.mubr.bf16.gmra.mrb[92].mxu0 %v836_v12  ;;  %v4130_v47 = vpack.c.bf16 %v4128_v1, %v4129_v15 }
 0x1aa   :  { %v648_v19 = vpop.f32.mrb[100].mxu1  ;;  %2160 = vmatprep.mubr.msk.bf16.mxu0 %vm2607_vm2, %v4068_v24  ;;  %2510 = vtanh.bf16 %v4121_v40 }
 0x1ab   :  { %v2078_v59 = vpop.f32.mrb[101].mxu1  ;;  %2512 = vtanh.bf16 %v4124_v58  ;;  %v649_v22 = vadd.f32 %v648_v19, %v3188_v17 }
 0x1ac   :  { %v2503_v39 = vpop.eup %2502  ;;  %v651_v5 = vpop.f32.mrb[102].mxu1 }
 0x1ad   :  { %v652_v53 = vadd.f32 %v651_v5, %v3188_v17  ;;  %v2079_v33 = vpop.f32.mrb[103].mxu1  ;;  %v818_v26 = vmul.bf16 %v2503_v39, %v3490_v9  ;;  %v2505_v44 = vpop.eup %2504 }
 0x1ae   :  { %v3502_v62 = vpop.eup %2506 }
 0x1af   :  { %v763_v2 = vpack.c.bf16 %v652_v53, %v649_v22  ;;  %v837_v20 = vadd.bf16 %v3485_v13, %v818_v26  ;;  %v3507_v61 = vsub.bf16 %v2505_v44, %v3502_v62  ;;  %v4131_v53 = vpack.c.bf16 %v3165_v37, %v3162_v51  ;;  %v4132_v26 = vld [vmem:[#allocation25_spill] sm:$0xff]  ;;  %v4133_v44 = vld [vmem:[#allocation24_spill] sm:$0xff] }
 0x1b1   :  { %2514 = vtanh.bf16 %v763_v2  ;;  %2161 = vmatmul.mubr.bf16.gmra.mrb[96].mxu0 %v837_v20  ;;  %v4134_v2 = vpack.c.bf16 %v4132_v26, %v4133_v44 }
 0x1b2   :  { %v656_v55 = vpop.f32.mrb[104].mxu1  ;;  %2164 = vmatprep.mubr.msk.bf16.mxu0 %vm2607_vm2, %v4068_v24  ;;  %2516 = vtanh.bf16 %v4127_v14 }
 0x1b3   :  { %v2082_v56 = vpop.f32.mrb[105].mxu1  ;;  %2518 = vtanh.bf16 %v4130_v47  ;;  %v657_v12 = vadd.f32 %v656_v55, %v3188_v17 }
 0x1b4   :  { %v2509_v48 = vpop.eup %2508  ;;  %v659_v46 = vpop.f32.mrb[106].mxu1 }
 0x1b5   :  { %v660_v19 = vadd.f32 %v659_v46, %v3188_v17  ;;  %v2083_v59 = vpop.f32.mrb[107].mxu1  ;;  %v819_v39 = vmul.bf16 %v2509_v48, %v3507_v61  ;;  %v2511_v28 = vpop.eup %2510 }
 0x1b6   :  { %v3519_v5 = vpop.eup %2512 }
 0x1b7   :  { %v764_v31 = vpack.c.bf16 %v660_v19, %v657_v12  ;;  %v838_v40 = vadd.bf16 %v3502_v62, %v819_v39  ;;  %v3524_v58 = vsub.bf16 %v2511_v28, %v3519_v5  ;;  %v2406_v28 = vld [vmem:[%s4020_s5] sm:$0xff]  }
 0x1b8   :  { %2273 = vmatpush3.bf16.msra.mxu0 %v2406_v28 }
 0x1b9   :  { %2520 = vtanh.bf16 %v764_v31  ;;  %2165 = vmatmul.mubr.bf16.gmra.mrb[100].mxu0 %v838_v40  ;;  %2274 = vmatprep.subr.bf16.mxu0 %v4068_v24  ;;  %v2407_v31 = vld [vmem:[%s4020_s5 + $0x8] sm:$0xff]   ;;  %v3566_v40 = vld [vmem:[%s4021_s4] ss:$0 sm:$0xff] }
 0x1ba   :  { %v664_v57 = vpop.f32.mrb[108].mxu1  ;;  %2168 = vmatprep.mubr.msk.bf16.mxu0 %vm2607_vm2, %v4068_v24  ;;  %2522 = vtanh.bf16 %v4131_v53 }
 0x1bb   :  { %v2086_v4 = vpop.f32.mrb[109].mxu1  ;;  %2524 = vtanh.bf16 %v4134_v2  ;;  %v665_v20 = vadd.f32 %v664_v57, %v3188_v17 }
 0x1bc   :  { %v2515_v22 = vpop.eup %2514  ;;  %v667_v33 = vpop.f32.mrb[110].mxu1  ;;  %2275 = vmatpush3.bf16.msra.mxu0 %v2407_v31 }
 0x1bd   :  { %v668_v55 = vadd.f32 %v667_v33, %v3188_v17  ;;  %v2087_v56 = vpop.f32.mrb[111].mxu1  ;;  %v820_v48 = vmul.bf16 %v2515_v22, %v3524_v58  ;;  %v2517_v54 = vpop.eup %2516  ;;  %2276 = vmatprep.subr.bf16.mxu0 %v4068_v24 }
 0x1be   :  { %v3536_v46 = vpop.eup %2518 }
 0x1bf   :  { %v765_v49 = vpack.c.bf16 %v668_v55, %v665_v20  ;;  %v839_v14 = vadd.bf16 %v3519_v5, %v820_v48  ;;  %v3541_v51 = vsub.bf16 %v2517_v54, %v3536_v46 }
 0x1c1   :  { %2526 = vtanh.bf16 %v765_v49  ;;  %2169 = vmatmul.mubr.bf16.gmra.mrb[104].mxu0 %v839_v14 }
 0x1c2   :  { %2172 = vmatprep.mubr.msk.bf16.mxu0 %vm2607_vm2, %v4068_v24 }
 0x1c4   :  { %v2521_v37 = vpop.eup %2520 }
 0x1c5   :  { %v821_v17 = vmul.bf16 %v2521_v37, %v3541_v51  ;;  %v2523_v1 = vpop.eup %2522 }
 0x1c6   :  { %v3545_v47 = vpop.eup %2524 }
 0x1c7   :  { %v840_v15 = vadd.bf16 %v3536_v46, %v821_v17  ;;  %v3550_v12 = vsub.bf16 %v2523_v1, %v3545_v47  ;;  %v2408_v17 = vld [vmem:[%s4020_s5 + $0x10] sm:$0xff]  }
 0x1c8   :  { %2277 = vmatpush3.bf16.msra.mxu0 %v2408_v17 }
 0x1c9   :  { %2173 = vmatmul.mubr.bf16.gmra.mrb[108].mxu0 %v840_v15  ;;  %2278 = vmatprep.subr.bf16.mxu0 %v4068_v24 }
 0x1ca   :  { %2176 = vmatprep.mubr.msk.bf16.mxu0 %vm2607_vm2, %v4068_v24 }
 0x1cc   :  { %v2527_v19 = vpop.eup %2526 }
 0x1cd   :  { %v822_v59 = vmul.bf16 %v2527_v19, %v3550_v12 }
 0x1cf   :  { %v841_v39 = vadd.bf16 %v3545_v47, %v822_v59 }
 0x1d1   :  { %2177 = vmatmul.mubr.bf16.gmra.mrb[112].mxu0 %v841_v39 }
 0x1d2   :  { %2288 = vmatprep.mubr.msk.bf16.mxu0 %vm2607_vm2, %v4068_v24 }
 0x214   :  { %v947_v57 = vpop.f32.mrb[40].mxu0 }
 0x215   :  { %v2106_v4 = vpop.f32.mrb[41].mxu0  ;;  %v948_v53 = vadd.f32 %v3566_v40, %v947_v57 }
 0x216   :  { %v950_v22 = vpop.f32.mrb[42].mxu0 }
 0x217   :  { %v951_v33 = vadd.f32 %v3566_v40, %v950_v22  ;;  %v2107_v26 = vpop.f32.mrb[43].mxu0 }
 0x219   :  { %v1098_v44 = vpack.c.bf16 %v951_v33, %v948_v53 }
 0x21b   :  { %2528 = vtanh.bf16 %v1098_v44 }
 0x21c   :  { %v955_v2 = vpop.f32.mrb[44].mxu0 }
 0x21d   :  { %v2110_v20 = vpop.f32.mrb[45].mxu0  ;;  %v956_v56 = vadd.f32 %v3566_v40, %v955_v2 }
 0x21e   :  { %v958_v55 = vpop.f32.mrb[46].mxu0 }
 0x21f   :  { %v959_v48 = vadd.f32 %v3566_v40, %v958_v55  ;;  %v2111_v54 = vpop.f32.mrb[47].mxu0 }
 0x221   :  { %v1099_v49 = vpack.c.bf16 %v959_v48, %v956_v56  ;;  %v2409_v48 = vld [vmem:[%s4020_s5 + $0x18] sm:$0xff]  }
 0x222   :  { %2279 = vmatpush3.bf16.msra.mxu0 %v2409_v48 }
 0x223   :  { %2530 = vtanh.bf16 %v1099_v49  ;;  %2280 = vmatprep.subr.bf16.mxu0 %v4068_v24 }
 0x224   :  { %v963_v14 = vpop.f32.mrb[48].mxu0 }
 0x225   :  { %v2114_v37 = vpop.f32.mrb[49].mxu0  ;;  %v964_v19 = vadd.f32 %v3566_v40, %v963_v14 }
 0x226   :  { %v2529_v1 = vpop.eup %2528  ;;  %v966_v15 = vpop.f32.mrb[50].mxu0 }
 0x227   :  { %v967_v59 = vadd.f32 %v3566_v40, %v966_v15  ;;  %v2115_v39 = vpop.f32.mrb[51].mxu0  ;;  %v1136_v28 = vmul.bf16 %v2529_v1, %v3229_v7 }
 0x229   :  { %v1100_v31 = vpack.c.bf16 %v967_v59, %v964_v19  ;;  %v1155_v57 = vadd.bf16 %v3226_v50, %v1136_v28  ;;  %v2410_v28 = vld [vmem:[%s4020_s5 + $0x20] sm:$0xff]  }
 0x22a   :  { %2281 = vmatpush3.bf16.msra.mxu0 %v2410_v28 }
 0x22b   :  { %2532 = vtanh.bf16 %v1100_v31  ;;  %2197 = vmatmul.mubr.bf16.vlgmr.msra.gmra.mrb[112].mxu1 %v1155_v57  ;;  %2282 = vmatprep.subr.bf16.mxu0 %v4068_v24 }
 0x22c   :  { %v971_v4 = vpop.f32.mrb[52].mxu0  ;;  %2200 = vmatprep.mubr.msk.bf16.mxu1 %vm2607_vm2, %v4068_v24 }
 0x22d   :  { %v2118_v22 = vpop.f32.mrb[53].mxu0  ;;  %v972_v26 = vadd.f32 %v3566_v40, %v971_v4  ;;  %v2411_v4 = vld [vmem:[%s4020_s5 + $0x28] sm:$0xff]  }
 0x22e   :  { %v2531_v53 = vpop.eup %2530  ;;  %v974_v33 = vpop.f32.mrb[54].mxu0  ;;  %2283 = vmatpush3.bf16.msra.mxu0 %v2411_v4 }
 0x22f   :  { %v975_v44 = vadd.f32 %v3566_v40, %v974_v33  ;;  %v2119_v2 = vpop.f32.mrb[55].mxu0  ;;  %v1137_v20 = vmul.bf16 %v2531_v53, %v3250_v8  ;;  %2284 = vmatprep.subr.bf16.mxu0 %v4068_v24 }
 0x231   :  { %v1101_v55 = vpack.c.bf16 %v975_v44, %v972_v26  ;;  %v1156_v56 = vadd.bf16 %v3245_v36, %v1137_v20 }
 0x233   :  { %2534 = vtanh.bf16 %v1101_v55  ;;  %2201 = vmatmul.mubr.bf16.gmra.mrb[116].mxu1 %v1156_v56  ;;  %v2412_v56 = vld [vmem:[%s4020_s5 + $0x30] sm:$0xff]  }
 0x234   :  { %v979_v54 = vpop.f32.mrb[56].mxu0  ;;  %2204 = vmatprep.mubr.msk.bf16.mxu1 %vm2607_vm2, %v4068_v24  ;;  %2285 = vmatpush3.bf16.msra.mxu0 %v2412_v56 }
 0x235   :  { %v2122_v49 = vpop.f32.mrb[57].mxu0  ;;  %v980_v17 = vadd.f32 %v3566_v40, %v979_v54  ;;  %2286 = vmatprep.subr.bf16.mxu0 %v4068_v24 }
 0x236   :  { %v2533_v14 = vpop.eup %2532  ;;  %v982_v37 = vpop.f32.mrb[58].mxu0 }
 0x237   :  { %v983_v1 = vadd.f32 %v3566_v40, %v982_v37  ;;  %v2123_v15 = vpop.f32.mrb[59].mxu0  ;;  %v1138_v19 = vmul.bf16 %v2533_v14, %v3270_v25 }
 0x239   :  { %v1102_v59 = vpack.c.bf16 %v983_v1, %v980_v17  ;;  %v1157_v39 = vadd.bf16 %v3262_v38, %v1138_v19 }
 0x23b   :  { %2536 = vtanh.bf16 %v1102_v59  ;;  %2205 = vmatmul.mubr.bf16.gmra.mrb[120].mxu1 %v1157_v39 }
 0x23c   :  { %v987_v31 = vpop.f32.mrb[60].mxu0  ;;  %2208 = vmatprep.mubr.msk.bf16.mxu1 %vm2607_vm2, %v4068_v24 }
 0x23d   :  { %v2126_v57 = vpop.f32.mrb[61].mxu0  ;;  %v988_v33 = vadd.f32 %v3566_v40, %v987_v31 }
 0x23e   :  { %v2535_v22 = vpop.eup %2534  ;;  %v990_v53 = vpop.f32.mrb[62].mxu0 }
 0x23f   :  { %v991_v26 = vadd.f32 %v3566_v40, %v990_v53  ;;  %v2127_v44 = vpop.f32.mrb[63].mxu0  ;;  %v1139_v2 = vmul.bf16 %v2535_v22, %v3291_v45 }
 0x241   :  { %v1103_v20 = vpack.c.bf16 %v991_v26, %v988_v33  ;;  %v1158_v55 = vadd.bf16 %v3283_v29, %v1139_v2 }
 0x243   :  { %2538 = vtanh.bf16 %v1103_v20  ;;  %2209 = vmatmul.mubr.bf16.gmra.mrb[124].mxu1 %v1158_v55 }
 0x244   :  { %v995_v48 = vpop.f32.mrb[64].mxu0  ;;  %2212 = vmatprep.mubr.msk.bf16.mxu1 %vm2607_vm2, %v4068_v24 }
 0x245   :  { %v2130_v54 = vpop.f32.mrb[65].mxu0  ;;  %v996_v37 = vadd.f32 %v3566_v40, %v995_v48 }
 0x246   :  { %v2537_v49 = vpop.eup %2536  ;;  %v998_v14 = vpop.f32.mrb[66].mxu0 }
 0x247   :  { %v999_v17 = vadd.f32 %v3566_v40, %v998_v14  ;;  %v2131_v1 = vpop.f32.mrb[67].mxu0  ;;  %v1140_v15 = vmul.bf16 %v2537_v49, %v3316_v10 }
 0x249   :  { %v1104_v19 = vpack.c.bf16 %v999_v17, %v996_v37  ;;  %v1159_v59 = vadd.bf16 %v3310_v11, %v1140_v15 }
 0x24b   :  { %2540 = vtanh.bf16 %v1104_v19  ;;  %2213 = vmatmul.mubr.bf16.gmra.mrb[128].mxu1 %v1159_v59 }
 0x24c   :  { %v1003_v39 = vpop.f32.mrb[68].mxu0  ;;  %2216 = vmatprep.mubr.msk.bf16.mxu1 %vm2607_vm2, %v4068_v24 }
 0x24d   :  { %v2134_v28 = vpop.f32.mrb[69].mxu0  ;;  %v1004_v4 = vadd.f32 %v3566_v40, %v1003_v39 }
 0x24e   :  { %v2539_v31 = vpop.eup %2538  ;;  %v1006_v57 = vpop.f32.mrb[70].mxu0 }
 0x24f   :  { %v1007_v22 = vadd.f32 %v3566_v40, %v1006_v57  ;;  %v2135_v53 = vpop.f32.mrb[71].mxu0  ;;  %v1141_v33 = vmul.bf16 %v2539_v31, %v3334_v27 }
 0x251   :  { %v1105_v26 = vpack.c.bf16 %v1007_v22, %v1004_v4  ;;  %v1160_v44 = vadd.bf16 %v3329_v42, %v1141_v33 }
 0x253   :  { %2542 = vtanh.bf16 %v1105_v26  ;;  %2217 = vmatmul.mubr.bf16.gmra.mrb[132].mxu1 %v1160_v44 }
 0x254   :  { %v1011_v2 = vpop.f32.mrb[72].mxu0  ;;  %2220 = vmatprep.mubr.msk.bf16.mxu1 %vm2607_vm2, %v4068_v24 }
 0x255   :  { %v2138_v20 = vpop.f32.mrb[73].mxu0  ;;  %v1012_v48 = vadd.f32 %v3566_v40, %v1011_v2 }
 0x256   :  { %v2541_v55 = vpop.eup %2540  ;;  %v1014_v56 = vpop.f32.mrb[74].mxu0 }
 0x257   :  { %v1015_v54 = vadd.f32 %v3566_v40, %v1014_v56  ;;  %v2139_v49 = vpop.f32.mrb[75].mxu0  ;;  %v1142_v14 = vmul.bf16 %v2541_v55, %v3351_v35 }
 0x259   :  { %v1106_v37 = vpack.c.bf16 %v1015_v54, %v1012_v48  ;;  %v1161_v17 = vadd.bf16 %v3346_v16, %v1142_v14 }
 0x25b   :  { %2544 = vtanh.bf16 %v1106_v37  ;;  %2221 = vmatmul.mubr.bf16.gmra.mrb[136].mxu1 %v1161_v17 }
 0x25c   :  { %v1019_v1 = vpop.f32.mrb[76].mxu0  ;;  %2224 = vmatprep.mubr.msk.bf16.mxu1 %vm2607_vm2, %v4068_v24 }
 0x25d   :  { %v2142_v15 = vpop.f32.mrb[77].mxu0  ;;  %v1020_v39 = vadd.f32 %v3566_v40, %v1019_v1 }
 0x25e   :  { %v2543_v19 = vpop.eup %2542  ;;  %v1022_v59 = vpop.f32.mrb[78].mxu0 }
 0x25f   :  { %v1023_v28 = vadd.f32 %v3566_v40, %v1022_v59  ;;  %v2143_v31 = vpop.f32.mrb[79].mxu0  ;;  %v1143_v57 = vmul.bf16 %v2543_v19, %v3368_v6 }
 0x261   :  { %v1107_v4 = vpack.c.bf16 %v1023_v28, %v1020_v39  ;;  %v1162_v22 = vadd.bf16 %v3363_v30, %v1143_v57 }
 0x263   :  { %2546 = vtanh.bf16 %v1107_v4  ;;  %2225 = vmatmul.mubr.bf16.gmra.mrb[140].mxu1 %v1162_v22 }
 0x264   :  { %v1027_v53 = vpop.f32.mrb[80].mxu0  ;;  %2228 = vmatprep.mubr.msk.bf16.mxu1 %vm2607_vm2, %v4068_v24 }
 0x265   :  { %v2146_v33 = vpop.f32.mrb[81].mxu0  ;;  %v1028_v2 = vadd.f32 %v3566_v40, %v1027_v53 }
 0x266   :  { %v2545_v26 = vpop.eup %2544  ;;  %v1030_v44 = vpop.f32.mrb[82].mxu0 }
 0x267   :  { %v1031_v20 = vadd.f32 %v3566_v40, %v1030_v44  ;;  %v2147_v55 = vpop.f32.mrb[83].mxu0  ;;  %v1144_v56 = vmul.bf16 %v2545_v26, %v3385_v43 }
 0x269   :  { %v1108_v48 = vpack.c.bf16 %v1031_v20, %v1028_v2  ;;  %v1163_v54 = vadd.bf16 %v3380_v21, %v1144_v56 }
 0x26b   :  { %2548 = vtanh.bf16 %v1108_v48  ;;  %2229 = vmatmul.mubr.bf16.gmra.mrb[144].mxu1 %v1163_v54 }
 0x26c   :  { %v1035_v49 = vpop.f32.mrb[84].mxu0  ;;  %2232 = vmatprep.mubr.msk.bf16.mxu1 %vm2607_vm2, %v4068_v24 }
 0x26d   :  { %v2150_v14 = vpop.f32.mrb[85].mxu0  ;;  %v1036_v1 = vadd.f32 %v3566_v40, %v1035_v49 }
 0x26e   :  { %v2547_v37 = vpop.eup %2546  ;;  %v1038_v17 = vpop.f32.mrb[86].mxu0 }
 0x26f   :  { %v1039_v15 = vadd.f32 %v3566_v40, %v1038_v17  ;;  %v2151_v19 = vpop.f32.mrb[87].mxu0  ;;  %v1145_v59 = vmul.bf16 %v2547_v37, %v3402_v60 }
 0x271   :  { %v1109_v39 = vpack.c.bf16 %v1039_v15, %v1036_v1  ;;  %v1164_v28 = vadd.bf16 %v3397_v23, %v1145_v59 }
 0x273   :  { %2550 = vtanh.bf16 %v1109_v39  ;;  %2233 = vmatmul.mubr.bf16.gmra.mrb[148].mxu1 %v1164_v28  ;;  %v2413_v39 = vld [vmem:[%s4020_s5 + $0x38] sm:$0xff]  }
 0x274   :  { %v1043_v31 = vpop.f32.mrb[88].mxu0  ;;  %2236 = vmatprep.mubr.msk.bf16.mxu1 %vm2607_vm2, %v4068_v24  ;;  %2287 = vmatpush3.bf16.msra.mxu0 %v2413_v39 }
 0x275   :  { %v2154_v57 = vpop.f32.mrb[89].mxu0  ;;  %v1044_v53 = vadd.f32 %v3566_v40, %v1043_v31 }
 0x276   :  { %v2549_v4 = vpop.eup %2548  ;;  %v1046_v22 = vpop.f32.mrb[90].mxu0 }
 0x277   :  { %v1047_v33 = vadd.f32 %v3566_v40, %v1046_v22  ;;  %v2155_v26 = vpop.f32.mrb[91].mxu0  ;;  %v1146_v44 = vmul.bf16 %v2549_v4, %v3419_v18 }
 0x279   :  { %v1110_v2 = vpack.c.bf16 %v1047_v33, %v1044_v53  ;;  %v1165_v20 = vadd.bf16 %v3414_v0, %v1146_v44 }
 0x27b   :  { %2552 = vtanh.bf16 %v1110_v2  ;;  %2237 = vmatmul.mubr.bf16.gmra.mrb[152].mxu1 %v1165_v20 }
 0x27c   :  { %v1051_v55 = vpop.f32.mrb[92].mxu0  ;;  %2240 = vmatprep.mubr.msk.bf16.mxu1 %vm2607_vm2, %v4068_v24 }
 0x27d   :  { %v2158_v56 = vpop.f32.mrb[93].mxu0  ;;  %v1052_v49 = vadd.f32 %v3566_v40, %v1051_v55 }
 0x27e   :  { %v2551_v48 = vpop.eup %2550  ;;  %v1054_v54 = vpop.f32.mrb[94].mxu0 }
 0x27f   :  { %v1055_v14 = vadd.f32 %v3566_v40, %v1054_v54  ;;  %v2159_v37 = vpop.f32.mrb[95].mxu0  ;;  %v1147_v17 = vmul.bf16 %v2551_v48, %v3436_v63 }
 0x281   :  { %v1111_v1 = vpack.c.bf16 %v1055_v14, %v1052_v49  ;;  %v1166_v15 = vadd.bf16 %v3431_v41, %v1147_v17 }
 0x283   :  { %2554 = vtanh.bf16 %v1111_v1  ;;  %2241 = vmatmul.mubr.bf16.gmra.mrb[156].mxu1 %v1166_v15 }
 0x284   :  { %v1059_v19 = vpop.f32.mrb[96].mxu0  ;;  %2244 = vmatprep.mubr.msk.bf16.mxu1 %vm2607_vm2, %v4068_v24 }
 0x285   :  { %v2162_v59 = vpop.f32.mrb[97].mxu0  ;;  %v1060_v57 = vadd.f32 %v3566_v40, %v1059_v19 }
 0x286   :  { %v2553_v28 = vpop.eup %2552  ;;  %v1062_v31 = vpop.f32.mrb[98].mxu0 }
 0x287   :  { %v1063_v4 = vadd.f32 %v3566_v40, %v1062_v31  ;;  %v2163_v22 = vpop.f32.mrb[99].mxu0  ;;  %v1148_v53 = vmul.bf16 %v2553_v28, %v3453_v32 }
 0x289   :  { %v1112_v33 = vpack.c.bf16 %v1063_v4, %v1060_v57  ;;  %v1167_v26 = vadd.bf16 %v3448_v52, %v1148_v53 }
 0x28b   :  { %2556 = vtanh.bf16 %v1112_v33  ;;  %2245 = vmatmul.mubr.bf16.gmra.mrb[160].mxu1 %v1167_v26 }
 0x28c   :  { %v1067_v44 = vpop.f32.mrb[100].mxu0  ;;  %2248 = vmatprep.mubr.msk.bf16.mxu1 %vm2607_vm2, %v4068_v24 }
 0x28d   :  { %v2166_v2 = vpop.f32.mrb[101].mxu0  ;;  %v1068_v56 = vadd.f32 %v3566_v40, %v1067_v44 }
 0x28e   :  { %v2555_v20 = vpop.eup %2554  ;;  %v1070_v55 = vpop.f32.mrb[102].mxu0 }
 0x28f   :  { %v1071_v48 = vadd.f32 %v3566_v40, %v1070_v55  ;;  %v2167_v54 = vpop.f32.mrb[103].mxu0  ;;  %v1149_v49 = vmul.bf16 %v2555_v20, %v3473_v3 }
 0x291   :  { %v1113_v14 = vpack.c.bf16 %v1071_v48, %v1068_v56  ;;  %v1168_v37 = vadd.bf16 %v3468_v34, %v1149_v49 }
 0x293   :  { %2558 = vtanh.bf16 %v1113_v14  ;;  %2249 = vmatmul.mubr.bf16.gmra.mrb[164].mxu1 %v1168_v37 }
 0x294   :  { %v1075_v17 = vpop.f32.mrb[104].mxu0  ;;  %2252 = vmatprep.mubr.msk.bf16.mxu1 %vm2607_vm2, %v4068_v24 }
 0x295   :  { %v2170_v1 = vpop.f32.mrb[105].mxu0  ;;  %v1076_v59 = vadd.f32 %v3566_v40, %v1075_v17 }
 0x296   :  { %v2557_v15 = vpop.eup %2556  ;;  %v1078_v19 = vpop.f32.mrb[106].mxu0 }
 0x297   :  { %v1079_v39 = vadd.f32 %v3566_v40, %v1078_v19  ;;  %v2171_v28 = vpop.f32.mrb[107].mxu0  ;;  %v1150_v31 = vmul.bf16 %v2557_v15, %v3490_v9 }
 0x299   :  { %v1114_v57 = vpack.c.bf16 %v1079_v39, %v1076_v59  ;;  %v1169_v4 = vadd.bf16 %v3485_v13, %v1150_v31 }
 0x29b   :  { %2560 = vtanh.bf16 %v1114_v57  ;;  %2253 = vmatmul.mubr.bf16.gmra.mrb[168].mxu1 %v1169_v4 }
 0x29c   :  { %v1083_v22 = vpop.f32.mrb[108].mxu0  ;;  %2256 = vmatprep.mubr.msk.bf16.mxu1 %vm2607_vm2, %v4068_v24 }
 0x29d   :  { %v2174_v53 = vpop.f32.mrb[109].mxu0  ;;  %v1084_v44 = vadd.f32 %v3566_v40, %v1083_v22 }
 0x29e   :  { %v2559_v33 = vpop.eup %2558  ;;  %v1086_v26 = vpop.f32.mrb[110].mxu0  ;;  %v3707_v53 = vld [vmem:[%s4021_s4 + $0x1] ss:$0 sm:$0xff] }
 0x29f   :  { %v1087_v2 = vadd.f32 %v3566_v40, %v1086_v26  ;;  %v2175_v20 = vpop.f32.mrb[111].mxu0  ;;  %v1151_v55 = vmul.bf16 %v2559_v33, %v3507_v61 }
 0x2a1   :  { %v1115_v56 = vpack.c.bf16 %v1087_v2, %v1084_v44  ;;  %v1170_v48 = vadd.bf16 %v3502_v62, %v1151_v55 }
 0x2a3   :  { %2562 = vtanh.bf16 %v1115_v56  ;;  %2257 = vmatmul.mubr.bf16.gmra.mrb[172].mxu1 %v1170_v48 }
 0x2a4   :  { %v1091_v54 = vpop.f32.mrb[112].mxu0  ;;  %2260 = vmatprep.mubr.msk.bf16.mxu1 %vm2607_vm2, %v4068_v24 }
 0x2a5   :  { %v2178_v49 = vpop.f32.mrb[113].mxu0  ;;  %v1092_v17 = vadd.f32 %v3566_v40, %v1091_v54 }
 0x2a6   :  { %v2561_v14 = vpop.eup %2560  ;;  %v1094_v37 = vpop.f32.mrb[114].mxu0 }
 0x2a7   :  { %v1095_v1 = vadd.f32 %v3566_v40, %v1094_v37  ;;  %v2179_v15 = vpop.f32.mrb[115].mxu0  ;;  %v1152_v19 = vmul.bf16 %v2561_v14, %v3524_v58 }
 0x2a9   :  { %v1116_v59 = vpack.c.bf16 %v1095_v1, %v1092_v17  ;;  %v1171_v39 = vadd.bf16 %v3519_v5, %v1152_v19 }
 0x2ab   :  { %2564 = vtanh.bf16 %v1116_v59  ;;  %2261 = vmatmul.mubr.bf16.gmra.mrb[176].mxu1 %v1171_v39 }
 0x2ac   :  { %2264 = vmatprep.mubr.msk.bf16.mxu1 %vm2607_vm2, %v4068_v24 }
 0x2ae   :  { %v2563_v28 = vpop.eup %2562 }
 0x2af   :  { %v1153_v31 = vmul.bf16 %v2563_v28, %v3541_v51 }
 0x2b1   :  { %v1172_v57 = vadd.bf16 %v3536_v46, %v1153_v31 }
 0x2b3   :  { %2265 = vmatmul.mubr.bf16.gmra.mrb[180].mxu1 %v1172_v57 }
 0x2b4   :  { %2268 = vmatprep.mubr.msk.bf16.mxu1 %vm2607_vm2, %v4068_v24 }
 0x2b6   :  { %v2565_v40 = vpop.eup %2564 }
 0x2b7   :  { %v1154_v4 = vmul.bf16 %v2565_v40, %v3550_v12 }
 0x2b9   :  { %v1173_v22 = vadd.bf16 %v3545_v47, %v1154_v4 }
 0x2bb   :  { %2269 = vmatmul.mubr.bf16.gmra.mrb[184].mxu1 %v1173_v22 }
 0x2fe   :  { %v1281_v33 = vpop.f32.mrb[112].mxu1 }
 0x2ff   :  { %v2198_v26 = vpop.f32.mrb[113].mxu1  ;;  %v1282_v2 = vadd.f32 %v3707_v53, %v1281_v33 }
 0x300   :  { %v1284_v44 = vpop.f32.mrb[114].mxu1 }
 0x301   :  { %v1285_v20 = vadd.f32 %v3707_v53, %v1284_v44  ;;  %v2199_v55 = vpop.f32.mrb[115].mxu1 }
 0x303   :  { %v1432_v56 = vpack.c.bf16 %v1285_v20, %v1282_v2 }
 0x305   :  { %2566 = vtanh.bf16 %v1432_v56 }
 0x306   :  { %v1289_v48 = vpop.f32.mrb[116].mxu1 }
 0x307   :  { %v2202_v54 = vpop.f32.mrb[117].mxu1  ;;  %v1290_v14 = vadd.f32 %v3707_v53, %v1289_v48 }
 0x308   :  { %v1292_v49 = vpop.f32.mrb[118].mxu1 }
 0x309   :  { %v1293_v37 = vadd.f32 %v3707_v53, %v1292_v49  ;;  %v2203_v17 = vpop.f32.mrb[119].mxu1 }
 0x30b   :  { %v1433_v1 = vpack.c.bf16 %v1293_v37, %v1290_v14 }
 0x30d   :  { %2568 = vtanh.bf16 %v1433_v1 }
 0x30e   :  { %v1297_v15 = vpop.f32.mrb[120].mxu1 }
 0x30f   :  { %v2206_v19 = vpop.f32.mrb[121].mxu1  ;;  %v1298_v28 = vadd.f32 %v3707_v53, %v1297_v15 }
 0x310   :  { %v2567_v59 = vpop.eup %2566  ;;  %v1300_v39 = vpop.f32.mrb[122].mxu1 }
 0x311   :  { %v1301_v31 = vadd.f32 %v3707_v53, %v1300_v39  ;;  %v2207_v57 = vpop.f32.mrb[123].mxu1  ;;  %v1470_v40 = vmul.bf16 %v2567_v59, %v3229_v7 }
 0x313   :  { %v1434_v4 = vpack.c.bf16 %v1301_v31, %v1298_v28  ;;  %v1489_v22 = vadd.bf16 %v3226_v50, %v1470_v40 }
 0x315   :  { %2570 = vtanh.bf16 %v1434_v4  ;;  %2289 = vmatmul.mubr.bf16.vlgmr.msra.gmra.mrb[116].mxu0 %v1489_v22 }
 0x316   :  { %v1305_v33 = vpop.f32.mrb[124].mxu1  ;;  %2292 = vmatprep.mubr.msk.bf16.mxu0 %vm2607_vm2, %v4068_v24 }
 0x317   :  { %v2210_v26 = vpop.f32.mrb[125].mxu1  ;;  %v1306_v20 = vadd.f32 %v3707_v53, %v1305_v33 }
 0x318   :  { %v2569_v44 = vpop.eup %2568  ;;  %v1308_v2 = vpop.f32.mrb[126].mxu1 }
 0x319   :  { %v1309_v55 = vadd.f32 %v3707_v53, %v1308_v2  ;;  %v2211_v56 = vpop.f32.mrb[127].mxu1  ;;  %v1471_v48 = vmul.bf16 %v2569_v44, %v3250_v8 }
 0x31b   :  { %v1435_v7 = vpack.c.bf16 %v1309_v55, %v1306_v20  ;;  %v1490_v54 = vadd.bf16 %v3245_v36, %v1471_v48 }
 0x31d   :  { %2572 = vtanh.bf16 %v1435_v7  ;;  %2293 = vmatmul.mubr.bf16.gmra.mrb[120].mxu0 %v1490_v54 }
 0x31e   :  { %v1313_v50 = vpop.f32.mrb[128].mxu1  ;;  %2296 = vmatprep.mubr.msk.bf16.mxu0 %vm2607_vm2, %v4068_v24 }
 0x31f   :  { %v2214_v49 = vpop.f32.mrb[129].mxu1  ;;  %v1314_v17 = vadd.f32 %v3707_v53, %v1313_v50 }
 0x320   :  { %v2571_v14 = vpop.eup %2570  ;;  %v1316_v37 = vpop.f32.mrb[130].mxu1 }
 0x321   :  { %v1317_v1 = vadd.f32 %v3707_v53, %v1316_v37  ;;  %v2215_v15 = vpop.f32.mrb[131].mxu1  ;;  %v1472_v19 = vmul.bf16 %v2571_v14, %v3270_v25 }
 0x323   :  { %v1436_v8 = vpack.c.bf16 %v1317_v1, %v1314_v17  ;;  %v1491_v59 = vadd.bf16 %v3262_v38, %v1472_v19 }
 0x325   :  { %2574 = vtanh.bf16 %v1436_v8  ;;  %2297 = vmatmul.mubr.bf16.gmra.mrb[124].mxu0 %v1491_v59 }
 0x326   :  { %v1321_v36 = vpop.f32.mrb[132].mxu1  ;;  %2300 = vmatprep.mubr.msk.bf16.mxu0 %vm2607_vm2, %v4068_v24 }
 0x327   :  { %v2218_v39 = vpop.f32.mrb[133].mxu1  ;;  %v1322_v57 = vadd.f32 %v3707_v53, %v1321_v36 }
 0x328   :  { %v2573_v28 = vpop.eup %2572  ;;  %v1324_v31 = vpop.f32.mrb[134].mxu1 }
 0x329   :  { %v1325_v40 = vadd.f32 %v3707_v53, %v1324_v31  ;;  %v2219_v4 = vpop.f32.mrb[135].mxu1  ;;  %v1473_v22 = vmul.bf16 %v2573_v28, %v3291_v45 }
 0x32b   :  { %v1437_v25 = vpack.c.bf16 %v1325_v40, %v1322_v57  ;;  %v1492_v33 = vadd.bf16 %v3283_v29, %v1473_v22 }
 0x32d   :  { %2576 = vtanh.bf16 %v1437_v25  ;;  %2301 = vmatmul.mubr.bf16.gmra.mrb[128].mxu0 %v1492_v33 }
 0x32e   :  { %v1329_v38 = vpop.f32.mrb[136].mxu1  ;;  %2304 = vmatprep.mubr.msk.bf16.mxu0 %vm2607_vm2, %v4068_v24 }
 0x32f   :  { %v2222_v26 = vpop.f32.mrb[137].mxu1  ;;  %v1330_v20 = vadd.f32 %v3707_v53, %v1329_v38 }
 0x330   :  { %v2575_v44 = vpop.eup %2574  ;;  %v1332_v2 = vpop.f32.mrb[138].mxu1 }
 0x331   :  { %v1333_v55 = vadd.f32 %v3707_v53, %v1332_v2  ;;  %v2223_v56 = vpop.f32.mrb[139].mxu1  ;;  %v1474_v48 = vmul.bf16 %v2575_v44, %v3316_v10 }
 0x333   :  { %v1438_v45 = vpack.c.bf16 %v1333_v55, %v1330_v20  ;;  %v1493_v7 = vadd.bf16 %v3310_v11, %v1474_v48 }
 0x335   :  { %2578 = vtanh.bf16 %v1438_v45  ;;  %2305 = vmatmul.mubr.bf16.gmra.mrb[132].mxu0 %v1493_v7 }
 0x336   :  { %v1337_v29 = vpop.f32.mrb[140].mxu1  ;;  %2308 = vmatprep.mubr.msk.bf16.mxu0 %vm2607_vm2, %v4068_v24 }
 0x337   :  { %v2226_v54 = vpop.f32.mrb[141].mxu1  ;;  %v1338_v14 = vadd.f32 %v3707_v53, %v1337_v29 }
 0x338   :  { %v2577_v50 = vpop.eup %2576  ;;  %v1340_v49 = vpop.f32.mrb[142].mxu1 }
 0x339   :  { %v1341_v37 = vadd.f32 %v3707_v53, %v1340_v49  ;;  %v2227_v17 = vpop.f32.mrb[143].mxu1  ;;  %v1475_v1 = vmul.bf16 %v2577_v50, %v3334_v27 }
 0x33b   :  { %v1439_v10 = vpack.c.bf16 %v1341_v37, %v1338_v14  ;;  %v1494_v15 = vadd.bf16 %v3329_v42, %v1475_v1 }
 0x33d   :  { %2580 = vtanh.bf16 %v1439_v10  ;;  %2309 = vmatmul.mubr.bf16.gmra.mrb[136].mxu0 %v1494_v15 }
 0x33e   :  { %v1345_v11 = vpop.f32.mrb[144].mxu1  ;;  %2312 = vmatprep.mubr.msk.bf16.mxu0 %vm2607_vm2, %v4068_v24 }
 0x33f   :  { %v2230_v19 = vpop.f32.mrb[145].mxu1  ;;  %v1346_v36 = vadd.f32 %v3707_v53, %v1345_v11 }
 0x340   :  { %v2579_v8 = vpop.eup %2578  ;;  %v1348_v59 = vpop.f32.mrb[146].mxu1 }
 0x341   :  { %v1349_v39 = vadd.f32 %v3707_v53, %v1348_v59  ;;  %v2231_v28 = vpop.f32.mrb[147].mxu1  ;;  %v1476_v31 = vmul.bf16 %v2579_v8, %v3351_v35 }
 0x343   :  { %v1440_v27 = vpack.c.bf16 %v1349_v39, %v1346_v36  ;;  %v1495_v57 = vadd.bf16 %v3346_v16, %v1476_v31 }
 0x345   :  { %2582 = vtanh.bf16 %v1440_v27  ;;  %2313 = vmatmul.mubr.bf16.gmra.mrb[140].mxu0 %v1495_v57 }
 0x346   :  { %v1353_v42 = vpop.f32.mrb[148].mxu1  ;;  %2316 = vmatprep.mubr.msk.bf16.mxu0 %vm2607_vm2, %v4068_v24 }
 0x347   :  { %v2234_v40 = vpop.f32.mrb[149].mxu1  ;;  %v1354_v25 = vadd.f32 %v3707_v53, %v1353_v42 }
 0x348   :  { %v2581_v4 = vpop.eup %2580  ;;  %v1356_v22 = vpop.f32.mrb[150].mxu1 }
 0x349   :  { %v1357_v33 = vadd.f32 %v3707_v53, %v1356_v22  ;;  %v2235_v38 = vpop.f32.mrb[151].mxu1  ;;  %v1477_v26 = vmul.bf16 %v2581_v4, %v3368_v6 }
 0x34b   :  { %v1441_v35 = vpack.c.bf16 %v1357_v33, %v1354_v25  ;;  %v1496_v44 = vadd.bf16 %v3363_v30, %v1477_v26 }
 0x34d   :  { %2584 = vtanh.bf16 %v1441_v35  ;;  %2317 = vmatmul.mubr.bf16.gmra.mrb[144].mxu0 %v1496_v44 }
 0x34e   :  { %v1361_v16 = vpop.f32.mrb[152].mxu1  ;;  %2320 = vmatprep.mubr.msk.bf16.mxu0 %vm2607_vm2, %v4068_v24 }
 0x34f   :  { %v2238_v2 = vpop.f32.mrb[153].mxu1  ;;  %v1362_v56 = vadd.f32 %v3707_v53, %v1361_v16 }
 0x350   :  { %v2583_v20 = vpop.eup %2582  ;;  %v1364_v55 = vpop.f32.mrb[154].mxu1 }
 0x351   :  { %v1365_v48 = vadd.f32 %v3707_v53, %v1364_v55  ;;  %v2239_v45 = vpop.f32.mrb[155].mxu1  ;;  %v1478_v7 = vmul.bf16 %v2583_v20, %v3385_v43 }
 0x353   :  { %v1442_v6 = vpack.c.bf16 %v1365_v48, %v1362_v56  ;;  %v1497_v29 = vadd.bf16 %v3380_v21, %v1478_v7 }
 0x355   :  { %2586 = vtanh.bf16 %v1442_v6  ;;  %2321 = vmatmul.mubr.bf16.gmra.mrb[148].mxu0 %v1497_v29 }
 0x356   :  { %v1369_v30 = vpop.f32.mrb[156].mxu1  ;;  %2324 = vmatprep.mubr.msk.bf16.mxu0 %vm2607_vm2, %v4068_v24 }
 0x357   :  { %v2242_v54 = vpop.f32.mrb[157].mxu1  ;;  %v1370_v14 = vadd.f32 %v3707_v53, %v1369_v30 }
 0x358   :  { %v2585_v50 = vpop.eup %2584  ;;  %v1372_v49 = vpop.f32.mrb[158].mxu1 }
 0x359   :  { %v1373_v37 = vadd.f32 %v3707_v53, %v1372_v49  ;;  %v2243_v17 = vpop.f32.mrb[159].mxu1  ;;  %v1479_v1 = vmul.bf16 %v2585_v50, %v3402_v60 }
 0x35b   :  { %v1443_v43 = vpack.c.bf16 %v1373_v37, %v1370_v14  ;;  %v1498_v10 = vadd.bf16 %v3397_v23, %v1479_v1 }
 0x35d   :  { %2588 = vtanh.bf16 %v1443_v43  ;;  %2325 = vmatmul.mubr.bf16.gmra.mrb[152].mxu0 %v1498_v10 }
 0x35e   :  { %v1377_v21 = vpop.f32.mrb[160].mxu1  ;;  %2328 = vmatprep.mubr.msk.bf16.mxu0 %vm2607_vm2, %v4068_v24 }
 0x35f   :  { %v2246_v15 = vpop.f32.mrb[161].mxu1  ;;  %v1378_v8 = vadd.f32 %v3707_v53, %v1377_v21 }
 0x360   :  { %v2587_v11 = vpop.eup %2586  ;;  %v1380_v19 = vpop.f32.mrb[162].mxu1 }
 0x361   :  { %v1381_v59 = vadd.f32 %v3707_v53, %v1380_v19  ;;  %v2247_v36 = vpop.f32.mrb[163].mxu1  ;;  %v1480_v39 = vmul.bf16 %v2587_v11, %v3419_v18 }
 0x363   :  { %v1444_v60 = vpack.c.bf16 %v1381_v59, %v1378_v8  ;;  %v1499_v28 = vadd.bf16 %v3414_v0, %v1480_v39 }
 0x365   :  { %2590 = vtanh.bf16 %v1444_v60  ;;  %2329 = vmatmul.mubr.bf16.gmra.mrb[156].mxu0 %v1499_v28 }
 0x366   :  { %v1385_v23 = vpop.f32.mrb[164].mxu1  ;;  %2332 = vmatprep.mubr.msk.bf16.mxu0 %vm2607_vm2, %v4068_v24 }
 0x367   :  { %v2250_v31 = vpop.f32.mrb[165].mxu1  ;;  %v1386_v42 = vadd.f32 %v3707_v53, %v1385_v23 }
 0x368   :  { %v2589_v27 = vpop.eup %2588  ;;  %v1388_v57 = vpop.f32.mrb[166].mxu1 }
 0x369   :  { %v1389_v40 = vadd.f32 %v3707_v53, %v1388_v57  ;;  %v2251_v4 = vpop.f32.mrb[167].mxu1  ;;  %v1481_v22 = vmul.bf16 %v2589_v27, %v3436_v63 }
 0x36b   :  { %v1445_v18 = vpack.c.bf16 %v1389_v40, %v1386_v42  ;;  %v1500_v25 = vadd.bf16 %v3431_v41, %v1481_v22 }
 0x36d   :  { %2592 = vtanh.bf16 %v1445_v18  ;;  %2333 = vmatmul.mubr.bf16.gmra.mrb[160].mxu0 %v1500_v25 }
 0x36e   :  { %v1393_v0 = vpop.f32.mrb[168].mxu1  ;;  %2336 = vmatprep.mubr.msk.bf16.mxu0 %vm2607_vm2, %v4068_v24 }
 0x36f   :  { %v2254_v33 = vpop.f32.mrb[169].mxu1  ;;  %v1394_v35 = vadd.f32 %v3707_v53, %v1393_v0 }
 0x370   :  { %v2591_v38 = vpop.eup %2590  ;;  %v1396_v26 = vpop.f32.mrb[170].mxu1 }
 0x371   :  { %v1397_v44 = vadd.f32 %v3707_v53, %v1396_v26  ;;  %v2255_v16 = vpop.f32.mrb[171].mxu1  ;;  %v1482_v2 = vmul.bf16 %v2591_v38, %v3453_v32 }
 0x373   :  { %v1446_v63 = vpack.c.bf16 %v1397_v44, %v1394_v35  ;;  %v1501_v20 = vadd.bf16 %v3448_v52, %v1482_v2 }
 0x375   :  { %2594 = vtanh.bf16 %v1446_v63  ;;  %2337 = vmatmul.mubr.bf16.gmra.mrb[164].mxu0 %v1501_v20 }
 0x376   :  { %v1401_v41 = vpop.f32.mrb[172].mxu1  ;;  %2340 = vmatprep.mubr.msk.bf16.mxu0 %vm2607_vm2, %v4068_v24 }
 0x377   :  { %v2258_v55 = vpop.f32.mrb[173].mxu1  ;;  %v1402_v45 = vadd.f32 %v3707_v53, %v1401_v41 }
 0x378   :  { %v2593_v56 = vpop.eup %2592  ;;  %v1404_v48 = vpop.f32.mrb[174].mxu1 }
 0x379   :  { %v1405_v7 = vadd.f32 %v3707_v53, %v1404_v48  ;;  %v2259_v6 = vpop.f32.mrb[175].mxu1  ;;  %v1483_v29 = vmul.bf16 %v2593_v56, %v3473_v3 }
 0x37b   :  { %v1447_v32 = vpack.c.bf16 %v1405_v7, %v1402_v45  ;;  %v1502_v30 = vadd.bf16 %v3468_v34, %v1483_v29 }
 0x37d   :  { %2596 = vtanh.bf16 %v1447_v32  ;;  %2341 = vmatmul.mubr.bf16.gmra.mrb[168].mxu0 %v1502_v30 }
 0x37e   :  { %v1409_v52 = vpop.f32.mrb[176].mxu1  ;;  %2344 = vmatprep.mubr.msk.bf16.mxu0 %vm2607_vm2, %v4068_v24 }
 0x37f   :  { %v2262_v54 = vpop.f32.mrb[177].mxu1  ;;  %v1410_v14 = vadd.f32 %v3707_v53, %v1409_v52 }
 0x380   :  { %v2595_v50 = vpop.eup %2594  ;;  %v1412_v49 = vpop.f32.mrb[178].mxu1 }
 0x381   :  { %v1413_v37 = vadd.f32 %v3707_v53, %v1412_v49  ;;  %v2263_v17 = vpop.f32.mrb[179].mxu1  ;;  %v1484_v1 = vmul.bf16 %v2595_v50, %v3490_v9 }
 0x383   :  { %v1448_v3 = vpack.c.bf16 %v1413_v37, %v1410_v14  ;;  %v1503_v43 = vadd.bf16 %v3485_v13, %v1484_v1 }
 0x385   :  { %2598 = vtanh.bf16 %v1448_v3  ;;  %2345 = vmatmul.mubr.bf16.gmra.mrb[172].mxu0 %v1503_v43 }
 0x386   :  { %v1417_v34 = vpop.f32.mrb[180].mxu1  ;;  %2348 = vmatprep.mubr.msk.bf16.mxu0 %vm2607_vm2, %v4068_v24 }
 0x387   :  { %v2266_v10 = vpop.f32.mrb[181].mxu1  ;;  %v1418_v11 = vadd.f32 %v3707_v53, %v1417_v34 }
 0x388   :  { %v2597_v21 = vpop.eup %2596  ;;  %v1420_v15 = vpop.f32.mrb[182].mxu1 }
 0x389   :  { %v1421_v19 = vadd.f32 %v3707_v53, %v1420_v15  ;;  %v2267_v8 = vpop.f32.mrb[183].mxu1  ;;  %v1485_v59 = vmul.bf16 %v2597_v21, %v3507_v61 }
 0x38b   :  { %v1449_v9 = vpack.c.bf16 %v1421_v19, %v1418_v11  ;;  %v1504_v36 = vadd.bf16 %v3502_v62, %v1485_v59 }
 0x38d   :  { %2600 = vtanh.bf16 %v1449_v9  ;;  %2349 = vmatmul.mubr.bf16.gmra.mrb[176].mxu0 %v1504_v36 }
 0x38e   :  { %v1425_v13 = vpop.f32.mrb[184].mxu1  ;;  %2352 = vmatprep.mubr.msk.bf16.mxu0 %vm2607_vm2, %v4068_v24 }
 0x38f   :  { %v2270_v39 = vpop.f32.mrb[185].mxu1  ;;  %v1426_v23 = vadd.f32 %v3707_v53, %v1425_v13 }
 0x390   :  { %v2599_v60 = vpop.eup %2598  ;;  %v1428_v28 = vpop.f32.mrb[186].mxu1 }
 0x391   :  { %v1429_v31 = vadd.f32 %v3707_v53, %v1428_v28  ;;  %v2271_v27 = vpop.f32.mrb[187].mxu1  ;;  %v1486_v57 = vmul.bf16 %v2599_v60, %v3524_v58 }
 0x393   :  { %v1450_v61 = vpack.c.bf16 %v1429_v31, %v1426_v23  ;;  %v1505_v42 = vadd.bf16 %v3519_v5, %v1486_v57  ;;  %v3824_v5 = vld [vmem:[%s4022_s6] ss:$0 sm:$0xff] }
 0x395   :  { %2602 = vtanh.bf16 %v1450_v61  ;;  %2353 = vmatmul.mubr.bf16.gmra.mrb[180].mxu0 %v1505_v42 }
 0x396   :  { %2356 = vmatprep.mubr.msk.bf16.mxu0 %vm2607_vm2, %v4068_v24 }
 0x398   :  { %v2601_v62 = vpop.eup %2600 }
 0x399   :  { %v1487_v40 = vmul.bf16 %v2601_v62, %v3541_v51 }
 0x39b   :  { %v1506_v4 = vadd.bf16 %v3536_v46, %v1487_v40 }
 0x39d   :  { %2357 = vmatmul.mubr.bf16.gmra.mrb[184].mxu0 %v1506_v4 }
 0x39e   :  { %2360 = vmatprep.mubr.msk.bf16.mxu0 %vm2607_vm2, %v4068_v24 }
 0x3a0   :  { %v2603_v53 = vpop.eup %2602 }
 0x3a1   :  { %v1488_v58 = vmul.bf16 %v2603_v53, %v3550_v12 }
 0x3a3   :  { %v1507_v22 = vadd.bf16 %v3545_v47, %v1488_v58 }
 0x3a5   :  { %2361 = vmatmul.mubr.bf16.gmra.mrb[188].mxu0 %v1507_v22 }
 0x3e8   :  { %v1613_v18 = vpop.f32.mrb[116].mxu0 }
 0x3e9   :  { %v1614_v51 = vadd.f32 %v3824_v5, %v1613_v18  ;;  %v2290_v46 = vpop.f32.mrb[117].mxu0 }
 0x3ea   :  { %v1616_v25 = vpop.f32.mrb[118].mxu0 }
 0x3eb   :  { %1765 = vst.msk [vmem:[%s4023_s7] sm:$0xff] %vm1764_vm3, %v1614_v51  ;;  %v1617_v24 = vadd.f32 %v3824_v5, %v1616_v25  ;;  %v2291_v47 = vpop.f32.mrb[119].mxu0 }
 0x3ed   :  { %1766 = vst.msk [vmem:[%s4023_s7 + $0x8] sm:$0xff] %vm1764_vm3, %v1617_v24 }
 0x3f0   :  { %v1621_v12 = vpop.f32.mrb[120].mxu0 }
 0x3f1   :  { %v1622_v0 = vadd.f32 %v3824_v5, %v1621_v12  ;;  %v2294_v33 = vpop.f32.mrb[121].mxu0 }
 0x3f2   :  { %v1624_v38 = vpop.f32.mrb[122].mxu0 }
 0x3f3   :  { %1767 = vst.msk [vmem:[%s4023_s7 + $0x10] sm:$0xff] %vm1764_vm3, %v1622_v0  ;;  %v1625_v26 = vadd.f32 %v3824_v5, %v1624_v38  ;;  %v2295_v35 = vpop.f32.mrb[123].mxu0 }
 0x3f5   :  { %1768 = vst.msk [vmem:[%s4023_s7 + $0x18] sm:$0xff] %vm1764_vm3, %v1625_v26 }
 0x3f8   :  { %v1629_v44 = vpop.f32.mrb[124].mxu0 }
 0x3f9   :  { %v1630_v16 = vadd.f32 %v3824_v5, %v1629_v44  ;;  %v2298_v2 = vpop.f32.mrb[125].mxu0 }
 0x3fa   :  { %v1632_v63 = vpop.f32.mrb[126].mxu0 }
 0x3fb   :  { %1769 = vst.msk [vmem:[%s4023_s7 + $0x20] sm:$0xff] %vm1764_vm3, %v1630_v16  ;;  %v1633_v20 = vadd.f32 %v3824_v5, %v1632_v63  ;;  %v2299_v41 = vpop.f32.mrb[127].mxu0 }
 0x3fd   :  { %1770 = vst.msk [vmem:[%s4023_s7 + $0x28] sm:$0xff] %vm1764_vm3, %v1633_v20 }
 0x400   :  { %v1637_v55 = vpop.f32.mrb[128].mxu0 }
 0x401   :  { %v1638_v56 = vadd.f32 %v3824_v5, %v1637_v55  ;;  %v2302_v48 = vpop.f32.mrb[129].mxu0 }
 0x402   :  { %v1640_v45 = vpop.f32.mrb[130].mxu0 }
 0x403   :  { %1771 = vst.msk [vmem:[%s4023_s7 + $0x30] sm:$0xff] %vm1764_vm3, %v1638_v56  ;;  %v1641_v7 = vadd.f32 %v3824_v5, %v1640_v45  ;;  %v2303_v6 = vpop.f32.mrb[131].mxu0 }
 0x405   :  { %1772 = vst.msk [vmem:[%s4023_s7 + $0x38] sm:$0xff] %vm1764_vm3, %v1641_v7 }
 0x408   :  { %v1645_v29 = vpop.f32.mrb[132].mxu0 }
 0x409   :  { %v1646_v32 = vadd.f32 %v3824_v5, %v1645_v29  ;;  %v2306_v30 = vpop.f32.mrb[133].mxu0 }
 0x40a   :  { %v1648_v52 = vpop.f32.mrb[134].mxu0 }
 0x40b   :  { %1773 = vst.msk [vmem:[%s4023_s7 + $0x40] sm:$0xff] %vm1764_vm3, %v1646_v32  ;;  %v1649_v54 = vadd.f32 %v3824_v5, %v1648_v52  ;;  %v2307_v50 = vpop.f32.mrb[135].mxu0 }
 0x40d   :  { %1774 = vst.msk [vmem:[%s4023_s7 + $0x48] sm:$0xff] %vm1764_vm3, %v1649_v54 }
 0x410   :  { %v1653_v49 = vpop.f32.mrb[136].mxu0 }
 0x411   :  { %v1654_v14 = vadd.f32 %v3824_v5, %v1653_v49  ;;  %v2310_v37 = vpop.f32.mrb[137].mxu0 }
 0x412   :  { %v1656_v17 = vpop.f32.mrb[138].mxu0 }
 0x413   :  { %1775 = vst.msk [vmem:[%s4023_s7 + $0x50] sm:$0xff] %vm1764_vm3, %v1654_v14  ;;  %v1657_v1 = vadd.f32 %v3824_v5, %v1656_v17  ;;  %v2311_v3 = vpop.f32.mrb[139].mxu0 }
 0x415   :  { %1776 = vst.msk [vmem:[%s4023_s7 + $0x58] sm:$0xff] %vm1764_vm3, %v1657_v1 }
 0x418   :  { %v1661_v43 = vpop.f32.mrb[140].mxu0 }
 0x419   :  { %v1662_v34 = vadd.f32 %v3824_v5, %v1661_v43  ;;  %v2314_v10 = vpop.f32.mrb[141].mxu0 }
 0x41a   :  { %v1664_v21 = vpop.f32.mrb[142].mxu0 }
 0x41b   :  { %1777 = vst.msk [vmem:[%s4023_s7 + $0x60] sm:$0xff] %vm1764_vm3, %v1662_v34  ;;  %v1665_v15 = vadd.f32 %v3824_v5, %v1664_v21  ;;  %v2315_v11 = vpop.f32.mrb[143].mxu0 }
 0x41d   :  { %1778 = vst.msk [vmem:[%s4023_s7 + $0x68] sm:$0xff] %vm1764_vm3, %v1665_v15 }
 0x420   :  { %v1669_v19 = vpop.f32.mrb[144].mxu0 }
 0x421   :  { %v1670_v8 = vadd.f32 %v3824_v5, %v1669_v19  ;;  %v2318_v59 = vpop.f32.mrb[145].mxu0 }
 0x422   :  { %v1672_v9 = vpop.f32.mrb[146].mxu0 }
 0x423   :  { %1779 = vst.msk [vmem:[%s4023_s7 + $0x70] sm:$0xff] %vm1764_vm3, %v1670_v8  ;;  %v1673_v36 = vadd.f32 %v3824_v5, %v1672_v9  ;;  %v2319_v13 = vpop.f32.mrb[147].mxu0 }
 0x425   :  { %1780 = vst.msk [vmem:[%s4023_s7 + $0x78] sm:$0xff] %vm1764_vm3, %v1673_v36 }
 0x428   :  { %v1677_v39 = vpop.f32.mrb[148].mxu0 }
 0x429   :  { %v1678_v60 = vadd.f32 %v3824_v5, %v1677_v39  ;;  %v2322_v28 = vpop.f32.mrb[149].mxu0 }
 0x42a   :  { %v1680_v23 = vpop.f32.mrb[150].mxu0 }
 0x42b   :  { %1781 = vst.msk [vmem:[%s4023_s7 + $0x80] sm:$0xff] %vm1764_vm3, %v1678_v60  ;;  %v1681_v31 = vadd.f32 %v3824_v5, %v1680_v23  ;;  %v2323_v27 = vpop.f32.mrb[151].mxu0 }
 0x42d   :  { %1782 = vst.msk [vmem:[%s4023_s7 + $0x88] sm:$0xff] %vm1764_vm3, %v1681_v31 }
 0x430   :  { %v1685_v57 = vpop.f32.mrb[152].mxu0 }
 0x431   :  { %v1686_v61 = vadd.f32 %v3824_v5, %v1685_v57  ;;  %v2326_v42 = vpop.f32.mrb[153].mxu0 }
 0x432   :  { %v1688_v62 = vpop.f32.mrb[154].mxu0 }
 0x433   :  { %1783 = vst.msk [vmem:[%s4023_s7 + $0x90] sm:$0xff] %vm1764_vm3, %v1686_v61  ;;  %v1689_v40 = vadd.f32 %v3824_v5, %v1688_v62  ;;  %v2327_v4 = vpop.f32.mrb[155].mxu0 }
 0x435   :  { %1784 = vst.msk [vmem:[%s4023_s7 + $0x98] sm:$0xff] %vm1764_vm3, %v1689_v40 }
 0x438   :  { %v1693_v53 = vpop.f32.mrb[156].mxu0 }
 0x439   :  { %v1694_v58 = vadd.f32 %v3824_v5, %v1693_v53  ;;  %v2330_v22 = vpop.f32.mrb[157].mxu0 }
 0x43a   :  { %v1696_v18 = vpop.f32.mrb[158].mxu0 }
 0x43b   :  { %1785 = vst.msk [vmem:[%s4023_s7 + $0xa0] sm:$0xff] %vm1764_vm3, %v1694_v58  ;;  %v1697_v51 = vadd.f32 %v3824_v5, %v1696_v18  ;;  %v2331_v46 = vpop.f32.mrb[159].mxu0 }
 0x43d   :  { %1786 = vst.msk [vmem:[%s4023_s7 + $0xa8] sm:$0xff] %vm1764_vm3, %v1697_v51 }
 0x440   :  { %v1701_v25 = vpop.f32.mrb[160].mxu0 }
 0x441   :  { %v1702_v24 = vadd.f32 %v3824_v5, %v1701_v25  ;;  %v2334_v47 = vpop.f32.mrb[161].mxu0 }
 0x442   :  { %v1704_v12 = vpop.f32.mrb[162].mxu0 }
 0x443   :  { %1787 = vst.msk [vmem:[%s4023_s7 + $0xb0] sm:$0xff] %vm1764_vm3, %v1702_v24  ;;  %v1705_v0 = vadd.f32 %v3824_v5, %v1704_v12  ;;  %v2335_v33 = vpop.f32.mrb[163].mxu0 }
 0x445   :  { %1788 = vst.msk [vmem:[%s4023_s7 + $0xb8] sm:$0xff] %vm1764_vm3, %v1705_v0 }
 0x448   :  { %v1709_v38 = vpop.f32.mrb[164].mxu0 }
 0x449   :  { %v1710_v26 = vadd.f32 %v3824_v5, %v1709_v38  ;;  %v2338_v35 = vpop.f32.mrb[165].mxu0 }
 0x44a   :  { %v1712_v44 = vpop.f32.mrb[166].mxu0 }
 0x44b   :  { %1789 = vst.msk [vmem:[%s4023_s7 + $0xc0] sm:$0xff] %vm1764_vm3, %v1710_v26  ;;  %v1713_v16 = vadd.f32 %v3824_v5, %v1712_v44  ;;  %v2339_v2 = vpop.f32.mrb[167].mxu0 }
 0x44d   :  { %1790 = vst.msk [vmem:[%s4023_s7 + $0xc8] sm:$0xff] %vm1764_vm3, %v1713_v16 }
 0x450   :  { %v1717_v63 = vpop.f32.mrb[168].mxu0 }
 0x451   :  { %v1718_v20 = vadd.f32 %v3824_v5, %v1717_v63  ;;  %v2342_v41 = vpop.f32.mrb[169].mxu0 }
 0x452   :  { %v1720_v55 = vpop.f32.mrb[170].mxu0 }
 0x453   :  { %1791 = vst.msk [vmem:[%s4023_s7 + $0xd0] sm:$0xff] %vm1764_vm3, %v1718_v20  ;;  %v1721_v56 = vadd.f32 %v3824_v5, %v1720_v55  ;;  %v2343_v48 = vpop.f32.mrb[171].mxu0 }
 0x455   :  { %1792 = vst.msk [vmem:[%s4023_s7 + $0xd8] sm:$0xff] %vm1764_vm3, %v1721_v56 }
 0x458   :  { %v1725_v45 = vpop.f32.mrb[172].mxu0 }
 0x459   :  { %v1726_v7 = vadd.f32 %v3824_v5, %v1725_v45  ;;  %v2346_v6 = vpop.f32.mrb[173].mxu0 }
 0x45a   :  { %v1728_v29 = vpop.f32.mrb[174].mxu0 }
 0x45b   :  { %1793 = vst.msk [vmem:[%s4023_s7 + $0xe0] sm:$0xff] %vm1764_vm3, %v1726_v7  ;;  %v1729_v32 = vadd.f32 %v3824_v5, %v1728_v29  ;;  %v2347_v30 = vpop.f32.mrb[175].mxu0 }
 0x45d   :  { %1794 = vst.msk [vmem:[%s4023_s7 + $0xe8] sm:$0xff] %vm1764_vm3, %v1729_v32 }
 0x460   :  { %v1733_v52 = vpop.f32.mrb[176].mxu0 }
 0x461   :  { %v1734_v54 = vadd.f32 %v3824_v5, %v1733_v52  ;;  %v2350_v50 = vpop.f32.mrb[177].mxu0 }
 0x462   :  { %v1736_v49 = vpop.f32.mrb[178].mxu0 }
 0x463   :  { %1795 = vst.msk [vmem:[%s4023_s7 + $0xf0] sm:$0xff] %vm1764_vm3, %v1734_v54  ;;  %v1737_v14 = vadd.f32 %v3824_v5, %v1736_v49  ;;  %v2351_v37 = vpop.f32.mrb[179].mxu0 }
 0x465   :  { %1796 = vst.msk [vmem:[%s4023_s7 + $0xf8] sm:$0xff] %vm1764_vm3, %v1737_v14 }
 0x468   :  { %v1741_v17 = vpop.f32.mrb[180].mxu0 }
 0x469   :  { %v1742_v1 = vadd.f32 %v3824_v5, %v1741_v17  ;;  %v2354_v3 = vpop.f32.mrb[181].mxu0 }
 0x46a   :  { %v1744_v43 = vpop.f32.mrb[182].mxu0 }
 0x46b   :  { %1797 = vst.msk [vmem:[%s4023_s7 + $0x100] sm:$0xff] %vm1764_vm3, %v1742_v1  ;;  %v1745_v34 = vadd.f32 %v3824_v5, %v1744_v43  ;;  %v2355_v10 = vpop.f32.mrb[183].mxu0 }
 0x46d   :  { %1798 = vst.msk [vmem:[%s4023_s7 + $0x108] sm:$0xff] %vm1764_vm3, %v1745_v34 }
 0x470   :  { %v1749_v21 = vpop.f32.mrb[184].mxu0 }
 0x471   :  { %v1750_v15 = vadd.f32 %v3824_v5, %v1749_v21  ;;  %v2358_v11 = vpop.f32.mrb[185].mxu0 }
 0x472   :  { %v1752_v19 = vpop.f32.mrb[186].mxu0 }
 0x473   :  { %1799 = vst.msk [vmem:[%s4023_s7 + $0x110] sm:$0xff] %vm1764_vm3, %v1750_v15  ;;  %v1753_v8 = vadd.f32 %v3824_v5, %v1752_v19  ;;  %v2359_v59 = vpop.f32.mrb[187].mxu0 }
 0x475   :  { %1800 = vst.msk [vmem:[%s4023_s7 + $0x118] sm:$0xff] %vm1764_vm3, %v1753_v8 }
 0x478   :  { %v1757_v9 = vpop.f32.mrb[188].mxu0 }
 0x479   :  { %v1758_v36 = vadd.f32 %v3824_v5, %v1757_v9  ;;  %v2362_v13 = vpop.f32.mrb[189].mxu0 }
 0x47a   :  { %v1760_v39 = vpop.f32.mrb[190].mxu0 }
 0x47b   :  { %1801 = vst.msk [vmem:[%s4023_s7 + $0x120] sm:$0xff] %vm1764_vm3, %v1758_v36  ;;  %v1761_v60 = vadd.f32 %v3824_v5, %v1760_v39  ;;  %v2363_v28 = vpop.f32.mrb[191].mxu0 }
 0x47d   :  { %1802 = vst.msk [vmem:[%s4023_s7 + $0x128] sm:$0xff] %vm1764_vm3, %v1761_v60 }

</bundles_post_ra>
